<compile_context>
chip_gen: v6e
topology: v6e:2x2x1
jax: 0.10.0
libtpu: 0.0.40
codegen_flags: <defaults>
</compile_context>

<pallas_src>
import jax
import jax.numpy as jnp
from jax.experimental import pallas as pl
from jax.experimental.pallas import tpu as pltpu

EPS = 1e-5
LANE = 128
VMEM_LIMIT = 32 * 1024 * 1024


def conv_stats_kernel(x_ref, w_ref, y_ref, psum_ref, psq_ref):
    """One batch image per grid step.

    x_ref:    (H+2, W+2, Cin)        bf16 zero-padded NHWC image
    w_ref:    (3, 3, Cin, Cout_pad)  bf16 conv weight (lane-padded Cout)
    y_ref:    (H*W, Cout_pad)        f32 conv output (bias omitted: cancels in BN)
    psum_ref: (1, Cout_pad)          f32 per-tile channel sum
    psq_ref:  (1, Cout_pad)          f32 per-tile channel sum of squares
    """
    hp2, wp2, cin = x_ref.shape
    H, W = hp2 - 2, wp2 - 2
    cout_p = w_ref.shape[-1]

    w = w_ref[...]  # (3, 3, Cin, Cout_pad), resident in VMEM
    acc = jnp.zeros((H * W, cout_p), jnp.float32)
    # Conv as 9 accumulated matmuls, one per (kh, kw) tap; the shifted views are
    # static slices of the VMEM-resident padded block (no im2col materialization).
    for kh in range(3):
        for kw in range(3):
            xs = x_ref[kh:kh + H, kw:kw + W, :]          # (H, W, Cin) bf16
            xs = xs.reshape(H * W, cin)                  # contiguous merge
            acc = acc + jnp.dot(xs, w[kh, kw],
                                preferred_element_type=jnp.float32)

    y_ref[...] = acc
    # Partial BN statistics for this tile (combined across tiles in the wrapper;
    # keeps the grid axis "parallel" so v7x can split it across both TensorCores).
    psum_ref[...] = jnp.sum(acc, axis=0, keepdims=True)
    psq_ref[...] = jnp.sum(acc * acc, axis=0, keepdims=True)


def bn_relu_kernel(y_ref, scale_ref, shift_ref, o_ref):
    """Folded BN (scale/shift) + ReLU over one lane-dense (TM, Cout_pad) tile."""
    o_ref[...] = jnp.maximum(y_ref[...] * scale_ref[...] + shift_ref[...], 0.0)


@jax.jit
def conv2d_block_forward(x_nchw, weight, gamma, beta):
    """x_nchw: (N, Cin, H, W); weight: (Cout, Cin, 3, 3). Returns (N, Cout, H, W).

    Matches PyTorch Conv2dBlock forward with BatchNorm2d in training mode
    (batch statistics, biased variance). The conv bias is mathematically
    cancelled by the BN mean subtraction and is therefore not an input.
    """
    N, Cin, H, W = x_nchw.shape
    Cout = weight.shape[0]
    M = N * H * W
    HW = H * W
    cout_p = ((Cout + LANE - 1) // LANE) * LANE  # lane-dense channel padding

    # Boundary layout conversion NCHW -> NHWC, zero pad=1, bf16 matmul operand.
    # TODO(synk): staying NHWC end-to-end / fusing the zero-pad into the kernel
    # would drop these wrapper HBM passes, but requires the surrounding model to
    # be NHWC; kept as cheap boundary ops here.
    x = jnp.transpose(x_nchw, (0, 2, 3, 1))
    x_pad = jnp.pad(x, ((0, 0), (1, 1), (1, 1), (0, 0))).astype(jnp.bfloat16)

    # (Cout, Cin, 3, 3) -> (3, 3, Cin, Cout) -> lane-pad Cout -> bf16
    w = jnp.transpose(weight, (2, 3, 1, 0)).astype(jnp.float32)
    w = jnp.pad(w, ((0, 0), (0, 0), (0, 0), (0, cout_p - Cout))).astype(jnp.bfloat16)

    g = jnp.pad(gamma.astype(jnp.float32), (0, cout_p - Cout),
                constant_values=1.0).reshape(1, cout_p)
    b = jnp.pad(beta.astype(jnp.float32), (0, cout_p - Cout)).reshape(1, cout_p)

    cparams = pltpu.CompilerParams(
        dimension_semantics=("parallel",),
        vmem_limit_bytes=VMEM_LIMIT,
    )

    # ---- Pass 1: conv (tap-wise MXU matmuls) + partial BN statistics ----
    flops1 = 2 * M * (9 * Cin) * cout_p
    bytes1 = (x_pad.size * 2 + w.size * 2          # bf16 inputs
              + M * cout_p * 4 + 2 * N * cout_p * 4)  # f32 outputs
    y, psum, psq = pl.pallas_call(
        conv_stats_kernel,
        out_shape=(
            jax.ShapeDtypeStruct((N, HW, cout_p), jnp.float32),
            jax.ShapeDtypeStruct((N, 1, cout_p), jnp.float32),
            jax.ShapeDtypeStruct((N, 1, cout_p), jnp.float32),
        ),
        grid=(N,),
        in_specs=[
            pl.BlockSpec((None, H + 2, W + 2, Cin), lambda n: (n, 0, 0, 0)),
            pl.BlockSpec((3, 3, Cin, cout_p), lambda n: (0, 0, 0, 0)),
        ],
        out_specs=(
            pl.BlockSpec((None, HW, cout_p), lambda n: (n, 0, 0)),
            pl.BlockSpec((None, 1, cout_p), lambda n: (n, 0, 0)),
            pl.BlockSpec((None, 1, cout_p), lambda n: (n, 0, 0)),
        ),
        compiler_params=cparams,
        cost_estimate=pl.CostEstimate(
            flops=flops1, transcendentals=0, bytes_accessed=bytes1),
    )(x_pad, w)

    # ---- Combine partials (tiny, Cout-sized) and fold BN into scale/shift ----
    s = jnp.sum(psum, axis=0).reshape(1, cout_p)
    sq = jnp.sum(psq, axis=0).reshape(1, cout_p)
    mean = s / M
    # E[y^2] - E[y]^2 in f32, clamped to guard against cancellation.
    var = jnp.maximum(sq / M - mean * mean, 0.0)
    scale = g * jax.lax.rsqrt(var + EPS)
    shift = b - mean * scale

    # ---- Pass 2: normalize + ReLU, tiled over M with lane-dense stores ----
    y2 = y.reshape(M, cout_p)  # contiguous, no data movement
    tm = 256 if (M % 256 == 0) else M
    grid_m = M // tm
    flops2 = 2 * M * cout_p
    bytes2 = 2 * M * cout_p * 4 + 2 * cout_p * 4
    out_flat = pl.pallas_call(
        bn_relu_kernel,
        out_shape=jax.ShapeDtypeStruct((M, cout_p), jnp.float32),
        grid=(grid_m,),
        in_specs=[
            pl.BlockSpec((tm, cout_p), lambda i: (i, 0)),
            pl.BlockSpec((1, cout_p), lambda i: (0, 0)),
            pl.BlockSpec((1, cout_p), lambda i: (0, 0)),
        ],
        out_specs=pl.BlockSpec((tm, cout_p), lambda i: (i, 0)),
        compiler_params=cparams,
        cost_estimate=pl.CostEstimate(
            flops=flops2, transcendentals=0, bytes_accessed=bytes2),
    )(y2, scale, shift)

    # Slice off the lane padding, back to NCHW.
    out = out_flat[:, :Cout].reshape(N, H, W, Cout)
    return jnp.transpose(out, (0, 3, 1, 2))


def _reference(x, weight, gamma, beta):
    """Pure-JAX f32 reference: conv(3x3,pad=1) -> train-mode BN -> ReLU (no bias:
    the conv bias cancels exactly under batch-stat normalization)."""
    y = jax.lax.conv_general_dilated(
        x, weight, window_strides=(1, 1), padding=((1, 1), (1, 1)),
        dimension_numbers=("NCHW", "OIHW", "NCHW"))
    mean = jnp.mean(y, axis=(0, 2, 3), keepdims=True)
    var = jnp.mean((y - mean) ** 2, axis=(0, 2, 3), keepdims=True)
    yh = (y - mean) * jax.lax.rsqrt(var + EPS)
    yh = yh * gamma.reshape(1, -1, 1, 1) + beta.reshape(1, -1, 1, 1)
    return jnp.maximum(yh, 0.0)


if __name__ == "__main__":
    # Small shapes consistent with the module.
    N, Cin, H, W = 2, 4, 16, 16
    Cout = 8

    key = jax.random.PRNGKey(0)
    kx, kw = jax.random.split(key, 2)

    x = jax.random.normal(kx, (N, Cin, H, W), dtype=jnp.float32)

    # Deterministic parameter init (shapes as in nn.Conv2d / nn.BatchNorm2d).
    fan_in = Cin * 3 * 3
    bound = 1.0 / jnp.sqrt(fan_in)
    weight = jax.random.uniform(kw, (Cout, Cin, 3, 3), jnp.float32, -bound, bound)
    gamma = jnp.ones((Cout,), jnp.float32)   # BN weight init
    beta = jnp.zeros((Cout,), jnp.float32)   # BN bias init
    # NOTE: conv bias is not an input — it cancels exactly under training-mode BN.
    # TODO(synk): BN running_mean/running_var buffer updates are training-side
    # state and are not modeled; forward uses batch statistics (train mode).

    out = conv2d_block_forward(x, weight, gamma, beta)
    jax.block_until_ready(out)

    assert out.shape == (N, Cout, H, W)
    assert bool(jnp.all(out >= 0.0))  # ReLU sanity check
    ref = _reference(x, weight, gamma, beta)
    assert bool(jnp.allclose(out, ref, atol=0.1)), "mismatch vs f32 reference"
    print("KERNEL_OK")
</pallas_src>

<mosaic_0001>
module attributes {stable_mosaic.version = 11 : i64} {
  func.func @bn_relu_kernel(%arg0: i32, %arg1: memref<256x128xf32, #tpu.memory_space<vmem>>, %arg2: memref<1x128xf32, #tpu.memory_space<vmem>>, %arg3: memref<1x128xf32, #tpu.memory_space<vmem>>, %arg4: memref<256x128xf32, #tpu.memory_space<vmem>>) attributes {dimension_semantics = [#tpu.dimension_semantics<parallel>], iteration_bounds = array<i64: 2>, scalar_prefetch = 0 : i64, scratch_operands = 0 : i64, tpu.core_type = #tpu.core_type<tc>, window_params = [{transform_indices = @transform_0, window_bounds = array<i64: 256, 128>}, {pipeline_mode = #tpu.pipeline_mode<synchronous>, transform_indices = @transform_1, window_bounds = array<i64: 1, 128>}, {pipeline_mode = #tpu.pipeline_mode<synchronous>, transform_indices = @transform_2, window_bounds = array<i64: 1, 128>}, {transform_indices = @transform_3, window_bounds = array<i64: 256, 128>}]} {
    %c0 = arith.constant 0 : index
    %c0_0 = arith.constant 0 : index
    %0 = vector.load %arg1[%c0, %c0_0] : memref<256x128xf32, #tpu.memory_space<vmem>>, vector<256x128xf32>
    %c0_1 = arith.constant 0 : index
    %c0_2 = arith.constant 0 : index
    %1 = vector.load %arg2[%c0_1, %c0_2] : memref<1x128xf32, #tpu.memory_space<vmem>>, vector<1x128xf32>
    %2 = vector.broadcast %1 : vector<1x128xf32> to vector<256x128xf32>
    %3 = arith.mulf %0, %2 : vector<256x128xf32>
    %c0_3 = arith.constant 0 : index
    %c0_4 = arith.constant 0 : index
    %4 = vector.load %arg3[%c0_3, %c0_4] : memref<1x128xf32, #tpu.memory_space<vmem>>, vector<1x128xf32>
    %5 = vector.broadcast %4 : vector<1x128xf32> to vector<256x128xf32>
    %6 = arith.addf %3, %5 : vector<256x128xf32>
    %cst = arith.constant 0.000000e+00 : f32
    %7 = vector.broadcast %cst : f32 to vector<256x128xf32>
    %8 = arith.maximumf %6, %7 : vector<256x128xf32>
    %c0_5 = arith.constant 0 : index
    %c0_6 = arith.constant 0 : index
    %9 = vector.load %arg4[%c0_5, %c0_6] : memref<256x128xf32, #tpu.memory_space<vmem>>, vector<256x128xf32>
    tpu.vector_store %arg4[%c0_5, %c0_6], %8 {strides = array<i32>} : memref<256x128xf32, #tpu.memory_space<vmem>>, vector<256x128xf32>,
    return
  }
  func.func @transform_0(%arg0: i32) -> (i32, i32) {
    %c0_i32 = arith.constant 0 : i32
    %c0_i32_0 = arith.constant 0 : i32
    return %arg0, %c0_i32 : i32, i32
  }
  func.func @transform_1(%arg0: i32) -> (i32, i32) {
    %c0_i32 = arith.constant 0 : i32
    %c0_i32_0 = arith.constant 0 : i32
    %c0_i32_1 = arith.constant 0 : i32
    return %c0_i32, %c0_i32_0 : i32, i32
  }
  func.func @transform_2(%arg0: i32) -> (i32, i32) {
    %c0_i32 = arith.constant 0 : i32
    %c0_i32_0 = arith.constant 0 : i32
    %c0_i32_1 = arith.constant 0 : i32
    return %c0_i32, %c0_i32_0 : i32, i32
  }
  func.func @transform_3(%arg0: i32) -> (i32, i32) {
    %c0_i32 = arith.constant 0 : i32
    %c0_i32_0 = arith.constant 0 : i32
    return %arg0, %c0_i32 : i32, i32
  }
}

module attributes {stable_mosaic.version = 11 : i64} {
  func.func @conv_stats_kernel(%arg0: i32, %arg1: memref<1x18x18x4xbf16, #tpu.memory_space<vmem>>, %arg2: memref<3x3x4x128xbf16, #tpu.memory_space<vmem>>, %arg3: memref<1x256x128xf32, #tpu.memory_space<vmem>>, %arg4: memref<1x1x128xf32, #tpu.memory_space<vmem>>, %arg5: memref<1x1x128xf32, #tpu.memory_space<vmem>>) attributes {dimension_semantics = [#tpu.dimension_semantics<parallel>], iteration_bounds = array<i64: 2>, scalar_prefetch = 0 : i64, scratch_operands = 0 : i64, tpu.core_type = #tpu.core_type<tc>, window_params = [{transform_indices = @transform_0, window_bounds = array<i64: 1, 18, 18, 4>}, {pipeline_mode = #tpu.pipeline_mode<synchronous>, transform_indices = @transform_1, window_bounds = array<i64: 3, 3, 4, 128>}, {transform_indices = @transform_2, window_bounds = array<i64: 1, 256, 128>}, {transform_indices = @transform_3, window_bounds = array<i64: 1, 1, 128>}, {transform_indices = @transform_4, window_bounds = array<i64: 1, 1, 128>}]} {
    %c0 = arith.constant 0 : index
    %c0_0 = arith.constant 0 : index
    %c0_1 = arith.constant 0 : index
    %c0_2 = arith.constant 0 : index
    %0 = vector.load %arg2[%c0, %c0_0, %c0_1, %c0_2] : memref<3x3x4x128xbf16, #tpu.memory_space<vmem>>, vector<3x3x4x128xbf16>
    %cst = arith.constant 0.000000e+00 : f32
    %1 = vector.broadcast %cst : f32 to vector<256x128xf32>
    %c0_3 = arith.constant 0 : index
    %c0_4 = arith.constant 0 : index
    %c0_5 = arith.constant 0 : index
    %c0_6 = arith.constant 0 : index
    %2 = vector.load %arg1[%c0_3, %c0_4, %c0_5, %c0_6] : memref<1x18x18x4xbf16, #tpu.memory_space<vmem>>, vector<1x16x16x4xbf16>
    %3 = vector.shape_cast %2 : vector<1x16x16x4xbf16> to vector<16x16x4xbf16>
    %4 = vector.shape_cast %3 : vector<16x16x4xbf16> to vector<256x4xbf16>
    %5 = vector.extract_strided_slice %0 {offsets = [0, 0, 0, 0], sizes = [1, 1, 4, 128], strides = [1, 1, 1, 1]} : vector<3x3x4x128xbf16> to vector<1x1x4x128xbf16>
    %6 = vector.shape_cast %5 : vector<1x1x4x128xbf16> to vector<4x128xbf16>
    %cst_7 = arith.constant dense<0.000000e+00> : vector<256x128xf32>
    %7 = tpu.matmul %4, %6, %cst_7 {dimension_numbers = #tpu.dot_dimension_numbers<[1], [0], [0], [1], [0, 0, 1, 1], [], []>} : vector<256x4xbf16>, vector<4x128xbf16>, vector<256x128xf32> -> vector<256x128xf32>
    %8 = arith.addf %1, %7 : vector<256x128xf32>
    %c0_8 = arith.constant 0 : index
    %c0_9 = arith.constant 0 : index
    %c1 = arith.constant 1 : index
    %c0_10 = arith.constant 0 : index
    %9 = vector.load %arg1[%c0_8, %c0_9, %c1, %c0_10] : memref<1x18x18x4xbf16, #tpu.memory_space<vmem>>, vector<1x16x16x4xbf16>
    %10 = vector.shape_cast %9 : vector<1x16x16x4xbf16> to vector<16x16x4xbf16>
    %11 = vector.shape_cast %10 : vector<16x16x4xbf16> to vector<256x4xbf16>
    %12 = vector.extract_strided_slice %0 {offsets = [0, 1, 0, 0], sizes = [1, 1, 4, 128], strides = [1, 1, 1, 1]} : vector<3x3x4x128xbf16> to vector<1x1x4x128xbf16>
    %13 = vector.shape_cast %12 : vector<1x1x4x128xbf16> to vector<4x128xbf16>
    %cst_11 = arith.constant dense<0.000000e+00> : vector<256x128xf32>
    %14 = tpu.matmul %11, %13, %cst_11 {dimension_numbers = #tpu.dot_dimension_numbers<[1], [0], [0], [1], [0, 0, 1, 1], [], []>} : vector<256x4xbf16>, vector<4x128xbf16>, vector<256x128xf32> -> vector<256x128xf32>
    %15 = arith.addf %8, %14 : vector<256x128xf32>
    %c0_12 = arith.constant 0 : index
    %c0_13 = arith.constant 0 : index
    %c2 = arith.constant 2 : index
    %c0_14 = arith.constant 0 : index
    %16 = vector.load %arg1[%c0_12, %c0_13, %c2, %c0_14] : memref<1x18x18x4xbf16, #tpu.memory_space<vmem>>, vector<1x16x16x4xbf16>
    %17 = vector.shape_cast %16 : vector<1x16x16x4xbf16> to vector<16x16x4xbf16>
    %18 = vector.shape_cast %17 : vector<16x16x4xbf16> to vector<256x4xbf16>
    %19 = vector.extract_strided_slice %0 {offsets = [0, 2, 0, 0], sizes = [1, 1, 4, 128], strides = [1, 1, 1, 1]} : vector<3x3x4x128xbf16> to vector<1x1x4x128xbf16>
    %20 = vector.shape_cast %19 : vector<1x1x4x128xbf16> to vector<4x128xbf16>
    %cst_15 = arith.constant dense<0.000000e+00> : vector<256x128xf32>
    %21 = tpu.matmul %18, %20, %cst_15 {dimension_numbers = #tpu.dot_dimension_numbers<[1], [0], [0], [1], [0, 0, 1, 1], [], []>} : vector<256x4xbf16>, vector<4x128xbf16>, vector<256x128xf32> -> vector<256x128xf32>
    %22 = arith.addf %15, %21 : vector<256x128xf32>
    %c0_16 = arith.constant 0 : index
    %c1_17 = arith.constant 1 : index
    %c0_18 = arith.constant 0 : index
    %c0_19 = arith.constant 0 : index
    %23 = vector.load %arg1[%c0_16, %c1_17, %c0_18, %c0_19] : memref<1x18x18x4xbf16, #tpu.memory_space<vmem>>, vector<1x16x16x4xbf16>
    %24 = vector.shape_cast %23 : vector<1x16x16x4xbf16> to vector<16x16x4xbf16>
    %25 = vector.shape_cast %24 : vector<16x16x4xbf16> to vector<256x4xbf16>
    %26 = vector.extract_strided_slice %0 {offsets = [1, 0, 0, 0], sizes = [1, 1, 4, 128], strides = [1, 1, 1, 1]} : vector<3x3x4x128xbf16> to vector<1x1x4x128xbf16>
    %27 = vector.shape_cast %26 : vector<1x1x4x128xbf16> to vector<4x128xbf16>
    %cst_20 = arith.constant dense<0.000000e+00> : vector<256x128xf32>
    %28 = tpu.matmul %25, %27, %cst_20 {dimension_numbers = #tpu.dot_dimension_numbers<[1], [0], [0], [1], [0, 0, 1, 1], [], []>} : vector<256x4xbf16>, vector<4x128xbf16>, vector<256x128xf32> -> vector<256x128xf32>
    %29 = arith.addf %22, %28 : vector<256x128xf32>
    %c0_21 = arith.constant 0 : index
    %c1_22 = arith.constant 1 : index
    %c1_23 = arith.constant 1 : index
    %c0_24 = arith.constant 0 : index
    %30 = vector.load %arg1[%c0_21, %c1_22, %c1_23, %c0_24] : memref<1x18x18x4xbf16, #tpu.memory_space<vmem>>, vector<1x16x16x4xbf16>
    %31 = vector.shape_cast %30 : vector<1x16x16x4xbf16> to vector<16x16x4xbf16>
    %32 = vector.shape_cast %31 : vector<16x16x4xbf16> to vector<256x4xbf16>
    %33 = vector.extract_strided_slice %0 {offsets = [1, 1, 0, 0], sizes = [1, 1, 4, 128], strides = [1, 1, 1, 1]} : vector<3x3x4x128xbf16> to vector<1x1x4x128xbf16>
    %34 = vector.shape_cast %33 : vector<1x1x4x128xbf16> to vector<4x128xbf16>
    %cst_25 = arith.constant dense<0.000000e+00> : vector<256x128xf32>
    %35 = tpu.matmul %32, %34, %cst_25 {dimension_numbers = #tpu.dot_dimension_numbers<[1], [0], [0], [1], [0, 0, 1, 1], [], []>} : vector<256x4xbf16>, vector<4x128xbf16>, vector<256x128xf32> -> vector<256x128xf32>
    %36 = arith.addf %29, %35 : vector<256x128xf32>
    %c0_26 = arith.constant 0 : index
    %c1_27 = arith.constant 1 : index
    %c2_28 = arith.constant 2 : index
    %c0_29 = arith.constant 0 : index
    %37 = vector.load %arg1[%c0_26, %c1_27, %c2_28, %c0_29] : memref<1x18x18x4xbf16, #tpu.memory_space<vmem>>, vector<1x16x16x4xbf16>
    %38 = vector.shape_cast %37 : vector<1x16x16x4xbf16> to vector<16x16x4xbf16>
    %39 = vector.shape_cast %38 : vector<16x16x4xbf16> to vector<256x4xbf16>
    %40 = vector.extract_strided_slice %0 {offsets = [1, 2, 0, 0], sizes = [1, 1, 4, 128], strides = [1, 1, 1, 1]} : vector<3x3x4x128xbf16> to vector<1x1x4x128xbf16>
    %41 = vector.shape_cast %40 : vector<1x1x4x128xbf16> to vector<4x128xbf16>
    %cst_30 = arith.constant dense<0.000000e+00> : vector<256x128xf32>
    %42 = tpu.matmul %39, %41, %cst_30 {dimension_numbers = #tpu.dot_dimension_numbers<[1], [0], [0], [1], [0, 0, 1, 1], [], []>} : vector<256x4xbf16>, vector<4x128xbf16>, vector<256x128xf32> -> vector<256x128xf32>
    %43 = arith.addf %36, %42 : vector<256x128xf32>
    %c0_31 = arith.constant 0 : index
    %c2_32 = arith.constant 2 : index
    %c0_33 = arith.constant 0 : index
    %c0_34 = arith.constant 0 : index
    %44 = vector.load %arg1[%c0_31, %c2_32, %c0_33, %c0_34] : memref<1x18x18x4xbf16, #tpu.memory_space<vmem>>, vector<1x16x16x4xbf16>
    %45 = vector.shape_cast %44 : vector<1x16x16x4xbf16> to vector<16x16x4xbf16>
    %46 = vector.shape_cast %45 : vector<16x16x4xbf16> to vector<256x4xbf16>
    %47 = vector.extract_strided_slice %0 {offsets = [2, 0, 0, 0], sizes = [1, 1, 4, 128], strides = [1, 1, 1, 1]} : vector<3x3x4x128xbf16> to vector<1x1x4x128xbf16>
    %48 = vector.shape_cast %47 : vector<1x1x4x128xbf16> to vector<4x128xbf16>
    %cst_35 = arith.constant dense<0.000000e+00> : vector<256x128xf32>
    %49 = tpu.matmul %46, %48, %cst_35 {dimension_numbers = #tpu.dot_dimension_numbers<[1], [0], [0], [1], [0, 0, 1, 1], [], []>} : vector<256x4xbf16>, vector<4x128xbf16>, vector<256x128xf32> -> vector<256x128xf32>
    %50 = arith.addf %43, %49 : vector<256x128xf32>
    %c0_36 = arith.constant 0 : index
    %c2_37 = arith.constant 2 : index
    %c1_38 = arith.constant 1 : index
    %c0_39 = arith.constant 0 : index
    %51 = vector.load %arg1[%c0_36, %c2_37, %c1_38, %c0_39] : memref<1x18x18x4xbf16, #tpu.memory_space<vmem>>, vector<1x16x16x4xbf16>
    %52 = vector.shape_cast %51 : vector<1x16x16x4xbf16> to vector<16x16x4xbf16>
    %53 = vector.shape_cast %52 : vector<16x16x4xbf16> to vector<256x4xbf16>
    %54 = vector.extract_strided_slice %0 {offsets = [2, 1, 0, 0], sizes = [1, 1, 4, 128], strides = [1, 1, 1, 1]} : vector<3x3x4x128xbf16> to vector<1x1x4x128xbf16>
    %55 = vector.shape_cast %54 : vector<1x1x4x128xbf16> to vector<4x128xbf16>
    %cst_40 = arith.constant dense<0.000000e+00> : vector<256x128xf32>
    %56 = tpu.matmul %53, %55, %cst_40 {dimension_numbers = #tpu.dot_dimension_numbers<[1], [0], [0], [1], [0, 0, 1, 1], [], []>} : vector<256x4xbf16>, vector<4x128xbf16>, vector<256x128xf32> -> vector<256x128xf32>
    %57 = arith.addf %50, %56 : vector<256x128xf32>
    %c0_41 = arith.constant 0 : index
    %c2_42 = arith.constant 2 : index
    %c2_43 = arith.constant 2 : index
    %c0_44 = arith.constant 0 : index
    %58 = vector.load %arg1[%c0_41, %c2_42, %c2_43, %c0_44] : memref<1x18x18x4xbf16, #tpu.memory_space<vmem>>, vector<1x16x16x4xbf16>
    %59 = vector.shape_cast %58 : vector<1x16x16x4xbf16> to vector<16x16x4xbf16>
    %60 = vector.shape_cast %59 : vector<16x16x4xbf16> to vector<256x4xbf16>
    %61 = vector.extract_strided_slice %0 {offsets = [2, 2, 0, 0], sizes = [1, 1, 4, 128], strides = [1, 1, 1, 1]} : vector<3x3x4x128xbf16> to vector<1x1x4x128xbf16>
    %62 = vector.shape_cast %61 : vector<1x1x4x128xbf16> to vector<4x128xbf16>
    %cst_45 = arith.constant dense<0.000000e+00> : vector<256x128xf32>
    %63 = tpu.matmul %60, %62, %cst_45 {dimension_numbers = #tpu.dot_dimension_numbers<[1], [0], [0], [1], [0, 0, 1, 1], [], []>} : vector<256x4xbf16>, vector<4x128xbf16>, vector<256x128xf32> -> vector<256x128xf32>
    %64 = arith.addf %57, %63 : vector<256x128xf32>
    %c0_46 = arith.constant 0 : index
    %c0_47 = arith.constant 0 : index
    %c0_48 = arith.constant 0 : index
    %65 = vector.load %arg3[%c0_46, %c0_47, %c0_48] : memref<1x256x128xf32, #tpu.memory_space<vmem>>, vector<1x256x128xf32>
    %66 = vector.shape_cast %65 : vector<1x256x128xf32> to vector<256x128xf32>
    %67 = vector.shape_cast %64 : vector<256x128xf32> to vector<1x256x128xf32>
    tpu.vector_store %arg3[%c0_46, %c0_47, %c0_48], %67 {strides = array<i32>} : memref<1x256x128xf32, #tpu.memory_space<vmem>>, vector<1x256x128xf32>,
    %cst_49 = arith.constant dense<0.000000e+00> : vector<128xf32>
    %68 = vector.multi_reduction <add>, %64, %cst_49 [0] : vector<256x128xf32> to vector<128xf32>
    %69 = vector.shape_cast %68 : vector<128xf32> to vector<1x128xf32>
    %c0_50 = arith.constant 0 : index
    %c0_51 = arith.constant 0 : index
    %c0_52 = arith.constant 0 : index
    %70 = vector.load %arg4[%c0_50, %c0_51, %c0_52] : memref<1x1x128xf32, #tpu.memory_space<vmem>>, vector<1x1x128xf32>
    %71 = vector.shape_cast %70 : vector<1x1x128xf32> to vector<1x128xf32>
    %72 = vector.shape_cast %69 : vector<1x128xf32> to vector<1x1x128xf32>
    tpu.vector_store %arg4[%c0_50, %c0_51, %c0_52], %72 {strides = array<i32>} : memref<1x1x128xf32, #tpu.memory_space<vmem>>, vector<1x1x128xf32>,
    %73 = arith.mulf %64, %64 : vector<256x128xf32>
    %cst_53 = arith.constant dense<0.000000e+00> : vector<128xf32>
    %74 = vector.multi_reduction <add>, %73, %cst_53 [0] : vector<256x128xf32> to vector<128xf32>
    %75 = vector.shape_cast %74 : vector<128xf32> to vector<1x128xf32>
    %c0_54 = arith.constant 0 : index
    %c0_55 = arith.constant 0 : index
    %c0_56 = arith.constant 0 : index
    %76 = vector.load %arg5[%c0_54, %c0_55, %c0_56] : memref<1x1x128xf32, #tpu.memory_space<vmem>>, vector<1x1x128xf32>
    %77 = vector.shape_cast %76 : vector<1x1x128xf32> to vector<1x128xf32>
    %78 = vector.shape_cast %75 : vector<1x128xf32> to vector<1x1x128xf32>
    tpu.vector_store %arg5[%c0_54, %c0_55, %c0_56], %78 {strides = array<i32>} : memref<1x1x128xf32, #tpu.memory_space<vmem>>, vector<1x1x128xf32>,
    return
  }
  func.func @transform_0(%arg0: i32) -> (i32, i32, i32, i32) {
    %c0_i32 = arith.constant 0 : i32
    %c0_i32_0 = arith.constant 0 : i32
    %c0_i32_1 = arith.constant 0 : i32
    %c0_i32_2 = arith.constant 0 : i32
    return %arg0, %c0_i32, %c0_i32_0, %c0_i32_1 : i32, i32, i32, i32
  }
  func.func @transform_1(%arg0: i32) -> (i32, i32, i32, i32) {
    %c0_i32 = arith.constant 0 : i32
    %c0_i32_0 = arith.constant 0 : i32
    %c0_i32_1 = arith.constant 0 : i32
    %c0_i32_2 = arith.constant 0 : i32
    %c0_i32_3 = arith.constant 0 : i32
    return %c0_i32, %c0_i32_0, %c0_i32_1, %c0_i32_2 : i32, i32, i32, i32
  }
  func.func @transform_2(%arg0: i32) -> (i32, i32, i32) {
    %c0_i32 = arith.constant 0 : i32
    %c0_i32_0 = arith.constant 0 : i32
    %c0_i32_1 = arith.constant 0 : i32
    return %arg0, %c0_i32, %c0_i32_0 : i32, i32, i32
  }
  func.func @transform_3(%arg0: i32) -> (i32, i32, i32) {
    %c0_i32 = arith.constant 0 : i32
    %c0_i32_0 = arith.constant 0 : i32
    %c0_i32_1 = arith.constant 0 : i32
    return %arg0, %c0_i32, %c0_i32_0 : i32, i32, i32
  }
  func.func @transform_4(%arg0: i32) -> (i32, i32, i32) {
    %c0_i32 = arith.constant 0 : i32
    %c0_i32_0 = arith.constant 0 : i32
    %c0_i32_1 = arith.constant 0 : i32
    return %arg0, %c0_i32, %c0_i32_0 : i32, i32, i32
  }
}

</mosaic_0001>

<bundles_post_ra>
// kernel: conv2d_block_forward.3
= control target key start
LH: loop header
LB: loop body
LE: loop exit
PB: predicated region body
PF: predicated region fallthrough
CT: control target
= control target key end

     0   :  { %s453_s12 = smov 0   ;;  %s612_s0 = inlined_call_operand.vmem [shape: f32[512,128], index: 0, kind: input, shape index: {}]   ;;  %s613_s1 = inlined_call_operand.vmem [shape: f32[1,128], index: 1, kind: input, shape index: {}]   ;;  %s614_s2 = inlined_call_operand.vmem [shape: f32[1,128], index: 2, kind: input, shape index: {}]   ;;  %s615_s3 = inlined_call_operand.vmem [shape: f32[512,128], index: 3, kind: output, shape index: {}]  }
   0x1 LB: > { %s404_s13 = sadd.s32 4294967295, %s431_s12   ;;  %p408_p0 = scmp.ge.s32.totalorder %s431_s12, 1  ;;  %s431_s12 = sphi %s453_s12, %s13_s12  }
   0x2   : > { %p138_p1 = scmp.lt.s32.totalorder %s431_s12, 3 }
   0x4   : > { %p139_p2 = pnand %p408_p0, %p138_p1 }
   0x5   : > { %s409_s14 = sshll.u32 (!%p139_p2), %s404_s13, 5 }
   0x6   : > { %142 = sbr.rel (%p139_p2) target bundleno = 44 (0x2c), region = 32  ;;  %p163_p3 = scmp.lt.s32.totalorder (!%p139_p2), %s409_s14, 63 }
   0xb   : > { %s617_s14 = smov (!%p163_p3, %s409_s14), 63  ;;  %v464_v0 = vld [vmem:[%s613_s1] ss:$0 sm:$0xff] }
   0xc   : > { %s410_s15 = sshll.u32 %s617_s14, 3  ;;  %v474_v1 = vld [vmem:[%s614_s2] ss:$0 sm:$0xff] }
   0xd   : > { %s469_s20 = scalar_lea.vmem %s612_s0, %s410_s15  ;;  %s497_s25 = scalar_lea.vmem %s615_s3, %s410_s15 }
   0xe   : > { %v174_v2 = vld [vmem:[%s469_s20] sm:$0xff]  ;;  %v175_v3 = vld [vmem:[%s469_s20 + $0x8] sm:$0xff]  ;;  %v176_v4 = vld [vmem:[%s469_s20 + $0x10] sm:$0xff] }
   0xf   : > { %v213_v5 = vmul.f32 %v464_v0, %v174_v2  ;;  %v214_v6 = vmul.f32 %v464_v0, %v175_v3  ;;  %v215_v7 = vmul.f32 %v464_v0, %v176_v4  ;;  %v177_v8 = vld [vmem:[%s469_s20 + $0x18] sm:$0xff]  ;;  %v178_v9 = vld [vmem:[%s469_s20 + $0x20] sm:$0xff]  ;;  %v179_v10 = vld [vmem:[%s469_s20 + $0x28] sm:$0xff] }
  0x10   : > { %v216_v11 = vmul.f32 %v464_v0, %v177_v8  ;;  %v217_v12 = vmul.f32 %v464_v0, %v178_v9  ;;  %v218_v13 = vmul.f32 %v464_v0, %v179_v10  ;;  %v180_v14 = vld [vmem:[%s469_s20 + $0x30] sm:$0xff]  ;;  %v181_v15 = vld [vmem:[%s469_s20 + $0x38] sm:$0xff]  ;;  %v182_v24 = vld [vmem:[%s469_s20 + $0x40] sm:$0xff] }
  0x11   : > { %v252_v16 = vadd.f32 %v474_v1, %v213_v5  ;;  %v253_v17 = vadd.f32 %v474_v1, %v214_v6  ;;  %v254_v18 = vadd.f32 %v474_v1, %v215_v7  ;;  %v219_v19 = vmul.f32 %v464_v0, %v180_v14  ;;  %v183_v25 = vld [vmem:[%s469_s20 + $0x48] sm:$0xff]  ;;  %v184_v26 = vld [vmem:[%s469_s20 + $0x50] sm:$0xff]  ;;  %v185_v31 = vld [vmem:[%s469_s20 + $0x58] sm:$0xff] }
  0x12   : > { %v255_v20 = vadd.f32 %v474_v1, %v216_v11  ;;  %v256_v21 = vadd.f32 %v474_v1, %v217_v12  ;;  %v257_v22 = vadd.f32 %v474_v1, %v218_v13  ;;  %v220_v23 = vmul.f32 %v464_v0, %v181_v15  ;;  %v186_v32 = vld [vmem:[%s469_s20 + $0x60] sm:$0xff]  ;;  %v187_v33 = vld [vmem:[%s469_s20 + $0x68] sm:$0xff]  ;;  %v188_v38 = vld [vmem:[%s469_s20 + $0x70] sm:$0xff] }
  0x13   : > { %v284_v27 = vmax.f32 %v252_v16, 0.0  ;;  %v285_v28 = vmax.f32 %v253_v17, 0.0  ;;  %v286_v29 = vmax.f32 %v254_v18, 0.0  ;;  %v258_v30 = vadd.f32 %v474_v1, %v219_v19  ;;  %v189_v43 = vld [vmem:[%s469_s20 + $0x78] sm:$0xff]  ;;  %v190_v56 = vld [vmem:[%s469_s20 + $0x80] sm:$0xff]  ;;  %v191_v57 = vld [vmem:[%s469_s20 + $0x88] sm:$0xff] }
  0x14   : > { %v287_v34 = vmax.f32 %v255_v20, 0.0  ;;  %v288_v35 = vmax.f32 %v256_v21, 0.0  ;;  %v289_v36 = vmax.f32 %v257_v22, 0.0  ;;  %v259_v37 = vadd.f32 %v474_v1, %v220_v23  ;;  %v192_v58 = vld [vmem:[%s469_s20 + $0x90] sm:$0xff]  ;;  %v193_v63 = vld [vmem:[%s469_s20 + $0x98] sm:$0xff]  ;;  %v194_v2 = vld [vmem:[%s469_s20 + $0xa0] sm:$0xff] }
  0x15   : > { %316 = vst [vmem:[%s497_s25] sm:$0xff] %v284_v27  ;;  %317 = vst [vmem:[%s497_s25 + $0x8] sm:$0xff] %v285_v28  ;;  %v290_v39 = vmax.f32 %v258_v30, 0.0  ;;  %v221_v40 = vmul.f32 %v464_v0, %v182_v24  ;;  %v222_v41 = vmul.f32 %v464_v0, %v183_v25  ;;  %v223_v42 = vmul.f32 %v464_v0, %v184_v26  ;;  %v195_v3 = vld [vmem:[%s469_s20 + $0xa8] sm:$0xff]  ;;  %v196_v8 = vld [vmem:[%s469_s20 + $0xb0] sm:$0xff] }
  0x16   : > { %318 = vst [vmem:[%s497_s25 + $0x10] sm:$0xff] %v286_v29  ;;  %319 = vst [vmem:[%s497_s25 + $0x18] sm:$0xff] %v287_v34  ;;  %v291_v44 = vmax.f32 %v259_v37, 0.0  ;;  %v224_v45 = vmul.f32 %v464_v0, %v185_v31  ;;  %v225_v46 = vmul.f32 %v464_v0, %v186_v32  ;;  %v226_v47 = vmul.f32 %v464_v0, %v187_v33  ;;  %v197_v13 = vld [vmem:[%s469_s20 + $0xb8] sm:$0xff]  ;;  %v198_v26 = vld [vmem:[%s469_s20 + $0xc0] sm:$0xff] }
  0x17   : > { %320 = vst [vmem:[%s497_s25 + $0x20] sm:$0xff] %v288_v35  ;;  %321 = vst [vmem:[%s497_s25 + $0x28] sm:$0xff] %v289_v36  ;;  %v260_v48 = vadd.f32 %v474_v1, %v221_v40  ;;  %v261_v49 = vadd.f32 %v474_v1, %v222_v41  ;;  %v262_v50 = vadd.f32 %v474_v1, %v223_v42  ;;  %v199_v27 = vld [vmem:[%s469_s20 + $0xc8] sm:$0xff]  ;;  %v200_v28 = vld [vmem:[%s469_s20 + $0xd0] sm:$0xff] }
  0x18   : > { %322 = vst [vmem:[%s497_s25 + $0x30] sm:$0xff] %v290_v39  ;;  %v227_v51 = vmul.f32 %v464_v0, %v188_v38  ;;  %323 = vst [vmem:[%s497_s25 + $0x38] sm:$0xff] %v291_v44  ;;  %v263_v52 = vadd.f32 %v474_v1, %v224_v45  ;;  %v264_v53 = vadd.f32 %v474_v1, %v225_v46  ;;  %v201_v33 = vld [vmem:[%s469_s20 + $0xd8] sm:$0xff]  ;;  %v202_v34 = vld [vmem:[%s469_s20 + $0xe0] sm:$0xff] }
  0x19   : > { %v265_v54 = vadd.f32 %v474_v1, %v226_v47  ;;  %v228_v55 = vmul.f32 %v464_v0, %v189_v43  ;;  %v292_v59 = vmax.f32 %v260_v48, 0.0  ;;  %v293_v60 = vmax.f32 %v261_v49, 0.0  ;;  %v203_v35 = vld [vmem:[%s469_s20 + $0xe8] sm:$0xff]  ;;  %v204_v40 = vld [vmem:[%s469_s20 + $0xf0] sm:$0xff]  ;;  %v205_v45 = vld [vmem:[%s469_s20 + $0xf8] sm:$0xff] }
  0x1a   : > { %v294_v61 = vmax.f32 %v262_v50, 0.0  ;;  %v266_v62 = vadd.f32 %v474_v1, %v227_v51  ;;  %v295_v4 = vmax.f32 %v263_v52, 0.0  ;;  %v296_v5 = vmax.f32 %v264_v53, 0.0 }
  0x1b   : > { %v297_v6 = vmax.f32 %v265_v54, 0.0  ;;  %v267_v7 = vadd.f32 %v474_v1, %v228_v55  ;;  %324 = vst [vmem:[%s497_s25 + $0x40] sm:$0xff] %v292_v59  ;;  %325 = vst [vmem:[%s497_s25 + $0x48] sm:$0xff] %v293_v60  ;;  %v229_v10 = vmul.f32 %v464_v0, %v190_v56  ;;  %v230_v11 = vmul.f32 %v464_v0, %v191_v57 }
  0x1c   : > { %326 = vst [vmem:[%s497_s25 + $0x50] sm:$0xff] %v294_v61  ;;  %v298_v9 = vmax.f32 %v266_v62, 0.0  ;;  %v231_v12 = vmul.f32 %v464_v0, %v192_v58  ;;  %327 = vst [vmem:[%s497_s25 + $0x58] sm:$0xff] %v295_v4  ;;  %v232_v15 = vmul.f32 %v464_v0, %v193_v63  ;;  %v233_v16 = vmul.f32 %v464_v0, %v194_v2 }
  0x1d   : > { %328 = vst [vmem:[%s497_s25 + $0x60] sm:$0xff] %v296_v5  ;;  %329 = vst [vmem:[%s497_s25 + $0x68] sm:$0xff] %v297_v6  ;;  %v299_v14 = vmax.f32 %v267_v7, 0.0  ;;  %v234_v17 = vmul.f32 %v464_v0, %v195_v3  ;;  %v268_v18 = vadd.f32 %v474_v1, %v229_v10  ;;  %v269_v19 = vadd.f32 %v474_v1, %v230_v11 }
  0x1e   : > { %330 = vst [vmem:[%s497_s25 + $0x70] sm:$0xff] %v298_v9  ;;  %v270_v20 = vadd.f32 %v474_v1, %v231_v12  ;;  %v235_v21 = vmul.f32 %v464_v0, %v196_v8  ;;  %v271_v22 = vadd.f32 %v474_v1, %v232_v15  ;;  %v272_v23 = vadd.f32 %v474_v1, %v233_v16 }
  0x1f   : > { %331 = vst [vmem:[%s497_s25 + $0x78] sm:$0xff] %v299_v14  ;;  %v273_v24 = vadd.f32 %v474_v1, %v234_v17  ;;  %v236_v25 = vmul.f32 %v464_v0, %v197_v13  ;;  %v300_v29 = vmax.f32 %v268_v18, 0.0  ;;  %v301_v30 = vmax.f32 %v269_v19, 0.0 }
  0x20   : > { %v302_v31 = vmax.f32 %v270_v20, 0.0  ;;  %v274_v32 = vadd.f32 %v474_v1, %v235_v21  ;;  %v303_v36 = vmax.f32 %v271_v22, 0.0  ;;  %v304_v37 = vmax.f32 %v272_v23, 0.0 }
  0x21   : > { %v305_v38 = vmax.f32 %v273_v24, 0.0  ;;  %v275_v39 = vadd.f32 %v474_v1, %v236_v25  ;;  %332 = vst [vmem:[%s497_s25 + $0x80] sm:$0xff] %v300_v29  ;;  %333 = vst [vmem:[%s497_s25 + $0x88] sm:$0xff] %v301_v30  ;;  %v237_v42 = vmul.f32 %v464_v0, %v198_v26  ;;  %v238_v43 = vmul.f32 %v464_v0, %v199_v27 }
  0x22   : > { %334 = vst [vmem:[%s497_s25 + $0x90] sm:$0xff] %v302_v31  ;;  %v306_v41 = vmax.f32 %v274_v32, 0.0  ;;  %v239_v44 = vmul.f32 %v464_v0, %v200_v28  ;;  %335 = vst [vmem:[%s497_s25 + $0x98] sm:$0xff] %v303_v36  ;;  %v240_v47 = vmul.f32 %v464_v0, %v201_v33  ;;  %v241_v48 = vmul.f32 %v464_v0, %v202_v34 }
  0x23   : > { %336 = vst [vmem:[%s497_s25 + $0xa0] sm:$0xff] %v304_v37  ;;  %337 = vst [vmem:[%s497_s25 + $0xa8] sm:$0xff] %v305_v38  ;;  %v307_v46 = vmax.f32 %v275_v39, 0.0  ;;  %v242_v49 = vmul.f32 %v464_v0, %v203_v35  ;;  %v276_v50 = vadd.f32 %v474_v1, %v237_v42  ;;  %v277_v51 = vadd.f32 %v474_v1, %v238_v43 }
  0x24   : > { %338 = vst [vmem:[%s497_s25 + $0xb0] sm:$0xff] %v306_v41  ;;  %v278_v52 = vadd.f32 %v474_v1, %v239_v44  ;;  %v243_v53 = vmul.f32 %v464_v0, %v204_v40  ;;  %v279_v54 = vadd.f32 %v474_v1, %v240_v47  ;;  %v280_v55 = vadd.f32 %v474_v1, %v241_v48 }
  0x25   : > { %339 = vst [vmem:[%s497_s25 + $0xb8] sm:$0xff] %v307_v46  ;;  %v281_v56 = vadd.f32 %v474_v1, %v242_v49  ;;  %v244_v57 = vmul.f32 %v464_v0, %v205_v45  ;;  %v308_v58 = vmax.f32 %v276_v50, 0.0  ;;  %v309_v59 = vmax.f32 %v277_v51, 0.0 }
  0x26   : > { %v310_v60 = vmax.f32 %v278_v52, 0.0  ;;  %v282_v61 = vadd.f32 %v474_v1, %v243_v53  ;;  %v311_v62 = vmax.f32 %v279_v54, 0.0  ;;  %v312_v63 = vmax.f32 %v280_v55, 0.0 }
  0x27   : > { %v313_v2 = vmax.f32 %v281_v56, 0.0  ;;  %v283_v3 = vadd.f32 %v474_v1, %v244_v57  ;;  %340 = vst [vmem:[%s497_s25 + $0xc0] sm:$0xff] %v308_v58  ;;  %341 = vst [vmem:[%s497_s25 + $0xc8] sm:$0xff] %v309_v59 }
  0x28   : > { %342 = vst [vmem:[%s497_s25 + $0xd0] sm:$0xff] %v310_v60  ;;  %v314_v4 = vmax.f32 %v282_v61, 0.0  ;;  %343 = vst [vmem:[%s497_s25 + $0xd8] sm:$0xff] %v311_v62 }
  0x29   : > { %344 = vst [vmem:[%s497_s25 + $0xe0] sm:$0xff] %v312_v63  ;;  %345 = vst [vmem:[%s497_s25 + $0xe8] sm:$0xff] %v313_v2  ;;  %v315_v0 = vmax.f32 %v283_v3, 0.0 }
  0x2a   : > { %346 = vst [vmem:[%s497_s25 + $0xf0] sm:$0xff] %v314_v4 }
  0x2b   : > { %347 = vst [vmem:[%s497_s25 + $0xf8] sm:$0xff] %v315_v0 }
  0x2c PF: > { %s13_s12 = sadd.s32 1, %s431_s12  }
  0x2d   : > { %p10_p4 = scmp.ge.s32.totalorder %s13_s12, 4  }
  0x2f   :  { %12 = sbr.rel (!%p10_p4) target bundleno = 1 (0x1), region = 62 }

// kernel: conv2d_block_forward.2
= control target key start
LH: loop header
LB: loop body
LE: loop exit
PB: predicated region body
PF: predicated region fallthrough
CT: control target
= control target key end

     0   :  { %s6114_s15 = smov 0   ;;  %s8730_s0 = inlined_call_operand.vmem [shape: bf16[2,18,18,4], index: 0, kind: input, shape index: {}]   ;;  %s8731_s1 = inlined_call_operand.vmem [shape: bf16[3,3,4,128], index: 1, kind: input, shape index: {}]   ;;  %s8732_s2 = inlined_call_operand.vmem [shape: f32[2,256,128], index: 2, kind: output, shape index: {0}]   ;;  %s8733_s3 = inlined_call_operand.vmem [shape: f32[2,1,128], index: 3, kind: output, shape index: {1}]   ;;  %s8734_s4 = inlined_call_operand.vmem [shape: f32[2,1,128], index: 4, kind: output, shape index: {2}]  }
   0x1 LB: > { %s5012_s16 = sadd.s32 4294967295, %s6087_s15   ;;  %p5016_p0 = scmp.ge.s32.totalorder %s6087_s15, 1  ;;  %s6087_s15 = sphi %s6114_s15, %s15_s15  }
   0x2   : > { %p167_p1 = scmp.lt.s32.totalorder %s6087_s15, 3 }
   0x4   : > { %p168_p2 = pnand %p5016_p0, %p167_p1 }
   0x6   : > { %171 = sbr.rel (%p168_p2) target bundleno = 573 (0x23d), region = 28 }
   0xb   : > { %v217_v0 = vld [vmem:[%s8731_s1 + $0x2] sm:$0x3]  ;;  %vm757_vm0 = vcmask 1041408   ;;  %p199_p3 = scmp.lt.s32.totalorder %s5012_s16, 1  ;;  %v216_v2 = vld [vmem:[%s8731_s1] sm:$0x3] }
   0xc   : > { %6013 = vmatprep.subr.msk.bf16.mxu1 %vm757_vm0, %v217_v0  ;;  %6012 = vmatprep.subr.msk.bf16.mxu0 %vm757_vm0, %v217_v0  ;;  %v759_v1 = vsel %vm757_vm0, %v217_v0, 0  ;;  %v218_v3 = vld [vmem:[%s8731_s1 + $0x4] sm:$0x3]  ;;  %vm273_vm1 = vsmask.f32 3328  ;;  %v6145_v4 = vsel %vm757_vm0, %v216_v2, 0 }
   0xd   : > { %6011 = vmatpush3.bf16.msra.mxu1 %v759_v1  ;;  %5705 = vmatpush3.bf16.msra.mxu0 %v759_v1  ;;  %s9010_s16 = smov (!%p199_p3, %s5012_s16), 1  ;;  %vm274_vm2 = vsmask.f32 7440  ;;  %vm708_vm3 = vcmask 31744   ;;  %v6171_v16 = vsel %vm757_vm0, %v218_v3, 0  ;;  %vm1262_vm5 = vcmask 1042432  }
   0xe   : > { %6014 = vmatprep.subr.msk.bf16.mxu1 %vm757_vm0, %v216_v2  ;;  %6015 = vmatprep.subr.msk.bf16.mxu0 %vm757_vm0, %v218_v3  ;;  %s6022_s23 = smul.u32 216, %s9010_s16  ;;  %vm6186_vm4 = vmor %vm273_vm1, %vm274_vm2  ;;  %vm1263_vm6 = vcmask 1046532   ;;  %s5550_s13 = sshll.u32 %s9010_s16, 8 }
   0xf   : > { %vm6472_vm7 = vmor %vm1262_vm5, %vm1263_vm6  ;;  %s8599_s18 = scalar_lea.vmem %s8732_s2, %s5550_s13  ;;  %s211_s21 = scalar_lea.vmem %s8733_s3, %s9010_s16 }
  0x10   : > { %s6142_s26 = scalar_lea.vmem %s8730_s0, %s6022_s23  ;;  %s214_s24 = scalar_lea.vmem %s8734_s4, %s9010_s16 }
  0x11   : > { %v6148_v5 = vld [vmem:[%s6142_s26] sm:$0xf]  ;;  %v6151_v6 = vld [vmem:[%s6142_s26 + $0x4] sm:$0xf]  ;;  %v6154_v7 = vld [vmem:[%s6142_s26 + $0x8] sm:$0x1] }
  0x12   : > { %v277_v8 = vshrl.u32 %v6148_v5, 16  ;;  %v280_v9 = vshll.u32 %v6148_v5, 16  ;;  %v286_v10 = vshll.u32 %v6151_v6, 16  ;;  %v290_v11 = vshrl.u32 %v6151_v6, 16  ;;  %v6161_v12 = vld [vmem:[%s6142_s26 + $0x60] sm:$0xf] }
  0x13   : > { %v296_v13 = vshll.u32 %v6154_v7, 16  ;;  %v6165_v14 = vld [vmem:[%s6142_s26 + $0x64] sm:$0xf]  ;;  %v6168_v15 = vld [vmem:[%s6142_s26 + $0x68] sm:$0x1]  ;;  %v469_v22 = vshrl.u32 %v6161_v12, 16 }
  0x14   : > { %v279_v17 = vrot.slane %v277_v8, 4  ;;  %v282_v18 = vrot.slane %v280_v9, 5  ;;  %v288_v19 = vrot.slane %v286_v10, 5  ;;  %v292_v20 = vrot.slane %v290_v11, 4  ;;  %v6179_v29 = vld [vmem:[%s6142_s26 + $0xc] sm:$0xf] }
  0x15   : > { %v298_v21 = vrot.slane %v296_v13, 5  ;;  %v472_v23 = vshll.u32 %v6161_v12, 16  ;;  %v478_v24 = vshll.u32 %v6165_v14, 16  ;;  %v482_v27 = vshrl.u32 %v6165_v14, 16  ;;  %v6182_v30 = vld [vmem:[%s6142_s26 + $0x10] sm:$0xf] }
  0x16   : > { %v283_v25 = vor.u32 %v282_v18, %v279_v17  ;;  %v293_v26 = vor.u32 %v292_v20, %v288_v19  ;;  %v488_v28 = vshll.u32 %v6168_v15, 16  ;;  %v471_v33 = vrot.slane %v469_v22, 4  ;;  %v6192_v41 = vld [vmem:[%s6142_s26 + $0x14] sm:$0x1]  ;;  %v6203_v53 = vld [vmem:[%s6142_s26 + $0x6c] sm:$0xf] }
  0x17   : > { %v474_v34 = vrot.slane %v472_v23, 5  ;;  %v480_v35 = vrot.slane %v478_v24, 5  ;;  %v484_v38 = vrot.slane %v482_v27, 4  ;;  %v301_v42 = vshrl.u32 %v6179_v29, 16  ;;  %v6207_v58 = vld [vmem:[%s6142_s26 + $0x70] sm:$0xf] }
  0x18   : > { %v284_v36 = vrot.slane %v283_v25, 4  ;;  %v294_v37 = vrot.slane %v293_v26, 4  ;;  %v490_v39 = vrot.slane %v488_v28, 5  ;;  %v304_v43 = vshll.u32 %v6179_v29, 16  ;;  %v6215_v63 = vld [vmem:[%s6142_s26 + $0x74] sm:$0x1] }
  0x19   : > { %v475_v40 = vor.u32 %v474_v34, %v471_v33  ;;  %v310_v44 = vshll.u32 %v6182_v30, 16  ;;  %v485_v47 = vor.u32 %v484_v38, %v480_v35  ;;  %v314_v48 = vshrl.u32 %v6182_v30, 16  ;;  %v6221_v8 = vld [vmem:[%s6142_s26 + $0x18] sm:$0xf]  ;;  %v6234_v25 = vld [vmem:[%s6142_s26 + $0x20] sm:$0x1] }
  0x1a   : > { %v289_v45 = vsel %vm6186_vm4, %v284_v36, %v288_v19  ;;  %v299_v46 = vsel %vm6186_vm4, %v294_v37, %v298_v21  ;;  %v303_v51 = vrot.slane %v301_v42, 4  ;;  %v306_v52 = vrot.slane %v304_v43, 5  ;;  %v6228_v21 = vld [vmem:[%s6142_s26 + $0x1c] sm:$0xf] }
  0x1b   : > { %v5020_v49 = vcombine.low %v289_v45, %v299_v46  ;;  %v476_v50 = vrot.slane %v475_v40, 4  ;;  %v486_v54 = vrot.slane %v485_v47, 4  ;;  %v312_v55 = vrot.slane %v310_v44, 5  ;;  %v6247_v40 = vld [vmem:[%s8731_s1 + $0x8] sm:$0x3] }
  0x1c   : > { %v316_v56 = vrot.slane %v314_v48, 4  ;;  %v320_v57 = vshll.u32 %v6192_v41, 16  ;;  %v307_v60 = vor.u32 %v306_v52, %v303_v51  ;;  %v493_v3 = vshrl.u32 %v6203_v53, 16  ;;  %v6252_v46 = vld [vmem:[%s6142_s26 + $0x7c] sm:$0xf] }
  0x1d   : > { %5706 = vmatprep.mubr.msk.bf16.mxu0 %vm708_vm3, %v5020_v49  ;;  %v481_v59 = vsel %vm6186_vm4, %v476_v50, %v480_v35  ;;  %v491_v0 = vsel %vm6186_vm4, %v486_v54, %v490_v39  ;;  %v496_v11 = vshll.u32 %v6203_v53, 16  ;;  %v502_v13 = vshll.u32 %v6207_v58, 16  ;;  %v6241_v35 = vld [vmem:[%s6142_s26 + $0x78] sm:$0xf] }
  0x1e   : > { %v317_v1 = vor.u32 %v316_v56, %v312_v55  ;;  %v322_v2 = vrot.slane %v320_v57, 5  ;;  %v5028_v9 = vcombine.low %v481_v59, %v491_v0  ;;  %v308_v10 = vrot.slane %v307_v60, 4  ;;  %v6259_v56 = vld [vmem:[%s6142_s26 + $0x80] sm:$0x1] }
  0x1f   : > { %v495_v18 = vrot.slane %v493_v3, 4  ;;  %v506_v19 = vshrl.u32 %v6207_v58, 16  ;;  %v512_v20 = vshll.u32 %v6215_v63, 16  ;;  %v498_v23 = vrot.slane %v496_v11, 5  ;;  %8770 = vst [vmem:[#allocation2_spill] sm:$0xff] %v6259_v56 }
  0x20   : > { %v318_v17 = vrot.slane %v317_v1, 4  ;;  %5722 = vmatprep.mubr.msk.bf16.mxu1 %vm708_vm3, %v5028_v9  ;;  %v313_v22 = vsel %vm6186_vm4, %v308_v10, %v312_v55  ;;  %v504_v24 = vrot.slane %v502_v13, 5  ;;  %v325_v26 = vshrl.u32 %v6221_v8, 16  ;;  %v6265_v1 = vld [vmem:[%s6142_s26 + $0x24] sm:$0xf] }
  0x21   : > { %v508_v28 = vrot.slane %v506_v19, 4  ;;  %v514_v33 = vrot.slane %v512_v20, 5  ;;  %v328_v34 = vshll.u32 %v6221_v8, 16  ;;  %v499_v37 = vor.u32 %v498_v23, %v495_v18  ;;  %v6273_v10 = vld [vmem:[%s6142_s26 + $0x28] sm:$0xf] }
  0x22   : > { %v323_v27 = vsel %vm6186_vm4, %v318_v17, %v322_v2  ;;  %v327_v38 = vrot.slane %v325_v26, 4  ;;  %v334_v39 = vshll.u32 %v6228_v21, 16  ;;  %v338_v44 = vshrl.u32 %v6228_v21, 16  ;;  %v6279_v19 = vld [vmem:[%s8731_s1 + $0x6] sm:$0x3] }
  0x23   : > { %v5021_v36 = vcombine.low %v313_v22, %v323_v27  ;;  %v509_v42 = vor.u32 %v508_v28, %v504_v24  ;;  %v330_v43 = vrot.slane %v328_v34, 5  ;;  %v344_v45 = vshll.u32 %v6234_v25, 16 }
  0x24   : > { %v500_v47 = vrot.slane %v499_v37, 4  ;;  %v336_v48 = vrot.slane %v334_v39, 5  ;;  %v517_v49 = vshrl.u32 %v6241_v35, 16  ;;  %v520_v50 = vshll.u32 %v6241_v35, 16 }
  0x25   : > { %5707 = vmatmul.mubr.msk.bf16.vlgmr.msra.gmra.mxu0 %vm708_vm3, %v5021_v36  ;;  %v510_v51 = vrot.slane %v509_v42, 4  ;;  %v331_v52 = vor.u32 %v330_v43, %v327_v38  ;;  %v340_v54 = vrot.slane %v338_v44, 4  ;;  %v346_v55 = vrot.slane %v344_v45, 5  ;;  %v6291_v36 = vld [vmem:[%s6142_s26 + $0x84] sm:$0xf] }
  0x26   : > { %5773 = vmatpush3.bf16.msra.mxu0 %v6171_v16  ;;  %v505_v57 = vsel %vm6186_vm4, %v500_v47, %v504_v24  ;;  %v519_v59 = vrot.slane %v517_v49, 4  ;;  %v522_v60 = vrot.slane %v520_v50, 5  ;;  %v526_v0 = vshll.u32 %v6252_v46, 16  ;;  %v6284_v24 = vld [vmem:[%s6142_s26 + $0x2c] sm:$0x1] }
  0x27   : > { %6017 = vmatprep.subr.msk.bf16.mxu0 %vm757_vm0, %v6247_v40  ;;  %v515_v16 = vsel %vm6186_vm4, %v510_v51, %v514_v33  ;;  %v332_v2 = vrot.slane %v331_v52, 4  ;;  %v341_v3 = vor.u32 %v340_v54, %v336_v48  ;;  %v530_v9 = vshrl.u32 %v6252_v46, 16  ;;  %v6298_v43 = vld [vmem:[%s6142_s26 + $0x88] sm:$0xf]  ;;  %v6306_v51 = vld [vmem:[%s6142_s26 + $0x8c] sm:$0x1] }
  0x28   : > { %v5029_v11 = vcombine.low %v505_v57, %v515_v16  ;;  %v523_v13 = vor.u32 %v522_v60, %v519_v59  ;;  %v528_v17 = vrot.slane %v526_v0, 5  ;;  %v536_v18 = vshll.u32 %v6259_v56, 16  ;;  %8771 = vst [vmem:[#allocation3_spill] sm:$0xff] %v6306_v51  ;;  %v6314_v60 = vld [vmem:[%s6142_s26 + $0x30] sm:$0xf] }
  0x29   : > { %v337_v20 = vsel %vm6186_vm4, %v332_v2, %v336_v48  ;;  %v342_v22 = vrot.slane %v341_v3, 4  ;;  %v532_v23 = vrot.slane %v530_v9, 4  ;;  %v349_v26 = vshrl.u32 %v6265_v1, 16  ;;  %v6319_v9 = vld [vmem:[%s6142_s26 + $0x34] sm:$0xf] }
  0x2a   : > { %5723 = vmatmul.mubr.msk.bf16.vlgmr.msra.gmra.mxu1 %vm708_vm3, %v5029_v11  ;;  %v524_v27 = vrot.slane %v523_v13, 4  ;;  %v538_v28 = vrot.slane %v536_v18, 5  ;;  %v352_v33 = vshll.u32 %v6265_v1, 16  ;;  %v358_v34 = vshll.u32 %v6273_v10, 16 }
  0x2b   : > { %5739 = vmatpush3.bf16.msra.mxu1 %v6145_v4  ;;  %v347_v37 = vsel %vm6186_vm4, %v342_v22, %v346_v55  ;;  %v533_v38 = vor.u32 %v532_v23, %v528_v17  ;;  %v351_v39 = vrot.slane %v349_v26, 4  ;;  %v362_v42 = vshrl.u32 %v6273_v10, 16 }
  0x2c   : > { %v5022_v44 = vcombine.low %v337_v20, %v347_v37  ;;  %v529_v45 = vsel %vm6186_vm4, %v524_v27, %v528_v17  ;;  %v354_v47 = vrot.slane %v352_v33, 5  ;;  %v360_v48 = vrot.slane %v358_v34, 5  ;;  %6016 = vmatprep.subr.msk.bf16.mxu1 %vm757_vm0, %v6279_v19  ;;  %v6327_v33 = vld [vmem:[%s6142_s26 + $0x38] sm:$0x1] }
  0x2d   : > { %v534_v4 = vrot.slane %v533_v38, 4  ;;  %v364_v49 = vrot.slane %v362_v42, 4  ;;  %v368_v50 = vshll.u32 %v6284_v24, 16  ;;  %v541_v52 = vshrl.u32 %v6291_v36, 16  ;;  %v6332_v38 = vld [vmem:[%s6142_s26 + $0x90] sm:$0xf] }
  0x2e   : > { %5710 = vmatprep.mubr.msk.bf16.mxu0 %vm708_vm3, %v5022_v44  ;;  %v355_v54 = vor.u32 %v354_v47, %v351_v39  ;;  %v544_v55 = vshll.u32 %v6291_v36, 16  ;;  %v550_v57 = vshll.u32 %v6298_v43, 16  ;;  %v554_v59 = vshrl.u32 %v6298_v43, 16  ;;  %8772 = vst [vmem:[#allocation4_spill] sm:$0xff] %v6332_v38  ;;  %v6337_v47 = vld [vmem:[%s6142_s26 + $0x94] sm:$0xf] }
  0x2f   : > { %v539_v0 = vsel %vm6186_vm4, %v534_v4, %v538_v28  ;;  %v365_v16 = vor.u32 %v364_v49, %v360_v48  ;;  %v370_v2 = vrot.slane %v368_v50, 5  ;;  %v543_v3 = vrot.slane %v541_v52, 4  ;;  %8773 = vst [vmem:[#allocation5_spill] sm:$0xff] %v6337_v47 }
  0x30   : > { %v5030_v11 = vcombine.low %v529_v45, %v539_v0  ;;  %v356_v13 = vrot.slane %v355_v54, 4  ;;  %v546_v17 = vrot.slane %v544_v55, 5  ;;  %v552_v18 = vrot.slane %v550_v57, 5 }
  0x31   : > { %v366_v20 = vrot.slane %v365_v16, 4  ;;  %v556_v22 = vrot.slane %v554_v59, 4  ;;  %v560_v23 = vshll.u32 %v6306_v51, 16  ;;  %v373_v26 = vshrl.u32 %v6314_v60, 16  ;;  %v6346_v16 = vld [vmem:[%s6142_s26 + $0x98] sm:$0x1] }
  0x32   : > { %5726 = vmatprep.mubr.msk.bf16.mxu1 %vm708_vm3, %v5030_v11  ;;  %v361_v27 = vsel %vm6186_vm4, %v356_v13, %v360_v48  ;;  %v547_v28 = vor.u32 %v546_v17, %v543_v3  ;;  %v376_v34 = vshll.u32 %v6314_v60, 16  ;;  %v382_v37 = vshll.u32 %v6319_v9, 16  ;;  %8774 = vst [vmem:[#allocation6_spill] sm:$0xff] %v6346_v16  ;;  %v6351_v11 = vld [vmem:[%s6142_s26 + $0x3c] sm:$0xf] }
  0x33   : > { %v371_v39 = vsel %vm6186_vm4, %v366_v20, %v370_v2  ;;  %v557_v42 = vor.u32 %v556_v22, %v552_v18  ;;  %v562_v44 = vrot.slane %v560_v23, 5  ;;  %v375_v45 = vrot.slane %v373_v26, 4  ;;  %v6356_v23 = vld [vmem:[%s6142_s26 + $0x40] sm:$0xf]  ;;  %v1215_v51 = vld [vmem:[%s6142_s26 + $0xc] sm:$0xe] }
  0x34   : > { %v5023_v48 = vcombine.low %v361_v27, %v371_v39  ;;  %v548_v4 = vrot.slane %v547_v28, 4  ;;  %v378_v49 = vrot.slane %v376_v34, 5  ;;  %v384_v50 = vrot.slane %v382_v37, 5 }
  0x35   : > { %v558_v52 = vrot.slane %v557_v42, 4  ;;  %v386_v54 = vshrl.u32 %v6319_v9, 16  ;;  %v392_v55 = vshll.u32 %v6327_v33, 16  ;;  %v565_v57 = vshrl.u32 %v6332_v38, 16 }
  0x36   : > { %5711 = vmatmul.mubr.msk.bf16.gmra.mxu0 %vm708_vm3, %v5023_v48  ;;  %v553_v59 = vsel %vm6186_vm4, %v548_v4, %v552_v18  ;;  %v379_v0 = vor.u32 %v378_v49, %v375_v45  ;;  %v568_v2 = vshll.u32 %v6332_v38, 16  ;;  %v574_v3 = vshll.u32 %v6337_v47, 16  ;;  %v6365_v48 = vld [vmem:[%s6142_s26 + $0x44] sm:$0x1] }
  0x37   : > { %v563_v13 = vsel %vm6186_vm4, %v558_v52, %v562_v44  ;;  %v388_v17 = vrot.slane %v386_v54, 4  ;;  %v394_v20 = vrot.slane %v392_v55, 5  ;;  %v567_v22 = vrot.slane %v565_v57, 4  ;;  %v6370_v52 = vld [vmem:[%s6142_s26 + $0x9c] sm:$0xf] }
  0x38   : > { %v5031_v18 = vcombine.low %v553_v59, %v563_v13  ;;  %v380_v26 = vrot.slane %v379_v0, 4  ;;  %v570_v27 = vrot.slane %v568_v2, 5  ;;  %v576_v28 = vrot.slane %v574_v3, 5  ;;  %8775 = vst [vmem:[#allocation7_spill] sm:$0xff] %v6370_v52  ;;  %v6374_v13 = vld [vmem:[%s6142_s26 + $0xa0] sm:$0xf] }
  0x39   : > { %v389_v34 = vor.u32 %v388_v17, %v384_v50  ;;  %v578_v37 = vshrl.u32 %v6337_v47, 16  ;;  %v584_v39 = vshll.u32 %v6346_v16, 16  ;;  %v397_v42 = vshrl.u32 %v6351_v11, 16  ;;  %8776 = vst [vmem:[#allocation8_spill] sm:$0xff] %v6374_v13 }
  0x3a   : > { %5727 = vmatmul.mubr.msk.bf16.gmra.mxu1 %vm708_vm3, %v5031_v18  ;;  %v385_v44 = vsel %vm6186_vm4, %v380_v26, %v384_v50  ;;  %v571_v45 = vor.u32 %v570_v27, %v567_v22  ;;  %v400_v4 = vshll.u32 %v6351_v11, 16  ;;  %v406_v49 = vshll.u32 %v6356_v23, 16  ;;  %v6380_v26 = vld [vmem:[%s6142_s26 + $0xa4] sm:$0x1] }
  0x3b   : > { %v390_v54 = vrot.slane %v389_v34, 4  ;;  %v580_v55 = vrot.slane %v578_v37, 4  ;;  %v586_v57 = vrot.slane %v584_v39, 5  ;;  %v399_v59 = vrot.slane %v397_v42, 4  ;;  %8777 = vst [vmem:[#allocation9_spill] sm:$0xff] %v6380_v26 }
  0x3c   : > { %v572_v0 = vrot.slane %v571_v45, 4  ;;  %v402_v2 = vrot.slane %v400_v4, 5  ;;  %v408_v3 = vrot.slane %v406_v49, 5  ;;  %v410_v50 = vshrl.u32 %v6356_v23, 16  ;;  %v6384_v34 = vld [vmem:[%s6142_s26 + $0x48] sm:$0xf] }
  0x3d   : > { %v395_v17 = vsel %vm6186_vm4, %v390_v54, %v394_v20  ;;  %v581_v22 = vor.u32 %v580_v55, %v576_v28  ;;  %v416_v18 = vshll.u32 %v6365_v48, 16  ;;  %v589_v27 = vshrl.u32 %v6370_v52, 16 }
  0x3e   : > { %v5024_v37 = vcombine.low %v385_v44, %v395_v17  ;;  %v577_v39 = vsel %vm6186_vm4, %v572_v0, %v576_v28  ;;  %v403_v42 = vor.u32 %v402_v2, %v399_v59  ;;  %v412_v45 = vrot.slane %v410_v50, 4  ;;  %v6393_v17 = vld [vmem:[%s6142_s26 + $0x4c] sm:$0xf]  ;;  %v6399_v2 = vld [vmem:[%s6142_s26 + $0x50] sm:$0x1] }
  0x3f   : > { %v582_v4 = vrot.slane %v581_v22, 4  ;;  %v418_v49 = vrot.slane %v416_v18, 5  ;;  %v591_v20 = vrot.slane %v589_v27, 4  ;;  %v592_v54 = vshll.u32 %v6370_v52, 16 }
  0x40   : > { %5714 = vmatprep.mubr.msk.bf16.mxu0 %vm708_vm3, %v5024_v37  ;;  %v404_v55 = vrot.slane %v403_v42, 4  ;;  %v413_v62 = vor.u32 %v412_v45, %v408_v3  ;;  %v598_v32 = vshll.u32 %v6374_v13, 16  ;;  %v602_v44 = vshrl.u32 %v6374_v13, 16  ;;  %v6405_v42 = vld [vmem:[%s6142_s26 + $0xa8] sm:$0xf] }
  0x41   : > { %v587_v28 = vsel %vm6186_vm4, %v582_v4, %v586_v57  ;;  %v594_v59 = vrot.slane %v592_v54, 5  ;;  %v608_v0 = vshll.u32 %v6380_v26, 16  ;;  %v421_v50 = vshrl.u32 %v6384_v34, 16  ;;  %8778 = vst [vmem:[#allocation10_spill] sm:$0xff] %v6405_v42 }
  0x42   : > { %v5032_v22 = vcombine.low %v577_v39, %v587_v28  ;;  %v409_v18 = vsel %vm6186_vm4, %v404_v55, %v408_v3  ;;  %v414_v27 = vrot.slane %v413_v62, 4  ;;  %v600_v37 = vrot.slane %v598_v32, 5 }
  0x43   : > { %v595_v45 = vor.u32 %v594_v59, %v591_v20  ;;  %v604_v61 = vrot.slane %v602_v44, 4  ;;  %v610_v57 = vrot.slane %v608_v0, 5  ;;  %v423_v4 = vrot.slane %v421_v50, 4  ;;  %v6415_v44 = vld [vmem:[%s6142_s26 + $0xac] sm:$0xf] }
  0x44   : > { %5730 = vmatprep.mubr.msk.bf16.mxu1 %vm708_vm3, %v5032_v22  ;;  %v419_v54 = vsel %vm6186_vm4, %v414_v27, %v418_v49  ;;  %v424_v39 = vshll.u32 %v6384_v34, 16  ;;  %v430_v28 = vshll.u32 %v6393_v17, 16  ;;  %v434_v62 = vshrl.u32 %v6393_v17, 16  ;;  %8779 = vst [vmem:[#allocation11_spill] sm:$0xff] %v6415_v44  ;;  %v6418_v22 = vld [vmem:[%s6142_s26 + $0xb0] sm:$0x1] }
  0x45   : > { %v5025_v3 = vcombine.low %v409_v18, %v419_v54  ;;  %v596_v32 = vrot.slane %v595_v45, 4  ;;  %v605_v55 = vor.u32 %v604_v61, %v600_v37  ;;  %v440_v20 = vshll.u32 %v6399_v2, 16  ;;  %8780 = vst [vmem:[#allocation12_spill] sm:$0xff] %v6418_v22 }
  0x46   : > { %v426_v59 = vrot.slane %v424_v39, 5  ;;  %v432_v0 = vrot.slane %v430_v28, 5  ;;  %v436_v50 = vrot.slane %v434_v62, 4  ;;  %v613_v49 = vshrl.u32 %v6405_v42, 16  ;;  %v6427_v62 = vld [vmem:[%s6142_s26 + $0x54] sm:$0xf] }
  0x47   : > { %5715 = vmatmul.mubr.msk.bf16.gmra.mxu0 %vm708_vm3, %v5025_v3  ;;  %v601_v18 = vsel %vm6186_vm4, %v596_v32, %v600_v37  ;;  %v606_v27 = vrot.slane %v605_v55, 4  ;;  %v442_v61 = vrot.slane %v440_v20, 5  ;;  %v616_v45 = vshll.u32 %v6405_v42, 16  ;;  %v6434_v55 = vld [vmem:[%s6142_s26 + $0x58] sm:$0xf] }
  0x48   : > { %v427_v54 = vor.u32 %v426_v59, %v423_v4  ;;  %v437_v56 = vor.u32 %v436_v50, %v432_v0  ;;  %v615_v39 = vrot.slane %v613_v49, 4  ;;  %v622_v28 = vshll.u32 %v6415_v44, 16  ;;  %v6437_v49 = vld [vmem:[%s6142_s26 + $0x5c] sm:$0x1] }
  0x49   : > { %v611_v3 = vsel %vm6186_vm4, %v606_v27, %v610_v57  ;;  %v618_v26 = vrot.slane %v616_v45, 5  ;;  %v626_v37 = vshrl.u32 %v6415_v44, 16  ;;  %v632_v32 = vshll.u32 %v6418_v22, 16  ;;  %v1214_v22 = vld [vmem:[%s6142_s26] sm:$0xe] }
  0x4a   : > { %v5033_v4 = vcombine.low %v601_v18, %v611_v3  ;;  %v428_v20 = vrot.slane %v427_v54, 4  ;;  %v438_v59 = vrot.slane %v437_v56, 4  ;;  %v624_v50 = vrot.slane %v622_v28, 5  ;;  %v6448_v54 = vld [vmem:[%s6142_s26 + $0xb4] sm:$0xf] }
  0x4b   : > { %v619_v42 = vor.u32 %v618_v26, %v615_v39  ;;  %v628_v52 = vrot.slane %v626_v37, 4  ;;  %v634_v13 = vrot.slane %v632_v32, 5  ;;  %v445_v57 = vshrl.u32 %v6427_v62, 16  ;;  %8781 = vst [vmem:[#allocation13_spill] sm:$0xff] %v6448_v54  ;;  %v6451_v37 = vld [vmem:[%s6142_s26 + $0xb8] sm:$0xf] }
  0x4c   : > { %5731 = vmatmul.mubr.msk.bf16.gmra.mxu1 %vm708_vm3, %v5033_v4  ;;  %v433_v27 = vsel %vm6186_vm4, %v428_v20, %v432_v0  ;;  %v443_v18 = vsel %vm6186_vm4, %v438_v59, %v442_v61  ;;  %v448_v56 = vshll.u32 %v6427_v62, 16  ;;  %v454_v45 = vshll.u32 %v6434_v55, 16  ;;  %v6456_v61 = vld [vmem:[%s6142_s26 + $0xbc] sm:$0x1] }
  0x4d   : > { %v5026_v26 = vcombine.low %v433_v27, %v443_v18  ;;  %v620_v39 = vrot.slane %v619_v42, 4  ;;  %v629_v28 = vor.u32 %v628_v52, %v624_v50  ;;  %v447_v3 = vrot.slane %v445_v57, 4 }
  0x4e   : > { %v450_v32 = vrot.slane %v448_v56, 5  ;;  %v456_v4 = vrot.slane %v454_v45, 5  ;;  %v458_v0 = vshrl.u32 %v6434_v55, 16  ;;  %v464_v20 = vshll.u32 %v6437_v49, 16 }
  0x4f   : > { %5718 = vmatprep.mubr.msk.bf16.mxu0 %vm708_vm3, %v5026_v26  ;;  %v625_v59 = vsel %vm6186_vm4, %v620_v39, %v624_v50  ;;  %v630_v27 = vrot.slane %v629_v28, 4  ;;  %v637_v52 = vshrl.u32 %v6448_v54, 16  ;;  %v640_v42 = vshll.u32 %v6448_v54, 16 }
  0x50   : > { %v451_v57 = vor.u32 %v450_v32, %v447_v3  ;;  %v460_v18 = vrot.slane %v458_v0, 4  ;;  %v466_v56 = vrot.slane %v464_v20, 5  ;;  %v646_v45 = vshll.u32 %v6451_v37, 16 }
  0x51   : > { %v635_v44 = vsel %vm6186_vm4, %v630_v27, %v634_v13  ;;  %v639_v16 = vrot.slane %v637_v52, 4  ;;  %v642_v26 = vrot.slane %v640_v42, 5  ;;  %v650_v38 = vshrl.u32 %v6451_v37, 16 }
  0x52   : > { %v5034_v50 = vcombine.low %v625_v59, %v635_v44  ;;  %v452_v39 = vrot.slane %v451_v57, 4  ;;  %v461_v28 = vor.u32 %v460_v18, %v456_v4  ;;  %v648_v47 = vrot.slane %v646_v45, 5  ;;  %v1216_v57 = vld [vmem:[%s6142_s26 + $0x18] sm:$0xe] }
  0x53   : > { %v643_v54 = vor.u32 %v642_v26, %v639_v16  ;;  %v652_v3 = vrot.slane %v650_v38, 4  ;;  %v656_v32 = vshll.u32 %v6456_v61, 16  ;;  %v5084_v13 = vrot.slane %v1214_v22, 9 }
  0x54   : > { %5734 = vmatprep.mubr.msk.bf16.mxu1 %vm708_vm3, %v5034_v50  ;;  %v457_v44 = vsel %vm6186_vm4, %v452_v39, %v456_v4  ;;  %v462_v20 = vrot.slane %v461_v28, 4  ;;  %v1267_v59 = vrot.slane %v6151_v6, 5  ;;  %v5053_v38 = vcombine.low %v6179_v29, %v6182_v30 }
  0x55   : > { %v644_v16 = vrot.slane %v643_v54, 4  ;;  %v653_v27 = vor.u32 %v652_v3, %v648_v47  ;;  %v658_v52 = vrot.slane %v656_v32, 5  ;;  %v5085_v42 = vrot.slane %v1215_v51, 9 }
  0x56   : > { %v467_v18 = vsel %vm6186_vm4, %v462_v20, %v466_v56  ;;  %v1268_v22 = vsel %vm6472_vm7, %v5084_v13, %v1267_v59  ;;  %v1269_v45 = vrot.slane %v1267_v59, 4  ;;  %v8784_v4 = vrot.slane %v6182_v30, 5 }
  0x57   : > { %v5027_v50 = vcombine.low %v457_v44, %v467_v18  ;;  %v649_v54 = vsel %vm6186_vm4, %v644_v16, %v648_v47  ;;  %v654_v39 = vrot.slane %v653_v27, 4  ;;  %v5052_v51 = vcombine.low %v6148_v5, %v6151_v6  ;;  %v1217_v27 = vld [vmem:[%s6142_s26 + $0x24] sm:$0xe] }
  0x58   : > { %v1276_v26 = vrot.slane %v8784_v4, 4  ;;  %v8785_v28 = vrot.slane %v6154_v7, 5  ;;  %v8786_v3 = vmov %v8784_v4  ;;  %v5054_v13 = vcombine.low %v6221_v8, %v6228_v21  ;;  %v1219_v4 = vld [vmem:[%s6142_s26 + $0x3c] sm:$0xe] }
  0x59   : > { %v1275_v32 = vsel %vm6472_vm7, %v5085_v42, %v8786_v3  ;;  %v5086_v44 = vrot.slane %v1216_v57, 9  ;;  %5719 = vmatmul.mubr.msk.bf16.gmra.mxu0 %vm708_vm3, %v5027_v50  ;;  %v659_v47 = vsel %vm6186_vm4, %v654_v39, %v658_v52  ;;  %v8787_v6 = vrot.slane %v6192_v41, 5  ;;  %v1218_v42 = vld [vmem:[%s6142_s26 + $0x30] sm:$0xe]  ;;  %v1220_v39 = vld [vmem:[%s6142_s26 + $0x48] sm:$0xe] }
  0x5a   : > { %v1271_v56 = vsel %vm6472_vm7, %v1269_v45, %v8785_v28  ;;  %v1281_v20 = vrot.slane %v6228_v21, 5  ;;  %v5035_v59 = vcombine.low %v649_v54, %v659_v47  ;;  %v1284_v16 = vrot.slane %v6234_v25, 5  ;;  %v1221_v47 = vld [vmem:[%s6142_s26 + $0x54] sm:$0xe]  ;;  %v6767_v21 = vld [vmem:[%s6142_s26 + $0x2c] sm:$0x1] }
  0x5b   : > { %v5100_v5 = vcombine.low %v1268_v22, %v1271_v56  ;;  %v1278_v7 = vsel %vm6472_vm7, %v1276_v26, %v8787_v6  ;;  %v1831_v52 = vsel %vm757_vm0, %v6279_v19, 0  ;;  %v1288_v18 = vrot.slane %v6273_v10, 5 }
  0x5c   : > { %v1282_v41 = vsel %vm6472_vm7, %v5086_v44, %v1281_v20  ;;  %v1283_v57 = vrot.slane %v1281_v20, 4  ;;  %5735 = vmatmul.mubr.msk.bf16.gmra.mxu1 %vm708_vm3, %v5035_v59  ;;  %v5101_v22 = vcombine.low %v1275_v32, %v1278_v7  ;;  %v2555_v25 = vsel %vm757_vm0, %v6247_v40, 0 }
  0x5d   : > { %5774 = vmatprep.mubr.msk.bf16.mxu0 %vm708_vm3, %v5100_v5  ;;  %v1295_v45 = vrot.slane %v6319_v9, 5  ;;  %5740 = vmatprep.mubr.msk.bf16.mxu1 %vm708_vm3, %v5052_v51  ;;  %v5087_v26 = vrot.slane %v1217_v27, 9  ;;  %v1291_v50 = vrot.slane %v6284_v24, 5  ;;  %v5088_v54 = vrot.slane %v1218_v42, 9  ;;  %v6539_v24 = vld [vmem:[%s8731_s1 + $0xc] sm:$0x3] }
  0x5e   : > { %v1285_v19 = vsel %vm6472_vm7, %v1283_v57, %v1284_v16  ;;  %v1290_v56 = vrot.slane %v1288_v18, 4  ;;  %v1298_v32 = vrot.slane %v6327_v33, 5  ;;  %v5089_v44 = vrot.slane %v1219_v4, 9 }
  0x5f   : > { %v5102_v28 = vcombine.low %v1282_v41, %v1285_v19  ;;  %v1297_v3 = vrot.slane %v1295_v45, 4  ;;  %v1302_v40 = vrot.slane %v6356_v23, 5  ;;  %v1326_v5 = vrot.slane %v6168_v15, 5 }
  0x60   : > { %v1305_v51 = vrot.slane %v6365_v48, 5  ;;  %v5090_v6 = vrot.slane %v1220_v39, 9  ;;  %v1309_v7 = vrot.slane %v6393_v17, 5  ;;  %v5055_v33 = vcombine.low %v6265_v1, %v6273_v10  ;;  %v1222_v1 = vld [vmem:[%s6142_s26 + $0x60] sm:$0xe] }
  0x61   : > { %5775 = vmatmul.mubr.msk.bf16.vlgmr.msra.gmra.mxu0 %vm708_vm3, %v5101_v22  ;;  %v1289_v20 = vsel %vm6472_vm7, %v5087_v26, %v1288_v18  ;;  %v1304_v59 = vrot.slane %v1302_v40, 4  ;;  %v1312_v16 = vrot.slane %v6399_v2, 5  ;;  %v1292_v48 = vsel %vm6472_vm7, %v1290_v56, %v1291_v50  ;;  %v6567_v22 = vld [vmem:[%s8731_s1 + $0xa] sm:$0x3]  ;;  %v6592_v50 = vld [vmem:[%s6142_s26 + $0x6c] sm:$0xe] }
  0x62   : > { %5841 = vmatpush3.bf16.msra.mxu0 %v2555_v25  ;;  %5778 = vmatprep.mubr.msk.bf16.mxu0 %vm708_vm3, %v5102_v28  ;;  %v1296_v27 = vsel %vm6472_vm7, %v5088_v54, %v1295_v45  ;;  %v1299_v42 = vsel %vm6472_vm7, %v1297_v3, %v1298_v32  ;;  %v1311_v41 = vrot.slane %v1309_v7, 4  ;;  %v6557_v10 = vsel %vm6472_vm7, %v5089_v44, %v1302_v40  ;;  %v1225_v39 = vld [vmem:[%s6142_s26 + $0x84] sm:$0xe]  ;;  %v6621_v44 = vld [vmem:[%s6142_s26 + $0x78] sm:$0xe] }
  0x63   : > { %v6561_v2 = vsel %vm6472_vm7, %v5090_v6, %v1309_v7  ;;  %v5091_v57 = vrot.slane %v1221_v47, 9  ;;  %v1316_v18 = vrot.slane %v6434_v55, 5  ;;  %6019 = vmatprep.subr.msk.bf16.mxu0 %vm757_vm0, %v6539_v24  ;;  %v6577_v25 = vsel %vm6472_vm7, %v1304_v59, %v1305_v51  ;;  %v1226_v40 = vld [vmem:[%s6142_s26 + $0x90] sm:$0xe] }
  0x64   : > { %5741 = vmatmul.mubr.msk.bf16.vlgmr.msra.gmra.mxu1 %vm708_vm3, %v5053_v38  ;;  %v6581_v45 = vsel %vm6472_vm7, %v1311_v41, %v1312_v16  ;;  %v1319_v4 = vrot.slane %v6437_v49, 5  ;;  %v1323_v19 = vrot.slane %v6165_v14, 5  ;;  %v5103_v29 = vcombine.low %v1289_v20, %v1292_v48  ;;  %v8788_v48 = vld [vmem:[#allocation3_spill] sm:$0xff] }
  0x65   : > { %5807 = vmatpush3.bf16.msra.mxu1 %v1831_v52  ;;  %5744 = vmatprep.mubr.msk.bf16.mxu1 %vm708_vm3, %v5054_v13  ;;  %v5056_v30 = vcombine.low %v6314_v60, %v6319_v9  ;;  %v1318_v38 = vrot.slane %v1316_v18, 4  ;;  %v5092_v26 = vrot.slane %v1222_v1, 9  ;;  %v5104_v49 = vcombine.low %v1296_v27, %v1299_v42  ;;  %v1227_v42 = vld [vmem:[%s6142_s26 + $0x9c] sm:$0xe] }
  0x66   : > { %v5057_v52 = vcombine.low %v6351_v11, %v6356_v23  ;;  %v5058_v8 = vcombine.low %v6384_v34, %v6393_v17  ;;  %6018 = vmatprep.subr.msk.bf16.mxu1 %vm757_vm0, %v6567_v22  ;;  %v5105_v60 = vcombine.low %v6557_v10, %v6577_v25  ;;  %v5106_v9 = vcombine.low %v6561_v2, %v6581_v45  ;;  %v8789_v10 = vld [vmem:[#allocation5_spill] sm:$0xff]  ;;  %v8790_v2 = vld [vmem:[#allocation4_spill] sm:$0xff] }
  0x67   : > { %v1325_v54 = vrot.slane %v1323_v19, 4  ;;  %v6611_v28 = vsel %vm6472_vm7, %v5091_v57, %v1316_v18  ;;  %v6615_v56 = vsel %vm6472_vm7, %v1318_v38, %v1319_v4  ;;  %v5093_v32 = vrot.slane %v6592_v50, 9  ;;  %v1228_v18 = vld [vmem:[%s6142_s26 + $0xa8] sm:$0xe]  ;;  %v8792_v38 = vld [vmem:[#allocation8_spill] sm:$0xff] }
  0x68   : > { %v6627_v47 = vsel %vm6472_vm7, %v5092_v26, %v1323_v19  ;;  %v1330_v51 = vrot.slane %v6207_v58, 5  ;;  %v1333_v6 = vrot.slane %v6215_v63, 5  ;;  %v5095_v59 = vrot.slane %v1225_v39, 9  ;;  %v8791_v19 = vld [vmem:[#allocation6_spill] sm:$0xff]  ;;  %v8793_v26 = vld [vmem:[#allocation7_spill] sm:$0xff] }
  0x69   : > { %5779 = vmatmul.mubr.msk.bf16.gmra.mxu0 %vm708_vm3, %v5103_v29  ;;  %v1344_v16 = vrot.slane %v6298_v43, 5  ;;  %v1347_v27 = vrot.slane %v8788_v48, 5  ;;  %v5107_v41 = vcombine.low %v6611_v28, %v6615_v56  ;;  %v6645_v63 = vsel %vm6472_vm7, %v1325_v54, %v1326_v5  ;;  %v8795_v48 = vld [vmem:[#allocation11_spill] sm:$0xff] }
  0x6a   : > { %5782 = vmatprep.mubr.msk.bf16.mxu0 %vm708_vm3, %v5104_v49  ;;  %v5094_v1 = vrot.slane %v6621_v44, 9  ;;  %v5096_v4 = vrot.slane %v1226_v40, 9  ;;  %v1351_v15 = vrot.slane %v8789_v10, 5  ;;  %v1332_v5 = vrot.slane %v1330_v51, 4  ;;  %v5196_v57 = vld [vmem:[%s6142_s26 + $0xc] sm:$0xf] }
  0x6b   : > { %v6654_v25 = vsel %vm6472_vm7, %v5095_v59, %v1344_v16  ;;  %v1346_v45 = vrot.slane %v1344_v16, 4  ;;  %v1354_v29 = vrot.slane %v8791_v19, 5  ;;  %v5097_v49 = vrot.slane %v1227_v42, 9  ;;  %v8794_v59 = vld [vmem:[#allocation9_spill] sm:$0xff]  ;;  %v8796_v42 = vld [vmem:[#allocation10_spill] sm:$0xff] }
  0x6c   : > { %5745 = vmatmul.mubr.msk.bf16.gmra.mxu1 %vm708_vm3, %v5055_v33  ;;  %v1337_v33 = vrot.slane %v6252_v46, 5  ;;  %v6668_v39 = vsel %vm6472_vm7, %v5096_v4, %v1351_v15  ;;  %v1353_v44 = vrot.slane %v1351_v15, 4  ;;  %v1358_v40 = vrot.slane %v8792_v38, 5  ;;  %v8797_v15 = vld [vmem:[#allocation12_spill] sm:$0xff] }
  0x6d   : > { %5748 = vmatprep.mubr.msk.bf16.mxu1 %vm708_vm3, %v5056_v30  ;;  %v6664_v54 = vsel %vm6472_vm7, %v1346_v45, %v1347_v27  ;;  %v1361_v16 = vrot.slane %v8794_v59, 5  ;;  %v5098_v45 = vrot.slane %v1228_v18, 9  ;;  %v1365_v4 = vrot.slane %v8795_v48, 5 }
  0x6e   : > { %v6678_v27 = vsel %vm6472_vm7, %v1353_v44, %v1354_v29  ;;  %v1368_v50 = vrot.slane %v8797_v15, 5  ;;  %v6688_v19 = vsel %vm6472_vm7, %v5097_v49, %v1358_v40  ;;  %v1360_v7 = vrot.slane %v1358_v40, 4  ;;  %v8798_v29 = vld [vmem:[#allocation13_spill] sm:$0xff]  ;;  %v8799_v15 = vld [vmem:[#allocation2_spill] sm:$0xff]  ;;  %v6703_v49 = vld [vmem:[%s6142_s26 + $0x10] sm:$0xf] }
  0x6f   : > { %v6695_v18 = vsel %vm6472_vm7, %v5093_v32, %v1330_v51  ;;  %v6700_v59 = vsel %vm6472_vm7, %v5098_v45, %v1365_v4  ;;  %v1367_v30 = vrot.slane %v1365_v4, 4  ;;  %v5199_v40 = vld [vmem:[%s6142_s26 + $0x18] sm:$0xf]  ;;  %v1339_v20 = vrot.slane %v1337_v33, 4 }
  0x70   : > { %v2075_v44 = vshrl.u32 %v5196_v57, 16  ;;  %v2078_v32 = vshll.u32 %v5196_v57, 16  ;;  %v5108_v51 = vcombine.low %v6627_v47, %v6645_v63  ;;  %v6718_v45 = vsel %vm6472_vm7, %v1332_v5, %v1333_v6  ;;  %v1229_v57 = vld [vmem:[%s6142_s26 + $0xb4] sm:$0xe]  ;;  %v6739_v47 = vld [vmem:[%s6142_s26 + $0x14] sm:$0x1] }
  0x71   : > { %5783 = vmatmul.mubr.msk.bf16.gmra.mxu0 %vm708_vm3, %v5105_v60  ;;  %v1340_v60 = vrot.slane %v8799_v15, 5  ;;  %v6733_v11 = vsel %vm6472_vm7, %v5094_v1, %v1337_v33  ;;  %v2084_v6 = vshll.u32 %v6703_v49, 16  ;;  %v5200_v63 = vld [vmem:[%s6142_s26 + $0x1c] sm:$0xf]  ;;  %v2088_v17 = vshrl.u32 %v6703_v49, 16 }
  0x72   : > { %5786 = vmatprep.mubr.msk.bf16.mxu0 %vm708_vm3, %v5106_v9  ;;  %v6708_v9 = vsel %vm6472_vm7, %v1360_v7, %v1361_v16  ;;  %v6724_v7 = vsel %vm6472_vm7, %v1367_v30, %v1368_v50  ;;  %v2077_v5 = vrot.slane %v2075_v44, 4  ;;  %v2080_v34 = vrot.slane %v2078_v32, 5  ;;  %v5202_v15 = vld [vmem:[%s6142_s26 + $0x24] sm:$0xf]  ;;  %v6752_v44 = vld [vmem:[%s6142_s26 + $0x28] sm:$0xf] }
  0x73   : > { %v2099_v50 = vshrl.u32 %v5199_v40, 16  ;;  %v1341_v1 = vsel %vm6472_vm7, %v1339_v20, %v1340_v60  ;;  %v5099_v33 = vrot.slane %v1229_v57, 9  ;;  %v6747_v30 = vrot.slane %v2084_v6, 5 }
  0x74   : > { %5749 = vmatmul.mubr.msk.bf16.gmra.mxu1 %vm708_vm3, %v5057_v52  ;;  %v1372_v52 = vrot.slane %v6451_v37, 5  ;;  %v2102_v16 = vshll.u32 %v5199_v40, 16  ;;  %v1375_v23 = vrot.slane %v6456_v61, 5  ;;  %v2090_v4 = vrot.slane %v2088_v17, 4 }
  0x75   : > { %5752 = vmatprep.mubr.msk.bf16.mxu1 %vm708_vm3, %v5058_v8  ;;  %v5201_v8 = vld [vmem:[%s6142_s26 + $0x20] sm:$0x1]  ;;  %v2101_v3 = vrot.slane %v2099_v50, 4  ;;  %v2108_v13 = vshll.u32 %v5200_v63, 16  ;;  %v2094_v20 = vshll.u32 %v6739_v47, 16  ;;  %v2112_v57 = vshrl.u32 %v5200_v63, 16 }
  0x76   : > { %v1374_v32 = vrot.slane %v1372_v52, 4  ;;  %v2104_v60 = vrot.slane %v2102_v16, 5  ;;  %v5109_v61 = vcombine.low %v6695_v18, %v6718_v45  ;;  %v5110_v40 = vcombine.low %v6733_v11, %v1341_v1 }
  0x77   : > { %v2081_v6 = vor.u32 %v2080_v34, %v2077_v5  ;;  %v6763_v17 = vrot.slane %v2108_v13, 5  ;;  %v2091_v28 = vor.u32 %v2090_v4, %v6747_v30  ;;  %v2118_v50 = vshll.u32 %v5201_v8, 16  ;;  %v6790_v5 = vld [vmem:[%s6142_s26 + $0x34] sm:$0xf] }
  0x78   : > { %v2105_v56 = vor.u32 %v2104_v60, %v2101_v3  ;;  %v6775_v18 = vsel %vm6472_vm7, %v5099_v33, %v1372_v52  ;;  %v2123_v13 = vshrl.u32 %v5202_v15, 16  ;;  %v2126_v45 = vshll.u32 %v5202_v15, 16  ;;  %v5205_v52 = vld [vmem:[%s6142_s26 + $0x30] sm:$0xf] }
  0x79   : > { %5787 = vmatmul.mubr.msk.bf16.gmra.mxu0 %vm708_vm3, %v5107_v41  ;;  %v2114_v41 = vrot.slane %v2112_v57, 4  ;;  %v2132_v11 = vshll.u32 %v6752_v44, 16  ;;  %v8801_v3 = vcombine.low %v6161_v12, %v6165_v14  ;;  %v6784_v4 = vsel %vm6472_vm7, %v1374_v32, %v1375_v23 }
  0x7a   : > { %5790 = vmatprep.mubr.msk.bf16.mxu0 %vm708_vm3, %v5108_v51  ;;  %v8800_v51 = vcombine.low %v6427_v62, %v6434_v55  ;;  %v2096_v62 = vrot.slane %v2094_v20, 5  ;;  %v2136_v63 = vshrl.u32 %v6752_v44, 16  ;;  %v2082_v34 = vrot.slane %v2081_v6, 4 }
  0x7b   : > { %v2115_v55 = vor.u32 %v2114_v41, %v6763_v17  ;;  %v2125_v8 = vrot.slane %v2123_v13, 4  ;;  %v2128_v1 = vrot.slane %v2126_v45, 5  ;;  %v6792_v33 = vrot.slane %v2132_v11, 5  ;;  %v6798_v41 = vld [vmem:[%s6142_s26 + $0x38] sm:$0x1] }
  0x7c   : > { %5753 = vmatmul.mubr.msk.bf16.gmra.mxu1 %vm708_vm3, %v8800_v51  ;;  %v2092_v12 = vrot.slane %v2091_v28, 4  ;;  %v2106_v14 = vrot.slane %v2105_v56, 4  ;;  %v2120_v16 = vrot.slane %v2118_v50, 5  ;;  %v2138_v23 = vrot.slane %v2136_v63, 4  ;;  %v5208_v13 = vld [vmem:[%s6142_s26 + $0x3c] sm:$0xf] }
  0x7d   : > { %5756 = vmatprep.mubr.msk.bf16.mxu1 %vm708_vm3, %v8801_v3  ;;  %v2116_v15 = vrot.slane %v2115_v55, 4  ;;  %v2142_v32 = vshll.u32 %v6767_v21, 16  ;;  %v2147_v20 = vshrl.u32 %v5205_v52, 16  ;;  %v2150_v60 = vshll.u32 %v5205_v52, 16 }
  0x7e   : > { %v2129_v57 = vor.u32 %v2128_v1, %v2125_v8  ;;  %v2139_v6 = vor.u32 %v2138_v23, %v6792_v33  ;;  %v2156_v28 = vshll.u32 %v6790_v5, 16  ;;  %v2160_v56 = vshrl.u32 %v6790_v5, 16  ;;  %v5211_v8 = vld [vmem:[%s6142_s26 + $0x48] sm:$0xf]  ;;  %v6825_v1 = vld [vmem:[%s6142_s26 + $0x4c] sm:$0xf] }
  0x7f   : > { %v2149_v50 = vrot.slane %v2147_v20, 4  ;;  %v2152_v51 = vrot.slane %v2150_v60, 5  ;;  %v8802_v3 = vcombine.low %v6203_v53, %v6207_v58  ;;  %v5115_v55 = vcombine.low %v6775_v18, %v6784_v4 }
  0x80   : > { %v6804_v45 = vrot.slane %v2156_v28, 5  ;;  %v2162_v11 = vrot.slane %v2160_v56, 4  ;;  %v2097_v63 = vsel %vm6186_vm4, %v2092_v12, %v2096_v62  ;;  %v2111_v52 = vsel %vm6186_vm4, %v2106_v14, %v6763_v17 }
  0x81   : > { %5791 = vmatmul.mubr.msk.bf16.gmra.mxu0 %vm708_vm3, %v5109_v61  ;;  %v6807_v61 = vld [vmem:[%s6142_s26 + $0x40] sm:$0xf]  ;;  %v8803_v53 = vcombine.low %v6241_v35, %v6252_v46  ;;  %v2121_v58 = vsel %vm6186_vm4, %v2116_v15, %v2120_v16  ;;  %v2130_v23 = vrot.slane %v2129_v57, 4  ;;  %v2153_v20 = vor.u32 %v2152_v51, %v2149_v50  ;;  %v6859_v50 = vld [vmem:[%s6142_s26 + $0x44] sm:$0x1] }
  0x82   : > { %5794 = vmatprep.mubr.msk.bf16.mxu0 %vm708_vm3, %v5110_v40  ;;  %v2087_v40 = vsel %vm6186_vm4, %v2082_v34, %v6747_v30  ;;  %v2140_v30 = vrot.slane %v2139_v6, 4  ;;  %v2144_v34 = vrot.slane %v2142_v32, 5  ;;  %v2166_v62 = vshll.u32 %v6798_v41, 16  ;;  %v5214_v51 = vld [vmem:[%s6142_s26 + $0x54] sm:$0xf] }
  0x83   : > { %v2171_v12 = vshrl.u32 %v5208_v13, 16  ;;  %v2174_v17 = vshll.u32 %v5208_v13, 16  ;;  %v6836_v14 = vsel %vm757_vm0, %v6567_v22, 0  ;;  %v2163_v35 = vor.u32 %v2162_v11, %v6804_v45 }
  0x84   : > { %5757 = vmatmul.mubr.msk.bf16.gmra.mxu1 %vm708_vm3, %v8802_v3  ;;  %v2180_v46 = vshll.u32 %v6807_v61, 16  ;;  %v2184_v16 = vshrl.u32 %v6807_v61, 16  ;;  %v6841_v15 = vcombine.low %v2087_v40, %v2097_v63  ;;  %v6845_v32 = vsel %vm757_vm0, %v6539_v24, 0  ;;  %v6868_v40 = vld [vmem:[%s6142_s26 + $0x58] sm:$0xf] }
  0x85   : > { %5760 = vmatprep.mubr.msk.bf16.mxu1 %vm708_vm3, %v8803_v53  ;;  %v2195_v60 = vshrl.u32 %v5211_v8, 16  ;;  %v2198_v57 = vshll.u32 %v5211_v8, 16  ;;  %v8804_v6 = vcombine.low %v6654_v25, %v6664_v54  ;;  %v6851_v22 = vcombine.low %v2111_v52, %v2121_v58  ;;  %v6873_v8 = vld [vmem:[%s6142_s26 + $0x50] sm:$0x1] }
  0x86   : > { %v2135_v28 = vsel %vm6186_vm4, %v2130_v23, %v6792_v33  ;;  %v2145_v56 = vsel %vm6186_vm4, %v2140_v30, %v2144_v34  ;;  %v2204_v24 = vshll.u32 %v6825_v1, 16  ;;  %v8805_v25 = vcombine.low %v6668_v39, %v6678_v27  ;;  %v5217_v34 = vld [vmem:[%s6142_s26 + $0x60] sm:$0xf] }
  0x87   : > { %v2154_v54 = vrot.slane %v2153_v20, 4  ;;  %v2168_v13 = vrot.slane %v2166_v62, 5  ;;  %v2173_v11 = vrot.slane %v2171_v12, 4  ;;  %v2176_v3 = vrot.slane %v2174_v17, 5 }
  0x88   : > { %v2164_v33 = vrot.slane %v2163_v35, 4  ;;  %v6870_v63 = vrot.slane %v2180_v46, 5  ;;  %v2186_v52 = vrot.slane %v2184_v16, 4  ;;  %v2208_v53 = vshrl.u32 %v6825_v1, 16  ;;  %v6890_v35 = vld [vmem:[%s6142_s26 + $0x5c] sm:$0x1] }
  0x89   : > { %5795 = vmatmul.mubr.msk.bf16.gmra.mxu0 %vm708_vm3, %v8804_v6  ;;  %v8806_v39 = vcombine.low %v6291_v36, %v6298_v43  ;;  %v2197_v27 = vrot.slane %v2195_v60, 4  ;;  %v2200_v58 = vrot.slane %v2198_v57, 5  ;;  %v2219_v23 = vshrl.u32 %v5214_v51, 16 }
  0x8a   : > { %5798 = vmatprep.mubr.msk.bf16.mxu0 %vm708_vm3, %v8805_v25  ;;  %v2222_v30 = vshll.u32 %v5214_v51, 16  ;;  %v8807_v20 = vcombine.low %v8790_v2, %v8789_v10  ;;  %v6885_v62 = vcombine.low %v2135_v28, %v2145_v56  ;;  %v6887_v12 = vrot.slane %v2204_v24, 5  ;;  %v6903_v28 = vld [vmem:[%s6142_s26 + $0x64] sm:$0xf] }
  0x8b   : > { %v2210_v17 = vrot.slane %v2208_v53, 4  ;;  %v2228_v36 = vshll.u32 %v6868_v40, 16  ;;  %v2190_v43 = vshll.u32 %v6859_v50, 16  ;;  %v2221_v46 = vrot.slane %v2219_v23, 4 }
  0x8c   : > { %5761 = vmatmul.mubr.msk.bf16.gmra.mxu1 %vm708_vm3, %v8806_v39  ;;  %v2224_v16 = vrot.slane %v2222_v30, 5  ;;  %v2232_v60 = vshrl.u32 %v6868_v40, 16  ;;  %v2159_v10 = vsel %vm6186_vm4, %v2154_v54, %v6804_v45  ;;  %v2169_v2 = vsel %vm6186_vm4, %v2164_v33, %v2168_v13  ;;  %v6925_v30 = vld [vmem:[%s6142_s26 + $0x68] sm:$0x1] }
  0x8d   : > { %5764 = vmatprep.mubr.msk.bf16.mxu1 %vm708_vm3, %v8807_v20  ;;  %v2177_v57 = vor.u32 %v2176_v3, %v2173_v11  ;;  %v6900_v6 = vrot.slane %v2228_v36, 5  ;;  %v2187_v56 = vor.u32 %v2186_v52, %v6870_v63  ;;  %v2201_v24 = vor.u32 %v2200_v58, %v2197_v27  ;;  %v5220_v3 = vld [vmem:[%s6142_s26 + $0x6c] sm:$0xf]  ;;  %v6922_v27 = vld [vmem:[%s6142_s26 + $0x70] sm:$0xf] }
  0x8e   : > { %v2214_v51 = vshll.u32 %v6873_v8, 16  ;;  %v2234_v25 = vrot.slane %v2232_v60, 4  ;;  %v8808_v53 = vcombine.low %v6688_v19, %v6708_v9  ;;  %v2211_v45 = vor.u32 %v2210_v17, %v6887_v12 }
  0x8f   : > { %v2225_v54 = vor.u32 %v2224_v16, %v2221_v46  ;;  %v2243_v13 = vshrl.u32 %v5217_v34, 16  ;;  %v2246_v11 = vshll.u32 %v5217_v34, 16  ;;  %v8809_v33 = vcombine.low %v6700_v59, %v6724_v7  ;;  %v5223_v16 = vld [vmem:[%s6142_s26 + $0x78] sm:$0xf] }
  0x90   : > { %v2235_v52 = vor.u32 %v2234_v25, %v6900_v6  ;;  %v2238_v39 = vshll.u32 %v6890_v35, 16  ;;  %v2252_v19 = vshll.u32 %v6903_v28, 16  ;;  %v2256_v9 = vshrl.u32 %v6903_v28, 16 }
  0x91   : > { %5799 = vmatmul.mubr.msk.bf16.gmra.mxu0 %vm708_vm3, %v8808_v53  ;;  %v2178_v58 = vrot.slane %v2177_v57, 4  ;;  %v2192_v23 = vrot.slane %v2190_v43, 5  ;;  %v2245_v34 = vrot.slane %v2243_v13, 4  ;;  %v2248_v20 = vrot.slane %v2246_v11, 5 }
  0x92   : > { %5802 = vmatprep.mubr.msk.bf16.mxu0 %vm708_vm3, %v8809_v33  ;;  %v8810_v59 = vcombine.low %v8793_v26, %v8792_v38  ;;  %v6931_v7 = vcombine.low %v2159_v10, %v2169_v2  ;;  %v2188_v17 = vrot.slane %v2187_v56, 4  ;;  %v2202_v36 = vrot.slane %v2201_v24, 4  ;;  %v6941_v2 = vld [vmem:[%s6142_s26 + $0x7c] sm:$0xf] }
  0x93   : > { %v6933_v46 = vrot.slane %v2252_v19, 5  ;;  %v8811_v43 = vcombine.low %v8796_v42, %v8795_v48  ;;  %v2212_v60 = vrot.slane %v2211_v45, 4  ;;  %v2216_v57 = vrot.slane %v2214_v51, 5  ;;  %8812 = vst [vmem:[#allocation3_spill] sm:$0xff] %v6941_v2  ;;  %v5226_v19 = vld [vmem:[%s6142_s26 + $0x84] sm:$0xf] }
  0x94   : > { %5765 = vmatmul.mubr.msk.bf16.gmra.mxu1 %vm708_vm3, %v8810_v59  ;;  %v2226_v25 = vrot.slane %v2225_v54, 4  ;;  %v2258_v38 = vrot.slane %v2256_v9, 4  ;;  %v2236_v26 = vrot.slane %v2235_v52, 4  ;;  %v2240_v53 = vrot.slane %v2238_v39, 5 }
  0x95   : > { %5768 = vmatprep.mubr.msk.bf16.mxu1 %vm708_vm3, %v8811_v43  ;;  %v2249_v13 = vor.u32 %v2248_v20, %v2245_v34  ;;  %v2267_v10 = vshrl.u32 %v5220_v3, 16  ;;  %v2183_v56 = vsel %vm6186_vm4, %v2178_v58, %v6870_v63  ;;  %v2270_v24 = vshll.u32 %v5220_v3, 16  ;;  %v6047_v63 = vld [vmem:[%s6142_s26 + $0xc] sm:$0xff]   ;;  %v6975_v34 = vld [vmem:[%s6142_s26 + $0x88] sm:$0xf] }
  0x96   : > { %v2276_v48 = vshll.u32 %v6922_v27, 16  ;;  %v2280_v42 = vshrl.u32 %v6922_v27, 16  ;;  %v2193_v51 = vsel %vm6186_vm4, %v2188_v17, %v2192_v23  ;;  %v2207_v45 = vsel %vm6186_vm4, %v2202_v36, %v6887_v12  ;;  %8813 = vst [vmem:[#allocation5_spill] sm:$0xff] %v6975_v34  ;;  %v6984_v36 = vld [vmem:[%s6142_s26 + $0x74] sm:$0x1] }
  0x97   : > { %v2259_v54 = vor.u32 %v2258_v38, %v6933_v46  ;;  %v2262_v11 = vshll.u32 %v6925_v30, 16  ;;  %v2217_v3 = vsel %vm6186_vm4, %v2212_v60, %v2216_v57  ;;  %v2231_v33 = vsel %vm6186_vm4, %v2226_v25, %v6900_v6  ;;  %8815 = vst [vmem:[#allocation4_spill] sm:$0xff] %v6984_v36  ;;  %v6994_v38 = vld [vmem:[%s6142_s26 + $0x80] sm:$0x1] }
  0x98   : > { %v2291_v52 = vshrl.u32 %v5223_v16, 16  ;;  %v2294_v12 = vshll.u32 %v5223_v16, 16  ;;  %v2241_v18 = vsel %vm6186_vm4, %v2236_v26, %v2240_v53  ;;  %v2250_v4 = vrot.slane %v2249_v13, 4  ;;  %8816 = vst [vmem:[#allocation6_spill] sm:$0xff] %v6994_v38  ;;  %v6997_v26 = vld [vmem:[%s6142_s26 + $0x8c] sm:$0x1] }
  0x99   : > { %5803 = vmatmul.mubr.msk.bf16.gmra.mxu0 %vm708_vm3, %v5115_v55  ;;  %v2269_v55 = vrot.slane %v2267_v10, 4  ;;  %v2300_v39 = vshll.u32 %v6941_v2, 16  ;;  %v2272_v9 = vrot.slane %v2270_v24, 5  ;;  %v6971_v58 = vrot.slane %v2276_v48, 5  ;;  %8817 = vst [vmem:[#allocation8_spill] sm:$0xff] %v6997_v26  ;;  %v6048_v10 = vld [vmem:[%s6142_s26 + $0x18] sm:$0xff]  }
  0x9a   : > { %5842 = vmatprep.mubr.msk.bf16.mxu0 %vm708_vm3, %v6841_v15  ;;  %v2282_v23 = vrot.slane %v2280_v42, 4  ;;  %v2304_v6 = vshrl.u32 %v6941_v2, 16  ;;  %v8814_v15 = vcombine.low %v8798_v29, %v6451_v37  ;;  %v6981_v20 = vcombine.low %v2183_v56, %v2193_v51  ;;  %v5229_v51 = vld [vmem:[%s6142_s26 + $0x90] sm:$0xf] }
  0x9b   : > { %v2260_v59 = vrot.slane %v2259_v54, 4  ;;  %v2264_v17 = vrot.slane %v2262_v11, 5  ;;  %v2293_v16 = vrot.slane %v2291_v52, 4  ;;  %v2296_v43 = vrot.slane %v2294_v12, 5 }
  0x9c   : > { %5769 = vmatmul.mubr.msk.bf16.gmra.mxu1 %vm708_vm3, %v8814_v15  ;;  %v6987_v60 = vrot.slane %v2300_v39, 5  ;;  %v2306_v57 = vrot.slane %v2304_v6, 4  ;;  %v2315_v25 = vshrl.u32 %v5226_v19, 16  ;;  %v6989_v37 = vcombine.low %v2207_v45, %v2217_v3  ;;  %v7008_v45 = vld [vmem:[%s6142_s26 + $0x94] sm:$0xf] }
  0x9d   : > { %5808 = vmatprep.mubr.msk.bf16.mxu1 %vm708_vm3, %v6047_v63  ;;  %v6991_v29 = vcombine.low %v2231_v33, %v2241_v18  ;;  %v2318_v53 = vshll.u32 %v5226_v19, 16  ;;  %v2324_v13 = vshll.u32 %v6975_v34, 16  ;;  %v2255_v56 = vsel %vm6186_vm4, %v2250_v4, %v6933_v46  ;;  %8818 = vst [vmem:[#allocation7_spill] sm:$0xff] %v7008_v45  ;;  %v7016_v33 = vld [vmem:[%s8731_s1 + $0x10] sm:$0x3]  ;;  %v6049_v46 = vld [vmem:[%s6142_s26 + $0x24] sm:$0xff]  }
  0x9e   : > { %v2273_v24 = vor.u32 %v2272_v9, %v2269_v55  ;;  %v2283_v48 = vor.u32 %v2282_v23, %v6971_v58  ;;  %v2286_v42 = vshll.u32 %v6984_v36, 16  ;;  %v2317_v54 = vrot.slane %v2315_v25, 4  ;;  %8819 = vst [vmem:[#allocation9_spill] sm:$0xff] %v7016_v33 }
  0x9f   : > { %v2320_v11 = vrot.slane %v2318_v53, 5  ;;  %v7010_v63 = vrot.slane %v2324_v13, 5  ;;  %v2328_v3 = vshrl.u32 %v6975_v34, 16  ;;  %v2265_v52 = vsel %vm6186_vm4, %v2260_v59, %v2264_v17 }
  0xa0   : > { %v2297_v12 = vor.u32 %v2296_v43, %v2293_v16  ;;  %v2307_v18 = vor.u32 %v2306_v57, %v6987_v60  ;;  %v2310_v4 = vshll.u32 %v6994_v38, 16  ;;  %v2339_v19 = vshrl.u32 %v5229_v51, 16  ;;  %v7050_v57 = vld [vmem:[%s6142_s26 + $0xa0] sm:$0xf] }
  0xa1   : > { %5843 = vmatmul.mubr.msk.bf16.vlgmr.msra.gmra.mxu0 %vm708_vm3, %v6851_v22  ;;  %v2321_v55 = vor.u32 %v2320_v11, %v2317_v54  ;;  %v2330_v39 = vrot.slane %v2328_v3, 4  ;;  %v2342_v9 = vshll.u32 %v5229_v51, 16  ;;  %v5232_v22 = vld [vmem:[%s6142_s26 + $0x9c] sm:$0xf]  ;;  %v7029_v23 = vrot.slane %v2273_v24, 4  ;;  %8821 = vst [vmem:[#allocation10_spill] sm:$0xff] %v7050_v57 }
  0xa2   : > { %5909 = vmatpush3.bf16.msra.mxu0 %v6845_v32  ;;  %5846 = vmatprep.mubr.msk.bf16.mxu0 %vm708_vm3, %v6885_v62  ;;  %v7031_v6 = vrot.slane %v2286_v42, 5  ;;  %v2334_v15 = vshll.u32 %v6997_v26, 16  ;;  %v2348_v59 = vshll.u32 %v7008_v45, 16  ;;  %v7038_v32 = vld [vmem:[%s8731_s1 + $0xe] sm:$0x3]  ;;  %v7043_v62 = vcombine.low %v2255_v56, %v2265_v52 }
  0xa3   : > { %8820 = vst [vmem:[#allocation11_spill] sm:$0xff] %v7038_v32  ;;  %6021 = vmatprep.subr.msk.bf16.mxu0 %vm757_vm0, %v7016_v33  ;;  %v7045_v17 = vrot.slane %v2283_v48, 4  ;;  %v2331_v16 = vor.u32 %v2330_v39, %v7010_v63  ;;  %v2352_v43 = vshrl.u32 %v7008_v45, 16  ;;  %v7054_v25 = vrot.slane %v2297_v12, 4  ;;  %v7063_v56 = vld [vmem:[%s6142_s26 + $0x98] sm:$0x1] }
  0xa4   : > { %5809 = vmatmul.mubr.msk.bf16.vlgmr.msra.gmra.mxu1 %vm708_vm3, %v6048_v10  ;;  %v7056_v53 = vrot.slane %v2307_v18, 4  ;;  %v7058_v13 = vrot.slane %v2310_v4, 5  ;;  %v7060_v10 = vrot.slane %v2321_v55, 4  ;;  %8822 = vst [vmem:[#allocation12_spill] sm:$0xff] %v7063_v56  ;;  %v2341_v24 = vrot.slane %v2339_v19, 4  ;;  %v6051_v19 = vld [vmem:[%s6142_s26 + $0x3c] sm:$0xff]  }
  0xa5   : > { %5875 = vmatpush3.bf16.msra.mxu1 %v6836_v14  ;;  %5812 = vmatprep.mubr.msk.bf16.mxu1 %vm708_vm3, %v6049_v46  ;;  %v2344_v48 = vrot.slane %v2342_v9, 5  ;;  %v2363_v42 = vshrl.u32 %v5232_v22, 16  ;;  %v2366_v51 = vshll.u32 %v5232_v22, 16  ;;  %v6050_v14 = vld [vmem:[%s6142_s26 + $0x30] sm:$0xff]   ;;  %v7072_v11 = vrot.slane %v2334_v15, 5 }
  0xa6   : > { %6020 = vmatprep.subr.msk.bf16.mxu1 %vm757_vm0, %v7038_v32  ;;  %v7074_v3 = vrot.slane %v2348_v59, 5  ;;  %v2372_v46 = vshll.u32 %v7050_v57, 16  ;;  %v5235_v52 = vld [vmem:[%s6142_s26 + $0xa8] sm:$0xf]  ;;  %v7078_v12 = vrot.slane %v2331_v16, 4  ;;  %v2354_v18 = vrot.slane %v2352_v43, 4 }
  0xa7   : > { %v2358_v4 = vshll.u32 %v7063_v56, 16  ;;  %v2376_v55 = vshrl.u32 %v7050_v57, 16  ;;  %v7083_v39 = vld [vmem:[%s6142_s26 + $0xac] sm:$0xf]  ;;  %v2345_v59 = vor.u32 %v2344_v48, %v2341_v24  ;;  %v7107_v16 = vld [vmem:[%s6142_s26 + $0xa4] sm:$0x1] }
  0xa8   : > { %8823 = vst [vmem:[#allocation13_spill] sm:$0xff] %v7083_v39  ;;  %8824 = vst [vmem:[#allocation2_spill] sm:$0xff] %v7107_v16  ;;  %v2365_v43 = vrot.slane %v2363_v42, 4  ;;  %v2368_v22 = vrot.slane %v2366_v51, 5  ;;  %v2387_v54 = vshrl.u32 %v5235_v52, 16  ;;  %v7109_v9 = vrot.slane %v2372_v46, 5 }
  0xa9   : > { %5847 = vmatmul.mubr.msk.bf16.gmra.mxu0 %vm708_vm3, %v6931_v7  ;;  %v2378_v32 = vrot.slane %v2376_v55, 4  ;;  %v2390_v15 = vshll.u32 %v5235_v52, 16  ;;  %v2396_v33 = vshll.u32 %v7083_v39, 16  ;;  %v5238_v57 = vld [vmem:[%s6142_s26 + $0xb4] sm:$0xf]  ;;  %v2355_v24 = vor.u32 %v2354_v18, %v7074_v3 }
  0xaa   : > { %5850 = vmatprep.mubr.msk.bf16.mxu0 %vm708_vm3, %v6981_v20  ;;  %v2337_v20 = vsel %vm6186_vm4, %v7078_v12, %v7072_v11  ;;  %v7119_v48 = vrot.slane %v2358_v4, 5  ;;  %v7122_v42 = vld [vmem:[%s6142_s26 + $0xb0] sm:$0x1]  ;;  %v2389_v51 = vrot.slane %v2387_v54, 4  ;;  %v7125_v46 = vld [vmem:[%s6142_s26 + $0xb8] sm:$0xf]  ;;  %v2369_v18 = vor.u32 %v2368_v22, %v2365_v43 }
  0xab   : > { %8825 = vst [vmem:[#allocation14_spill] sm:$0xff] %v7122_v42  ;;  %8826 = vst [vmem:[#allocation15_spill] sm:$0xff] %v7125_v46  ;;  %v2392_v52 = vrot.slane %v2390_v15, 5  ;;  %v7129_v55 = vrot.slane %v2396_v33, 5  ;;  %v2400_v11 = vshrl.u32 %v7083_v39, 16  ;;  %v7132_v12 = vrot.slane %v2345_v59, 4 }
  0xac   : > { %5813 = vmatmul.mubr.msk.bf16.gmra.mxu1 %vm708_vm3, %v6050_v14  ;;  %v2382_v14 = vshll.u32 %v7107_v16, 16  ;;  %v7135_v4 = vld [vmem:[%s6142_s26 + $0xbc] sm:$0x1]  ;;  %v2411_v54 = vshrl.u32 %v5238_v57, 16  ;;  %v2414_v7 = vshll.u32 %v5238_v57, 16  ;;  %v2379_v56 = vor.u32 %v2378_v32, %v7109_v9  ;;  %v6052_v16 = vld [vmem:[%s6142_s26 + $0x48] sm:$0xff]  }
  0xad   : > { %5816 = vmatprep.mubr.msk.bf16.mxu1 %vm708_vm3, %v6051_v19  ;;  %v2402_v45 = vrot.slane %v2400_v11, 4  ;;  %v2406_v19 = vshll.u32 %v7122_v42, 16  ;;  %v2420_v15 = vshll.u32 %v7125_v46, 16  ;;  %v5241_v33 = vld [vmem:[%s6142_s26 + $0xc0] sm:$0xf]  ;;  %v2393_v26 = vor.u32 %v2392_v52, %v2389_v51  ;;  %v6053_v57 = vld [vmem:[%s6142_s26 + $0x54] sm:$0xff]  }
  0xae   : > { %v2413_v39 = vrot.slane %v2411_v54, 4  ;;  %v2416_v34 = vrot.slane %v2414_v7, 5  ;;  %v2424_v59 = vshrl.u32 %v7125_v46, 16  ;;  %v7144_v22 = vld [vmem:[%s6142_s26 + $0xc4] sm:$0xf]  ;;  %v2356_v43 = vrot.slane %v2355_v24, 4 }
  0xaf   : > { %v2384_v32 = vrot.slane %v2382_v14, 5  ;;  %v2403_v11 = vor.u32 %v2402_v45, %v7129_v55  ;;  %v2422_v42 = vrot.slane %v2420_v15, 5  ;;  %v2430_v7 = vshll.u32 %v7135_v4, 16  ;;  %v7156_v45 = vld [vmem:[%s6142_s26 + $0xc8] sm:$0x1] }
  0xb0   : > { %v2417_v51 = vor.u32 %v2416_v34, %v2413_v39  ;;  %v2426_v52 = vrot.slane %v2424_v59, 4  ;;  %v2435_v54 = vshrl.u32 %v5241_v33, 16  ;;  %v2370_v46 = vrot.slane %v2369_v18, 4 }
  0xb1   : > { %5851 = vmatmul.mubr.msk.bf16.gmra.mxu0 %vm708_vm3, %v6989_v37  ;;  %v2380_v38 = vrot.slane %v2379_v56, 4  ;;  %v2438_v2 = vshll.u32 %v5241_v33, 16  ;;  %v2444_v37 = vshll.u32 %v7144_v22, 16  ;;  %v2394_v24 = vrot.slane %v2393_v26, 4 }
  0xb2   : > { %5854 = vmatprep.mubr.msk.bf16.mxu0 %vm708_vm3, %v6991_v29  ;;  %v2408_v14 = vrot.slane %v2406_v19, 5  ;;  %v2427_v36 = vor.u32 %v2426_v52, %v2422_v42  ;;  %v2437_v15 = vrot.slane %v2435_v54, 4  ;;  %v2404_v34 = vrot.slane %v2403_v11, 4 }
  0xb3   : > { %v2440_v29 = vrot.slane %v2438_v2, 5  ;;  %v7159_v39 = vrot.slane %v2444_v37, 5  ;;  %v2448_v56 = vshrl.u32 %v7144_v22, 16  ;;  %v8827_v26 = vsel %vm6186_vm4, %v7045_v17, %v7031_v6 }
  0xb4   : > { %5817 = vmatmul.mubr.msk.bf16.gmra.mxu1 %vm708_vm3, %v6052_v16  ;;  %v8828_v16 = vsel %vm6186_vm4, %v7029_v23, %v6971_v58  ;;  %v2418_v19 = vrot.slane %v2417_v51, 4  ;;  %v2428_v33 = vrot.slane %v2427_v36, 4  ;;  %v2432_v2 = vrot.slane %v2430_v7, 5  ;;  %v6054_v23 = vld [vmem:[%s6142_s26 + $0x60] sm:$0xff]  }
  0xb5   : > { %5820 = vmatprep.mubr.msk.bf16.mxu1 %vm708_vm3, %v6053_v57  ;;  %v5252_v18 = vcombine.low %v8828_v16, %v8827_v26  ;;  %v8829_v59 = vsel %vm6186_vm4, %v7056_v53, %v7058_v13  ;;  %v8830_v6 = vsel %vm6186_vm4, %v7054_v25, %v6987_v60  ;;  %v2441_v57 = vor.u32 %v2440_v29, %v2437_v15  ;;  %v5278_v13 = vld [vmem:[%s6142_s26 + $0x24] sm:$0xe]  ;;  %v5281_v26 = vld [vmem:[%s6142_s26 + $0x48] sm:$0xe] }
  0xb6   : > { %v5253_v17 = vcombine.low %v8830_v6, %v8829_v59  ;;  %v2450_v11 = vrot.slane %v2448_v56, 4  ;;  %v2454_v58 = vshll.u32 %v7156_v45, 16  ;;  %v8831_v36 = vsel %vm6186_vm4, %v7060_v10, %v7010_v63  ;;  %v6055_v63 = vld [vmem:[%s6142_s26 + $0x6c] sm:$0xff]   ;;  %v5282_v6 = vld [vmem:[%s6142_s26 + $0x54] sm:$0xe] }
  0xb7   : > { %v5254_v51 = vcombine.low %v8831_v36, %v2337_v20  ;;  %v2351_v53 = vsel %vm6186_vm4, %v7132_v12, %v7074_v3  ;;  %v2361_v60 = vsel %vm6186_vm4, %v2356_v43, %v7119_v48  ;;  %v2375_v25 = vsel %vm6186_vm4, %v2370_v46, %v7109_v9  ;;  %v7212_v12 = vld [vmem:[%s6142_s26 + $0xc] sm:$0xe] }
  0xb8   : > { %v2385_v10 = vsel %vm6186_vm4, %v2380_v38, %v2384_v32  ;;  %v2399_v3 = vsel %vm6186_vm4, %v2394_v24, %v7129_v55  ;;  %v2409_v20 = vsel %vm6186_vm4, %v2404_v34, %v2408_v14  ;;  %v2451_v48 = vor.u32 %v2450_v11, %v7159_v39  ;;  %v5279_v55 = vld [vmem:[%s6142_s26 + $0x30] sm:$0xe]  ;;  %v5280_v14 = vld [vmem:[%s6142_s26 + $0x3c] sm:$0xe] }
  0xb9   : > { %5855 = vmatmul.mubr.msk.bf16.gmra.mxu0 %vm708_vm3, %v7043_v62  ;;  %v2423_v62 = vsel %vm6186_vm4, %v2418_v19, %v2422_v42  ;;  %v2433_v38 = vsel %vm6186_vm4, %v2428_v33, %v2432_v2  ;;  %v7219_v9 = vrot.slane %v2441_v57, 4  ;;  %v2816_v46 = vrot.slane %v6703_v49, 5  ;;  %v6056_v57 = vld [vmem:[%s6142_s26 + $0x78] sm:$0xff]  }
  0xba   : > { %5858 = vmatprep.mubr.msk.bf16.mxu0 %vm708_vm3, %v5252_v18  ;;  %v7223_v43 = vcombine.low %v2351_v53, %v2361_v60  ;;  %v7225_v32 = vrot.slane %v2451_v48, 4  ;;  %v7227_v52 = vrot.slane %v2454_v58, 5  ;;  %v5294_v7 = vrot.slane %v5278_v13, 9  ;;  %v6057_v53 = vld [vmem:[%s6142_s26 + $0x84] sm:$0xff]   ;;  %v5283_v13 = vld [vmem:[%s6142_s26 + $0x60] sm:$0xe] }
  0xbb   : > { %v7230_v54 = vcombine.low %v2375_v25, %v2385_v10  ;;  %v7232_v42 = vcombine.low %v2399_v3, %v2409_v20  ;;  %v5292_v37 = vrot.slane %v7212_v12, 9  ;;  %v2830_v24 = vrot.slane %v6752_v44, 5  ;;  %v6063_v49 = vld [vmem:[%s6142_s26 + $0x18] sm:$0xff]  }
  0xbc   : > { %5821 = vmatmul.mubr.msk.bf16.gmra.mxu1 %vm708_vm3, %v6054_v23  ;;  %v7238_v15 = vcombine.low %v2423_v62, %v2433_v38  ;;  %v2819_v34 = vrot.slane %v6739_v47, 5  ;;  %v2833_v29 = vrot.slane %v6767_v21, 5  ;;  %v5295_v56 = vrot.slane %v5279_v55, 9  ;;  %v5285_v55 = vld [vmem:[%s6142_s26 + $0x78] sm:$0xe] }
  0xbd   : > { %5824 = vmatprep.mubr.msk.bf16.mxu1 %vm708_vm3, %v6055_v63  ;;  %v2447_v16 = vsel %vm6186_vm4, %v7219_v9, %v7159_v39  ;;  %v7249_v44 = vrot.slane %v2816_v46, 4  ;;  %v7253_v18 = vsel %vm6472_vm7, %v5294_v7, %v2830_v24  ;;  %v2832_v19 = vrot.slane %v2830_v24, 4 }
  0xbe   : > { %v2457_v21 = vsel %vm6186_vm4, %v7225_v32, %v7227_v52  ;;  %v2837_v33 = vrot.slane %v6790_v5, 5  ;;  %v2840_v2 = vrot.slane %v6798_v41, 5  ;;  %v5296_v59 = vrot.slane %v5280_v14, 9  ;;  %v6062_v52 = vld [vmem:[%s6142_s26 + $0xc0] sm:$0xff]  }
  0xbf   : > { %v7265_v11 = vsel %vm6472_vm7, %v2832_v19, %v2833_v29  ;;  %v2844_v58 = vrot.slane %v6807_v61, 5  ;;  %v2847_v23 = vrot.slane %v6859_v50, 5  ;;  %v5297_v36 = vrot.slane %v5281_v26, 9  ;;  %v5286_v19 = vld [vmem:[%s6142_s26 + $0x84] sm:$0xe] }
  0xc0   : > { %v5310_v5 = vcombine.low %v7253_v18, %v7265_v11  ;;  %v7275_v41 = vsel %vm6472_vm7, %v5295_v56, %v2837_v33  ;;  %v2839_v60 = vrot.slane %v2837_v33, 4  ;;  %v2851_v25 = vrot.slane %v6825_v1, 5 }
  0xc1   : > { %5859 = vmatmul.mubr.msk.bf16.gmra.mxu0 %vm708_vm3, %v5253_v17  ;;  %v7282_v61 = vsel %vm6472_vm7, %v5296_v59, %v2844_v58  ;;  %v2846_v50 = vrot.slane %v2844_v58, 4  ;;  %v2854_v17 = vrot.slane %v6873_v8, 5  ;;  %v5298_v63 = vrot.slane %v5282_v6, 9  ;;  %v8832_v59 = vld [vmem:[#allocation4_spill] sm:$0xff] }
  0xc2   : > { %5862 = vmatprep.mubr.msk.bf16.mxu0 %vm708_vm3, %v5254_v51  ;;  %v7287_v10 = vsel %vm6472_vm7, %v2839_v60, %v2840_v2  ;;  %v7291_v3 = vsel %vm6472_vm7, %v5297_v36, %v2851_v25  ;;  %v2853_v1 = vrot.slane %v2851_v25, 4  ;;  %v2858_v20 = vrot.slane %v6868_v40, 5  ;;  %v5284_v51 = vld [vmem:[%s6142_s26 + $0x6c] sm:$0xe]  ;;  %v6058_v58 = vld [vmem:[%s6142_s26 + $0x90] sm:$0xff]  }
  0xc3   : > { %v5311_v48 = vcombine.low %v7275_v41, %v7287_v10  ;;  %v7300_v8 = vsel %vm6472_vm7, %v2846_v50, %v2847_v23  ;;  %v2861_v62 = vrot.slane %v6890_v35, 5  ;;  %v5299_v38 = vrot.slane %v5283_v13, 9  ;;  %v8833_v36 = vld [vmem:[#allocation3_spill] sm:$0xff]  ;;  %v5287_v60 = vld [vmem:[%s6142_s26 + $0x90] sm:$0xe]  ;;  %v8834_v50 = vld [vmem:[#allocation6_spill] sm:$0xff] }
  0xc4   : > { %5825 = vmatmul.mubr.msk.bf16.gmra.mxu1 %vm708_vm3, %v6056_v57  ;;  %v5312_v40 = vcombine.low %v7282_v61, %v7300_v8  ;;  %v7309_v7 = vsel %vm6472_vm7, %v2853_v1, %v2854_v17  ;;  %v7313_v24 = vsel %vm6472_vm7, %v5298_v63, %v2858_v20  ;;  %v2860_v14 = vrot.slane %v2858_v20, 4 }
  0xc5   : > { %5828 = vmatprep.mubr.msk.bf16.mxu1 %vm708_vm3, %v6057_v53  ;;  %v5313_v35 = vcombine.low %v7291_v3, %v7309_v7  ;;  %v2865_v29 = vrot.slane %v6903_v28, 5  ;;  %v2868_v56 = vrot.slane %v6925_v30, 5  ;;  %v5300_v26 = vrot.slane %v5284_v51, 9  ;;  %v8835_v51 = vld [vmem:[#allocation5_spill] sm:$0xff]  ;;  %v5416_v3 = vld [vmem:[%s6142_s26 + $0x48] sm:$0xf] }
  0xc6   : > { %v7322_v33 = vsel %vm6472_vm7, %v2860_v14, %v2861_v62  ;;  %v2872_v2 = vrot.slane %v6922_v27, 5  ;;  %v2875_v6 = vrot.slane %v8832_v59, 5  ;;  %v5301_v57 = vrot.slane %v5285_v55, 9  ;;  %v6059_v27 = vld [vmem:[%s6142_s26 + $0x9c] sm:$0xff]   ;;  %v8843_v55 = vld [vmem:[#allocation15_spill] sm:$0xff] }
  0xc7   : > { %v5314_v23 = vcombine.low %v7313_v24, %v7322_v33  ;;  %v7331_v28 = vsel %vm6472_vm7, %v5299_v38, %v2865_v29  ;;  %v2867_v30 = vrot.slane %v2865_v29, 4  ;;  %v2879_v53 = vrot.slane %v8833_v36, 5  ;;  %v5288_v38 = vld [vmem:[%s6142_s26 + $0x9c] sm:$0xe]  ;;  %v8838_v36 = vld [vmem:[#allocation12_spill] sm:$0xff] }
  0xc8   : > { %v7340_v25 = vsel %vm6472_vm7, %v5300_v26, %v2872_v2  ;;  %v2874_v13 = vrot.slane %v2872_v2, 4  ;;  %v2882_v17 = vrot.slane %v8834_v50, 5  ;;  %v5302_v63 = vrot.slane %v5286_v19, 9  ;;  %v5289_v26 = vld [vmem:[%s6142_s26 + $0xa8] sm:$0xe] }
  0xc9   : > { %5863 = vmatmul.mubr.msk.bf16.gmra.mxu0 %vm708_vm3, %v7223_v43  ;;  %v7347_v1 = vsel %vm6472_vm7, %v2867_v30, %v2868_v56  ;;  %v7351_v43 = vsel %vm6472_vm7, %v5301_v57, %v2879_v53  ;;  %v2881_v20 = vrot.slane %v2879_v53, 4  ;;  %v2886_v62 = vrot.slane %v8835_v51, 5  ;;  %v5291_v57 = vld [vmem:[%s6142_s26 + $0xc0] sm:$0xe]  ;;  %v6060_v19 = vld [vmem:[%s6142_s26 + $0xa8] sm:$0xff]  }
  0xca   : > { %5866 = vmatprep.mubr.msk.bf16.mxu0 %vm708_vm3, %v7230_v54  ;;  %v7359_v14 = vsel %vm6472_vm7, %v2874_v13, %v2875_v6  ;;  %v8836_v54 = vld [vmem:[#allocation8_spill] sm:$0xff]  ;;  %v5303_v56 = vrot.slane %v5287_v60, 9  ;;  %v2896_v53 = vrot.slane %v8838_v36, 5  ;;  %v5304_v60 = vrot.slane %v5288_v38, 9  ;;  %v8841_v38 = vld [vmem:[#allocation13_spill] sm:$0xff] }
  0xcb   : > { %v2889_v29 = vrot.slane %v8836_v54, 5  ;;  %v7368_v2 = vsel %vm6472_vm7, %v2881_v20, %v2882_v17  ;;  %v7372_v59 = vsel %vm6472_vm7, %v5302_v63, %v2886_v62  ;;  %v2888_v6 = vrot.slane %v2886_v62, 4  ;;  %v5290_v13 = vld [vmem:[%s6142_s26 + $0xb4] sm:$0xe]  ;;  %v8839_v17 = vld [vmem:[#allocation10_spill] sm:$0xff] }
  0xcc   : > { %5829 = vmatmul.mubr.msk.bf16.gmra.mxu1 %vm708_vm3, %v6058_v58  ;;  %v8837_v58 = vld [vmem:[#allocation7_spill] sm:$0xff]  ;;  %v2900_v63 = vrot.slane %v8839_v17, 5  ;;  %v8840_v20 = vld [vmem:[#allocation2_spill] sm:$0xff]  ;;  %v5305_v62 = vrot.slane %v5289_v26, 9  ;;  %v2907_v36 = vrot.slane %v8841_v38, 5  ;;  %v5306_v26 = vrot.slane %v5290_v13, 9 }
  0xcd   : > { %5832 = vmatprep.mubr.msk.bf16.mxu1 %vm708_vm3, %v6059_v27  ;;  %v2893_v30 = vrot.slane %v8837_v58, 5  ;;  %v7382_v50 = vsel %vm6472_vm7, %v2888_v6, %v2889_v29  ;;  %v2903_v51 = vrot.slane %v8840_v20, 5  ;;  %v8842_v17 = vld [vmem:[#allocation14_spill] sm:$0xff]  ;;  %v6061_v27 = vld [vmem:[%s6142_s26 + $0xb4] sm:$0xff]   ;;  %v2820_v39 = vsel %vm6472_vm7, %v7249_v44, %v2819_v34  ;;  %v7599_v7 = vld [vmem:[%s6142_s26 + $0x4c] sm:$0xf] }
  0xce   : > { %v7397_v29 = vsel %vm6472_vm7, %v5304_v60, %v2900_v63  ;;  %v2902_v6 = vrot.slane %v2900_v63, 4  ;;  %v2910_v20 = vrot.slane %v8842_v17, 5  ;;  %v2909_v38 = vrot.slane %v2907_v36, 4  ;;  %v6080_v44 = vld [vmem:[%s6142_s26 + $0x20] sm:$0x1] }
  0xcf   : > { %v7390_v54 = vsel %vm6472_vm7, %v5303_v56, %v2893_v30  ;;  %v2895_v58 = vrot.slane %v2893_v30, 4  ;;  %v7409_v30 = vsel %vm6472_vm7, %v5305_v62, %v2907_v36  ;;  %v2914_v60 = vrot.slane %v8843_v55, 5 }
  0xd0   : > { %v5307_v63 = vrot.slane %v5291_v57, 9  ;;  %v7425_v55 = vsel %vm6472_vm7, %v2909_v38, %v2910_v20  ;;  %v2921_v57 = vrot.slane %v7144_v22, 5  ;;  %v2817_v22 = vsel %vm6472_vm7, %v5292_v37, %v2816_v46  ;;  %v6065_v38 = vld [vmem:[%s6142_s26 + $0x30] sm:$0xff]  }
  0xd1   : > { %5867 = vmatmul.mubr.msk.bf16.gmra.mxu0 %vm708_vm3, %v7232_v42  ;;  %v7405_v56 = vsel %vm6472_vm7, %v2895_v58, %v2896_v53  ;;  %v7418_v42 = vsel %vm6472_vm7, %v2902_v6, %v2903_v51  ;;  %v2917_v53 = vrot.slane %v7135_v4, 5  ;;  %v2916_v58 = vrot.slane %v2914_v60, 4 }
  0xd2   : > { %5870 = vmatprep.mubr.msk.bf16.mxu0 %vm708_vm3, %v7238_v15  ;;  %v7429_v15 = vsel %vm6472_vm7, %v5306_v26, %v2914_v60  ;;  %v2924_v51 = vrot.slane %v7156_v45, 5  ;;  %v5277_v45 = vld [vmem:[%s6142_s26 + $0x18] sm:$0xe]  ;;  %v7469_v9 = vsel %vm6472_vm7, %v5307_v63, %v2921_v57  ;;  %v2923_v46 = vrot.slane %v2921_v57, 4  ;;  %v6064_v26 = vld [vmem:[%s6142_s26 + $0x24] sm:$0xff]  }
  0xd3   : > { %v7457_v32 = vsel %vm6472_vm7, %v2916_v58, %v2917_v53  ;;  %v5293_v37 = vrot.slane %v5277_v45, 9  ;;  %v5308_v34 = vcombine.low %v2817_v22, %v2820_v39  ;;  %v8844_v60 = vld [vmem:[#allocation9_spill] sm:$0xff] }
  0xd4   : > { %5833 = vmatmul.mubr.msk.bf16.gmra.mxu1 %vm708_vm3, %v6060_v19  ;;  %v5259_v19 = vcombine.low %v2447_v16, %v2457_v21  ;;  %v7474_v47 = vsel %vm6472_vm7, %v2923_v46, %v2924_v51  ;;  %v2826_v21 = vrot.slane %v6080_v44, 5  ;;  %v4572_v53 = vsel %vm757_vm0, %v8844_v60, 0  ;;  %v5404_v63 = vld [vmem:[%s6142_s26 + $0x18] sm:$0xf]  ;;  %v5405_v57 = vld [vmem:[%s6142_s26 + $0x1c] sm:$0xf] }
  0xd5   : > { %5836 = vmatprep.mubr.msk.bf16.mxu1 %vm708_vm3, %v6061_v27  ;;  %v6079_v27 = vld [vmem:[%s6142_s26 + $0x1c] sm:$0xf]  ;;  %v5407_v51 = vld [vmem:[%s6142_s26 + $0x24] sm:$0xf]  ;;  %v3624_v45 = vshrl.u32 %v5404_v63, 16  ;;  %v3633_v39 = vshll.u32 %v5405_v57, 16 }
  0xd6   : > { %v2823_v36 = vrot.slane %v6079_v27, 5  ;;  %v3627_v27 = vshll.u32 %v5404_v63, 16  ;;  %v3648_v46 = vshrl.u32 %v5407_v51, 16  ;;  %v6067_v44 = vld [vmem:[%s6142_s26 + $0x48] sm:$0xff]   ;;  %v5484_v60 = vld [vmem:[%s6142_s26 + $0x18] sm:$0xe] }
  0xd7   : > { %v7515_v63 = vld [vmem:[%s6142_s26 + $0x2c] sm:$0x1] }
  0xd8   : > { %v2825_v16 = vrot.slane %v2823_v36, 4  ;;  %v2824_v17 = vsel %vm6472_vm7, %v5293_v37, %v2823_v36  ;;  %v7499_v36 = vld [vmem:[%s6142_s26 + $0x28] sm:$0xf]  ;;  %v6066_v37 = vld [vmem:[%s6142_s26 + $0x3c] sm:$0xff]   ;;  %v3650_v18 = vrot.slane %v3648_v46, 4 }
  0xd9   : > { %5871 = vmatmul.mubr.msk.bf16.gmra.mxu0 %vm708_vm3, %v5259_v19  ;;  %v8845_v19 = vld [vmem:[#allocation11_spill] sm:$0xff] }
  0xda   : > { %5910 = vmatprep.mubr.msk.bf16.mxu0 %vm708_vm3, %v6063_v49  ;;  %v2827_v20 = vsel %vm6472_vm7, %v2825_v16, %v2826_v21  ;;  %v4104_v22 = vsel %vm757_vm0, %v8845_v19, 0  ;;  %v3637_v49 = vshrl.u32 %v5405_v57, 16  ;;  %v3661_v16 = vshrl.u32 %v7499_v36, 16  ;;  %v5406_v21 = vld [vmem:[%s6142_s26 + $0x20] sm:$0x1] }
  0xdb   : > { %v5309_v58 = vcombine.low %v2824_v17, %v2827_v20  ;;  %v3626_v17 = vrot.slane %v3624_v45, 4  ;;  %v3629_v20 = vrot.slane %v3627_v27, 5  ;;  %v5410_v19 = vld [vmem:[%s6142_s26 + $0x30] sm:$0xf]  ;;  %v3643_v45 = vshll.u32 %v5406_v21, 16 }
  0xdc   : > { %5837 = vmatmul.mubr.msk.bf16.gmra.mxu1 %vm708_vm3, %v6062_v52  ;;  %v3651_v52 = vshll.u32 %v5407_v51, 16  ;;  %v3663_v51 = vrot.slane %v3661_v16, 4  ;;  %v5500_v27 = vrot.slane %v5484_v60, 9  ;;  %v4368_v46 = vrot.slane %v5406_v21, 5  ;;  %v5485_v16 = vld [vmem:[%s6142_s26 + $0x24] sm:$0xe] }
  0xdd   : > { %5876 = vmatprep.mubr.msk.bf16.mxu1 %vm708_vm3, %v5308_v34  ;;  %v3657_v34 = vshll.u32 %v7499_v36, 16  ;;  %v6068_v21 = vld [vmem:[%s6142_s26 + $0x54] sm:$0xff]   ;;  %v3675_v10 = vshll.u32 %v5410_v19, 16  ;;  %v6069_v60 = vld [vmem:[%s6142_s26 + $0x60] sm:$0xff]  }
  0xde   : > { %v3653_v11 = vrot.slane %v3651_v52, 5  ;;  %v3667_v52 = vshll.u32 %v7515_v63, 16 }
  0xe1   : > { %5911 = vmatmul.mubr.msk.bf16.vlgmr.msra.gmra.mxu0 %vm708_vm3, %v6064_v26  ;;  %v7511_v26 = vrot.slane %v3633_v39, 5 }
  0xe2   : > { %5977 = vmatpush3.bf16.msra.mxu0 %v4572_v53  ;;  %5914 = vmatprep.mubr.msk.bf16.mxu0 %vm708_vm3, %v6065_v38  ;;  %v3639_v38 = vrot.slane %v3637_v49, 4  ;;  %v4365_v53 = vrot.slane %v5405_v57, 5  ;;  %v7525_v57 = vld [vmem:[%s6142_s26 + $0x34] sm:$0xf] }
  0xe4   : > { %5877 = vmatmul.mubr.msk.bf16.vlgmr.msra.gmra.mxu1 %vm708_vm3, %v5309_v58  ;;  %v7520_v58 = vrot.slane %v3657_v34, 5  ;;  %v3640_v39 = vor.u32 %v3639_v38, %v7511_v26  ;;  %v4367_v49 = vrot.slane %v4365_v53, 4  ;;  %v3654_v34 = vor.u32 %v3653_v11, %v3650_v18 }
  0xe5   : > { %5943 = vmatpush3.bf16.msra.mxu1 %v4104_v22  ;;  %5880 = vmatprep.mubr.msk.bf16.mxu1 %vm708_vm3, %v5310_v5  ;;  %v7518_v5 = vpop.f32.mrf.mxu0  ;;  %v3630_v22 = vor.u32 %v3629_v20, %v3626_v17  ;;  %v3672_v17 = vshrl.u32 %v5410_v19, 16  ;;  %v3685_v38 = vshrl.u32 %v7525_v57, 16  ;;  %v7550_v61 = vsel %vm6472_vm7, %v5500_v27, %v4365_v53  ;;  %v5413_v19 = vld [vmem:[%s6142_s26 + $0x3c] sm:$0xf] }
  0xe6   : > { %v3664_v41 = vor.u32 %v3663_v51, %v7520_v58  ;;  %v3641_v8 = vrot.slane %v3640_v39, 4  ;;  %v3669_v11 = vrot.slane %v3667_v52, 5  ;;  %v5501_v51 = vrot.slane %v5485_v16, 9  ;;  %v7564_v39 = vld [vmem:[%s6142_s26 + $0x38] sm:$0x1] }
  0xe7   : > { %v7542_v20 = vpop.f32.mrf.mxu0  ;;  %v3631_v18 = vrot.slane %v3630_v22, 4  ;;  %v3655_v12 = vrot.slane %v3654_v34, 4  ;;  %v4375_v22 = vrot.slane %v7515_v63, 5  ;;  %v3687_v52 = vrot.slane %v3685_v38, 4 }
  0xe8   : > { %v3665_v27 = vrot.slane %v3664_v41, 4  ;;  %v3696_v34 = vshrl.u32 %v5413_v19, 16  ;;  %v3699_v16 = vshll.u32 %v5413_v19, 16  ;;  %v7577_v41 = vld [vmem:[%s6142_s26 + $0x40] sm:$0xf] }
  0xe9   : > { %5915 = vmatmul.mubr.msk.bf16.gmra.mxu0 %vm708_vm3, %v6066_v37  ;;  %v7561_v53 = vpop.f32.mrf.mxu0  ;;  %v3636_v63 = vsel %vm6186_vm4, %v3631_v18, %v7511_v26  ;;  %v3660_v26 = vsel %vm6186_vm4, %v3655_v12, %v7520_v58  ;;  %v5486_v18 = vld [vmem:[%s6142_s26 + $0x30] sm:$0xe]  ;;  %v3705_v24 = vshll.u32 %v7577_v41, 16  ;;  %v3709_v33 = vshrl.u32 %v7577_v41, 16 }
  0xea   : > { %5918 = vmatprep.mubr.msk.bf16.mxu0 %vm708_vm3, %v6067_v44  ;;  %v7533_v37 = vpop.f32.mrf.mxu1  ;;  %v4372_v44 = vrot.slane %v7499_v36, 5  ;;  %v3645_v36 = vrot.slane %v3643_v45, 5  ;;  %v3674_v45 = vrot.slane %v3672_v17, 4  ;;  %v3670_v58 = vsel %vm6186_vm4, %v3665_v27, %v3669_v11 }
  0xeb   : > { %8846 = vst [vmem:[#allocation4_spill] sm:$0xff] %v7533_v37  ;;  %v7606_v12 = vpop.f32.mrf.mxu0  ;;  %v3701_v19 = vrot.slane %v3699_v16, 5  ;;  %v3733_v11 = vshrl.u32 %v7599_v7, 16 }
  0xec   : > { %5881 = vmatmul.mubr.msk.bf16.gmra.mxu1 %vm708_vm3, %v5311_v48  ;;  %v3681_v48 = vshll.u32 %v7525_v57, 16  ;;  %v7557_v6 = vpop.f32.mrf.mxu1  ;;  %v4374_v4 = vrot.slane %v4372_v44, 4  ;;  %v3646_v17 = vsel %vm6186_vm4, %v3641_v8, %v3645_v36  ;;  %v4379_v36 = vrot.slane %v7525_v57, 5  ;;  %v6071_v8 = vld [vmem:[%s6142_s26 + $0x78] sm:$0xff]  }
  0xed   : > { %5884 = vmatprep.mubr.msk.bf16.mxu1 %vm708_vm3, %v5312_v40  ;;  %v7554_v40 = vsel %vm6472_vm7, %v4367_v49, %v4368_v46  ;;  %8847 = vst [vmem:[#allocation3_spill] sm:$0xff] %v7557_v6  ;;  %v3677_v49 = vrot.slane %v3675_v10, 5  ;;  %v7620_v27 = vcombine.low %v3636_v63, %v3646_v17  ;;  %v7622_v57 = vcombine.low %v3660_v26, %v3670_v58  ;;  %v7636_v17 = vld [vmem:[%s6142_s26 + $0x58] sm:$0xf]  ;;  %v7642_v58 = vld [vmem:[%s6142_s26 + $0x44] sm:$0x1] }
  0xee   : > { %v7566_v46 = vrot.slane %v3681_v48, 5  ;;  %v7583_v10 = vpop.f32.mrf.mxu1  ;;  %v7590_v48 = vsel %vm6472_vm7, %v5501_v51, %v4372_v44  ;;  %v7594_v38 = vsel %vm6472_vm7, %v4374_v4, %v4375_v22  ;;  %v3698_v51 = vrot.slane %v3696_v34, 4  ;;  %v5419_v34 = vld [vmem:[%s6142_s26 + $0x54] sm:$0xf] }
  0xef   : > { %8848 = vst [vmem:[#allocation6_spill] sm:$0xff] %v7583_v10  ;;  %v3678_v44 = vor.u32 %v3677_v49, %v3674_v45  ;;  %v3723_v22 = vshll.u32 %v5416_v3, 16  ;;  %v4381_v13 = vrot.slane %v4379_v36, 4  ;;  %v4382_v63 = vrot.slane %v7564_v39, 5  ;;  %v5487_v49 = vld [vmem:[%s6142_s26 + $0x3c] sm:$0xe] }
  0xf0   : > { %v3688_v4 = vor.u32 %v3687_v52, %v7566_v46  ;;  %v7618_v45 = vpop.f32.mrf.mxu1  ;;  %v5502_v52 = vrot.slane %v5486_v18, 9  ;;  %v3702_v18 = vor.u32 %v3701_v19, %v3698_v51  ;;  %v8851_v6 = vcombine.low %v7331_v28, %v7347_v1 }
  0xf1   : > { %5919 = vmatmul.mubr.msk.bf16.gmra.mxu0 %vm708_vm3, %v6068_v21  ;;  %v3729_v21 = vshll.u32 %v7599_v7, 16  ;;  %8849 = vst [vmem:[#allocation5_spill] sm:$0xff] %v7618_v45  ;;  %v3725_v45 = vrot.slane %v3723_v22, 5  ;;  %v3744_v51 = vshrl.u32 %v5419_v34, 16  ;;  %v3747_v19 = vshll.u32 %v5419_v34, 16 }
  0xf2   : > { %5922 = vmatprep.mubr.msk.bf16.mxu0 %vm708_vm3, %v6069_v60  ;;  %v3691_v60 = vshll.u32 %v7564_v39, 16  ;;  %v7639_v26 = vrot.slane %v3688_v4, 4  ;;  %v3735_v39 = vrot.slane %v3733_v11, 4  ;;  %v7677_v22 = vsel %vm6472_vm7, %v4381_v13, %v4382_v63 }
  0xf3   : > { %v7647_v10 = vrot.slane %v3729_v21, 5  ;;  %v8853_v21 = vcombine.low %v7340_v25, %v7359_v14  ;;  %v4386_v25 = vrot.slane %v7577_v41, 5  ;;  %v6073_v14 = vld [vmem:[%s6142_s26 + $0x90] sm:$0xff]   ;;  %v5503_v1 = vrot.slane %v5487_v49, 9  ;;  %v5422_v41 = vld [vmem:[%s6142_s26 + $0x60] sm:$0xf] }
  0xf4   : > { %5885 = vmatmul.mubr.msk.bf16.gmra.mxu1 %vm708_vm3, %v5313_v35  ;;  %v6070_v35 = vld [vmem:[%s6142_s26 + $0x6c] sm:$0xff]   ;;  %v7632_v62 = vrot.slane %v3691_v60, 5  ;;  %v3746_v37 = vrot.slane %v3744_v51, 4 }
  0xf5   : > { %5888 = vmatprep.mubr.msk.bf16.mxu1 %vm708_vm3, %v5314_v23  ;;  %v3720_v23 = vshrl.u32 %v5416_v3, 16  ;;  %v7630_v3 = vrot.slane %v3678_v44, 4  ;;  %v3711_v44 = vrot.slane %v3709_v33, 4  ;;  %v3757_v33 = vshrl.u32 %v7636_v17, 16 }
  0xf6   : > { %v7628_v16 = vpop.f32.mrf.mxu0  ;;  %v3736_v13 = vor.u32 %v3735_v39, %v7647_v10  ;;  %v4393_v39 = vrot.slane %v7599_v7, 5  ;;  %v8857_v7 = vcombine.low %v7351_v43, %v7368_v2  ;;  %v8859_v43 = vcombine.low %v7372_v59, %v7382_v50  ;;  %v6074_v2 = vld [vmem:[%s6142_s26 + $0x9c] sm:$0xff]  }
  0xf7   : > { %8850 = vst [vmem:[#allocation8_spill] sm:$0xff] %v7628_v16  ;;  %v3722_v60 = vrot.slane %v3720_v23, 4  ;;  %v6072_v23 = vld [vmem:[%s6142_s26 + $0x84] sm:$0xff]   ;;  %v7704_v16 = vld [vmem:[%s6142_s26 + $0x5c] sm:$0x1]  ;;  %v4400_v59 = vrot.slane %v7636_v17, 5 }
  0xf8   : > { %v7665_v28 = vpop.f32.mrf.mxu0 }
  0xf9   : > { %5923 = vmatmul.mubr.msk.bf16.gmra.mxu0 %vm708_vm3, %v6070_v35  ;;  %v7644_v35 = vrot.slane %v3705_v24, 5  ;;  %v3753_v24 = vshll.u32 %v7636_v17, 16  ;;  %8854 = vst [vmem:[#allocation12_spill] sm:$0xff] %v7665_v28  ;;  %v3749_v28 = vrot.slane %v3747_v19, 5 }
  0xfa   : > { %5926 = vmatprep.mubr.msk.bf16.mxu0 %vm708_vm3, %v6071_v8  ;;  %v7653_v4 = vpop.f32.mrf.mxu1  ;;  %v7656_v8 = vld [vmem:[%s6142_s26 + $0x50] sm:$0x1]  ;;  %v7697_v49 = vpop.f32.mrf.mxu0 }
  0xfb   : > { %8852 = vst [vmem:[#allocation7_spill] sm:$0xff] %v7653_v4  ;;  %v3712_v34 = vor.u32 %v3711_v44, %v7644_v35  ;;  %v7687_v4 = vrot.slane %v3702_v18, 4  ;;  %v7694_v11 = vrot.slane %v3753_v24, 5  ;;  %v3759_v44 = vrot.slane %v3757_v33, 4  ;;  %8856 = vst [vmem:[#allocation2_spill] sm:$0xff] %v7697_v49 }
  0xfc   : > { %5889 = vmatmul.mubr.msk.bf16.gmra.mxu1 %vm708_vm3, %v8851_v6  ;;  %v7673_v6 = vsel %vm6472_vm7, %v5502_v52, %v4379_v36  ;;  %v3726_v36 = vor.u32 %v3725_v45, %v3722_v60  ;;  %v3739_v52 = vshll.u32 %v7656_v8, 16  ;;  %v7692_v63 = vpop.f32.mrf.mxu1  ;;  %v4388_v18 = vrot.slane %v4386_v25, 4  ;;  %v5488_v24 = vld [vmem:[%s6142_s26 + $0x48] sm:$0xe] }
  0xfd   : > { %5892 = vmatprep.mubr.msk.bf16.mxu1 %vm708_vm3, %v8853_v21  ;;  %v3715_v21 = vshll.u32 %v7642_v58, 16  ;;  %8855 = vst [vmem:[#allocation10_spill] sm:$0xff] %v7692_v63  ;;  %v4389_v60 = vrot.slane %v7642_v58, 5  ;;  %v3713_v51 = vrot.slane %v3712_v34, 4  ;;  %v3768_v33 = vshrl.u32 %v5422_v41, 16 }
  0xfe   : > { %v7710_v63 = vsel %vm6472_vm7, %v5503_v1, %v4386_v25  ;;  %v3727_v45 = vrot.slane %v3726_v36, 4  ;;  %v3737_v49 = vrot.slane %v3736_v13, 4  ;;  %v3741_v58 = vrot.slane %v3739_v52, 5  ;;  %v7725_v36 = vld [vmem:[%s6142_s26 + $0x64] sm:$0xf]  ;;  %v7732_v13 = vpop.f32.mrf.mxu0 }
  0xff   : > { %v3717_v19 = vrot.slane %v3715_v21, 5  ;;  %v3708_v34 = vsel %vm6186_vm4, %v7687_v4, %v7644_v35  ;;  %v3750_v21 = vor.u32 %v3749_v28, %v3746_v37  ;;  %v3760_v1 = vor.u32 %v3759_v44, %v7694_v11  ;;  %8860 = vst [vmem:[#allocation14_spill] sm:$0xff] %v7732_v13  ;;  %v5489_v28 = vld [vmem:[%s6142_s26 + $0x54] sm:$0xe]  ;;  %v6078_v13 = vld [vmem:[%s6142_s26 + $0xcc] sm:$0xff]  }
 0x100   : > { %v3763_v25 = vshll.u32 %v7704_v16, 16  ;;  %v7736_v52 = vsel %vm6472_vm7, %v4388_v18, %v4389_v60  ;;  %v5504_v35 = vrot.slane %v5488_v24, 9  ;;  %v4395_v37 = vrot.slane %v4393_v39, 4 }
 0x101   : > { %5927 = vmatmul.mubr.msk.bf16.gmra.mxu0 %vm708_vm3, %v6072_v23  ;;  %v3771_v23 = vshll.u32 %v5422_v41, 16  ;;  %v4396_v4 = vrot.slane %v7656_v8, 5  ;;  %v6075_v41 = vld [vmem:[%s6142_s26 + $0xa8] sm:$0xff]   ;;  %v3718_v44 = vsel %vm6186_vm4, %v3713_v51, %v3717_v19  ;;  %v3770_v50 = vrot.slane %v3768_v33, 4 }
 0x102   : > { %5930 = vmatprep.mubr.msk.bf16.mxu0 %vm708_vm3, %v6073_v14  ;;  %v7716_v14 = vpop.f32.mrf.mxu1  ;;  %v3742_v18 = vsel %vm6186_vm4, %v3737_v49, %v3741_v58  ;;  %v3777_v60 = vshll.u32 %v7725_v36, 16  ;;  %v3781_v8 = vshrl.u32 %v7725_v36, 16  ;;  %v3761_v51 = vrot.slane %v3760_v1, 4  ;;  %v7754_v33 = vld [vmem:[%s6142_s26 + $0x68] sm:$0x1] }
 0x103   : > { %8858 = vst [vmem:[#allocation13_spill] sm:$0xff] %v7716_v14  ;;  %v3751_v14 = vrot.slane %v3750_v21, 4  ;;  %v3765_v17 = vrot.slane %v3763_v25, 5  ;;  %v5505_v19 = vrot.slane %v5489_v28, 9  ;;  %v8863_v49 = vsel %vm6186_vm4, %v7639_v26, %v7632_v62  ;;  %v5425_v25 = vld [vmem:[%s6142_s26 + $0x6c] sm:$0xf] }
 0x104   : > { %5893 = vmatmul.mubr.msk.bf16.gmra.mxu1 %vm708_vm3, %v8857_v7  ;;  %v3773_v7 = vrot.slane %v3771_v23, 5  ;;  %v7751_v24 = vpop.f32.mrf.mxu1  ;;  %v7775_v21 = vsel %vm6472_vm7, %v5504_v35, %v4393_v39  ;;  %v7779_v1 = vsel %vm6472_vm7, %v4395_v37, %v4396_v4  ;;  %v7782_v62 = vcombine.low %v3708_v34, %v3718_v44  ;;  %v5490_v4 = vld [vmem:[%s6142_s26 + $0x60] sm:$0xe]  ;;  %v5431_v44 = vld [vmem:[%s6142_s26 + $0x84] sm:$0xf] }
 0x105   : > { %5896 = vmatprep.mubr.msk.bf16.mxu1 %vm708_vm3, %v8859_v43  ;;  %v3732_v43 = vsel %vm6186_vm4, %v3727_v45, %v7647_v10  ;;  %8861 = vst [vmem:[#allocation15_spill] sm:$0xff] %v7751_v24  ;;  %v8864_v45 = vsel %vm6186_vm4, %v7630_v3, %v7566_v46  ;;  %v4402_v46 = vrot.slane %v4400_v59, 4  ;;  %v4403_v3 = vrot.slane %v7704_v16, 5 }
 0x106   : > { %v7769_v23 = vcombine.low %v8864_v45, %v8863_v49  ;;  %8865 = vst [vmem:[#allocation11_spill] sm:$0xff] %v7782_v62  ;;  %v3774_v26 = vor.u32 %v3773_v7, %v3770_v50  ;;  %v7789_v28 = vcombine.low %v3732_v43, %v3742_v18  ;;  %v7791_v39 = vrot.slane %v3777_v60, 5 }
 0x107   : > { %v7757_v10 = vpop.f32.mrf.mxu0  ;;  %v7793_v35 = vrot.slane %v3781_v8, 4  ;;  %v3787_v37 = vshll.u32 %v7754_v33, 16  ;;  %v8867_v34 = vcombine.low %v7390_v54, %v7405_v56  ;;  %v3756_v50 = vsel %vm6186_vm4, %v3751_v14, %v7694_v11  ;;  %v5428_v54 = vld [vmem:[%s6142_s26 + $0x78] sm:$0xf] }
 0x108   : > { %8862 = vst [vmem:[#allocation9_spill] sm:$0xff] %v7757_v10  ;;  %8866 = vst [vmem:[#allocation16_spill] sm:$0xff] %v7789_v28  ;;  %v3766_v7 = vsel %vm6186_vm4, %v3761_v51, %v3765_v17  ;;  %v7813_v43 = vsel %vm6472_vm7, %v5505_v19, %v4400_v59  ;;  %v8869_v56 = vcombine.low %v7397_v29, %v7418_v42  ;;  %v3792_v60 = vshrl.u32 %v5425_v25, 16  ;;  %v7825_v51 = vld [vmem:[%s6142_s26 + $0x7c] sm:$0xf]  ;;  %v6077_v59 = vld [vmem:[%s6142_s26 + $0xc0] sm:$0xff]  }
 0x109   : > { %5931 = vmatmul.mubr.msk.bf16.gmra.mxu0 %vm708_vm3, %v6074_v2  ;;  %v7787_v2 = vld [vmem:[%s6142_s26 + $0x70] sm:$0xf]  ;;  %v7820_v18 = vpop.f32.mrf.mxu0  ;;  %v3795_v8 = vshll.u32 %v5425_v25, 16  ;;  %v7830_v17 = vsel %vm6472_vm7, %v4402_v46, %v4403_v3  ;;  %v7832_v29 = vrot.slane %v3774_v26, 4  ;;  %v5506_v42 = vrot.slane %v5490_v4, 9 }
 0x10a   : > { %5934 = vmatprep.mubr.msk.bf16.mxu0 %vm708_vm3, %v6075_v41  ;;  %v6076_v41 = vld [vmem:[%s6142_s26 + $0xb4] sm:$0xff]   ;;  %8870 = vst [vmem:[#allocation18_spill] sm:$0xff] %v7820_v18  ;;  %v3801_v11 = vshll.u32 %v7787_v2, 16  ;;  %v3805_v14 = vshrl.u32 %v7787_v2, 16  ;;  %v4407_v19 = vrot.slane %v7725_v36, 5  ;;  %v7835_v49 = vcombine.low %v3756_v50, %v3766_v7 }
 0x10b   : > { %v3784_v45 = vor.u32 %v7793_v35, %v7791_v39  ;;  %v7839_v25 = vrot.slane %v3787_v37, 5  ;;  %v3816_v46 = vshrl.u32 %v5428_v54, 16  ;;  %v3819_v3 = vshll.u32 %v5428_v54, 16  ;;  %v7851_v4 = vld [vmem:[%s6142_s26 + $0x88] sm:$0xf]  ;;  %v7854_v35 = vpop.f32.mrf.mxu0 }
 0x10c   : > { %5897 = vmatmul.mubr.msk.bf16.gmra.mxu1 %vm708_vm3, %v8867_v34  ;;  %v7801_v16 = vpop.f32.mrf.mxu1  ;;  %8871 = vst [vmem:[#allocation19_spill] sm:$0xff] %v7835_v49  ;;  %v4410_v34 = vrot.slane %v7754_v33, 5  ;;  %v3825_v36 = vshll.u32 %v7825_v51, 16  ;;  %v3829_v26 = vshrl.u32 %v7825_v51, 16  ;;  %8873 = vst [vmem:[#allocation21_spill] sm:$0xff] %v7854_v35  ;;  %v3794_v33 = vrot.slane %v3792_v60, 4 }
 0x10d   : > { %8868 = vst [vmem:[#allocation17_spill] sm:$0xff] %v7801_v16  ;;  %5900 = vmatprep.mubr.msk.bf16.mxu1 %vm708_vm3, %v8869_v56  ;;  %v7843_v56 = vld [vmem:[%s6142_s26 + $0x74] sm:$0x1]  ;;  %v3797_v37 = vrot.slane %v3795_v8, 5  ;;  %v7856_v50 = vrot.slane %v3801_v11, 5  ;;  %v3807_v7 = vrot.slane %v3805_v14, 4  ;;  %v8874_v54 = vcombine.low %v7409_v30, %v7425_v55  ;;  %v7884_v49 = vpop.f32.mrf.mxu0 }
 0x10e   : > { %v7846_v58 = vpop.f32.mrf.mxu1  ;;  %v4409_v16 = vrot.slane %v4407_v19, 4  ;;  %v7869_v60 = vld [vmem:[%s6142_s26 + $0x80] sm:$0x1]  ;;  %v7872_v8 = vld [vmem:[%s6142_s26 + $0x6c] sm:$0xe]  ;;  %v3840_v11 = vshrl.u32 %v5431_v44, 16 }
 0x10f   : > { %8872 = vst [vmem:[#allocation20_spill] sm:$0xff] %v7846_v58  ;;  %v7865_v58 = vsel %vm6472_vm7, %v5506_v42, %v4407_v19  ;;  %v3843_v14 = vshll.u32 %v5431_v44, 16  ;;  %v3853_v24 = vshrl.u32 %v7851_v4, 16  ;;  %v3818_v19 = vrot.slane %v3816_v46, 4  ;;  %8876 = vst [vmem:[#allocation23_spill] sm:$0xff] %v7884_v49 }
 0x110   : > { %v7880_v42 = vpop.f32.mrf.mxu1  ;;  %v3821_v35 = vrot.slane %v3819_v3, 5  ;;  %v7882_v18 = vrot.slane %v3825_v36, 5  ;;  %v3831_v10 = vrot.slane %v3829_v26, 4  ;;  %v8877_v44 = vcombine.low %v7429_v15, %v7457_v32  ;;  %v7903_v32 = vld [vmem:[%s6142_s26 + $0x8c] sm:$0x1] }
 0x111   : > { %5935 = vmatmul.mubr.msk.bf16.gmra.mxu0 %vm708_vm3, %v6076_v41  ;;  %v3811_v41 = vshll.u32 %v7843_v56, 16  ;;  %8875 = vst [vmem:[#allocation22_spill] sm:$0xff] %v7880_v42  ;;  %v3798_v30 = vor.u32 %v3797_v37, %v3794_v33  ;;  %v3808_v55 = vor.u32 %v3807_v7, %v7856_v50  ;;  %v3835_v46 = vshll.u32 %v7869_v60, 16  ;;  %v5492_v33 = vld [vmem:[%s6142_s26 + $0x78] sm:$0xe] }
 0x112   : > { %5938 = vmatprep.mubr.msk.bf16.mxu0 %vm708_vm3, %v6077_v59  ;;  %v3849_v59 = vshll.u32 %v7851_v4, 16  ;;  %v7894_v3 = vrot.slane %v3784_v45, 4  ;;  %v7898_v36 = vsel %vm6472_vm7, %v4409_v16, %v4410_v34  ;;  %v5507_v26 = vrot.slane %v7872_v8, 9  ;;  %v7908_v42 = vpop.f32.mrf.mxu1  ;;  %v5434_v8 = vld [vmem:[%s6142_s26 + $0x90] sm:$0xf] }
 0x113   : > { %v4421_v15 = vrot.slane %v7825_v51, 5  ;;  %v3842_v37 = vrot.slane %v3840_v11, 4  ;;  %v3845_v7 = vrot.slane %v3843_v14, 5  ;;  %8878 = vst [vmem:[#allocation24_spill] sm:$0xff] %v7908_v42  ;;  %v3813_v45 = vrot.slane %v3811_v41, 5 }
 0x114   : > { %5901 = vmatmul.mubr.msk.bf16.gmra.mxu1 %vm708_vm3, %v8874_v54  ;;  %v4414_v54 = vrot.slane %v7787_v2, 5  ;;  %v7906_v2 = vrot.slane %v3849_v59, 5  ;;  %v4417_v49 = vrot.slane %v7843_v56, 5  ;;  %v3822_v16 = vor.u32 %v3821_v35, %v3818_v19  ;;  %v7917_v59 = vld [vmem:[%s6142_s26 + $0x94] sm:$0xf] }
 0x115   : > { %5904 = vmatprep.mubr.msk.bf16.mxu1 %vm708_vm3, %v8877_v44  ;;  %v3855_v44 = vrot.slane %v3853_v24, 4  ;;  %v3832_v34 = vor.u32 %v3831_v10, %v7882_v18  ;;  %v3799_v51 = vrot.slane %v3798_v30, 4  ;;  %v3809_v11 = vrot.slane %v3808_v55, 4 }
 0x116   : > { %v4416_v62 = vrot.slane %v4414_v54, 4  ;;  %v3837_v14 = vrot.slane %v3835_v46, 5  ;;  %v8879_v24 = vcombine.low %v7550_v61, %v7554_v40  ;;  %v5508_v56 = vrot.slane %v5492_v33, 9 }
 0x117   : > { %v4423_v35 = vrot.slane %v4421_v15, 4  ;;  %v4424_v10 = vrot.slane %v7869_v60, 5  ;;  %v3859_v41 = vshll.u32 %v7903_v32, 16  ;;  %v3856_v30 = vor.u32 %v3855_v44, %v7906_v2 }
 0x118   : > { %v3864_v55 = vshrl.u32 %v5434_v8, 16  ;;  %v3867_v46 = vshll.u32 %v5434_v8, 16  ;;  %v8881_v61 = vcombine.low %v7469_v9, %v7474_v47  ;;  %v3823_v40 = vrot.slane %v3822_v16, 4 }
 0x119   : > { %v7913_v28 = vpop.f32.mrf.mxu0  ;;  %5939 = vmatmul.mubr.msk.bf16.gmra.mxu0 %vm708_vm3, %v6078_v13  ;;  %v3846_v13 = vor.u32 %v3845_v7, %v3842_v37  ;;  %v3833_v33 = vrot.slane %v3832_v34, 4  ;;  %v3873_v60 = vshll.u32 %v7917_v59, 16  ;;  %v3790_v37 = vsel %vm6186_vm4, %v7894_v3, %v7839_v25 }
 0x11a   : > { %5978 = vmatprep.mubr.msk.bf16.mxu0 %vm708_vm3, %v8879_v24  ;;  %v3877_v24 = vshrl.u32 %v7917_v59, 16  ;;  %v3804_v9 = vsel %vm6186_vm4, %v3799_v51, %v7856_v50  ;;  %v7949_v47 = vsel %vm6472_vm7, %v5507_v26, %v4414_v54  ;;  %v7953_v7 = vsel %vm6472_vm7, %v4416_v62, %v4417_v49  ;;  %v5493_v54 = vld [vmem:[%s6142_s26 + $0x84] sm:$0xe]  ;;  %v8920_v31 = vld [vmem:[#allocation24_spill] sm:$0xff] }
 0x11b   : > { %v7925_v19 = vpop.f32.mrf.mxu0  ;;  %v7961_v25 = vsel %vm6472_vm7, %v5508_v56, %v4421_v15  ;;  %v7965_v50 = vsel %vm6472_vm7, %v4423_v35, %v4424_v10  ;;  %v3861_v3 = vrot.slane %v3859_v41, 5  ;;  %v3847_v62 = vrot.slane %v3846_v13, 4  ;;  %v7989_v13 = vld [vmem:[%s6142_s26 + $0x98] sm:$0x1] }
 0x11c   : > { %8880 = vst [vmem:[#allocation25_spill] sm:$0xff] %v7925_v19  ;;  %v7928_v42 = vpop.f32.mrf.mxu1  ;;  %5905 = vmatmul.mubr.msk.bf16.gmra.mxu1 %vm708_vm3, %v8881_v61  ;;  %v3857_v49 = vrot.slane %v3856_v30, 4  ;;  %v3866_v16 = vrot.slane %v3864_v55, 4  ;;  %v3869_v34 = vrot.slane %v3867_v46, 5  ;;  %v3828_v15 = vsel %vm6186_vm4, %v3823_v40, %v7882_v18  ;;  %v5437_v30 = vld [vmem:[%s6142_s26 + $0x9c] sm:$0xf] }
 0x11d   : > { %v7936_v19 = vpop.f32.mrf.mxu0  ;;  %5944 = vmatprep.mubr.msk.bf16.mxu1 %vm708_vm3, %v7620_v27  ;;  %v3814_v27 = vsel %vm6186_vm4, %v3809_v11, %v3813_v45  ;;  %v3838_v45 = vsel %vm6186_vm4, %v3833_v33, %v3837_v14  ;;  %v7977_v51 = vrot.slane %v3873_v60, 5  ;;  %v3879_v11 = vrot.slane %v3877_v24, 4  ;;  %v8020_v24 = vld [vmem:[%s6142_s26 + $0xa0] sm:$0xf] }
 0x11e   : > { %v7955_v44 = vpop.f32.mrf.mxu1  ;;  %v8882_v35 = vcombine.low %v7590_v48, %v7594_v38  ;;  %v5521_v10 = vcombine.low %v7813_v43, %v7830_v17  ;;  %v5522_v41 = vcombine.low %v7865_v58, %v7898_v36  ;;  %v5509_v18 = vrot.slane %v5493_v54, 9 }
 0x11f   : > { %v7968_v26 = vpop.f32.mrf.mxu0  ;;  %v4428_v14 = vrot.slane %v7851_v4, 5  ;;  %v8883_v48 = vcombine.low %v7673_v6, %v7677_v22  ;;  %v8884_v38 = vsel %vm6186_vm4, %v7832_v29, %v7791_v39  ;;  %v8005_v61 = vcombine.low %v3804_v9, %v3814_v27  ;;  %v5494_v29 = vld [vmem:[%s6142_s26 + $0x90] sm:$0xe]  ;;  %v8891_v4 = vld [vmem:[#allocation2_spill] sm:$0xff] }
 0x120   : > { %v7970_v8 = vpop.f32.mrf.mxu1  ;;  %v8003_v46 = vcombine.low %v8884_v38, %v3790_v37  ;;  %v8011_v60 = vcombine.low %v3828_v15, %v3838_v45  ;;  %v3852_v6 = vsel %vm6186_vm4, %v3847_v62, %v7906_v2  ;;  %v3862_v22 = vsel %vm6186_vm4, %v3857_v49, %v3861_v3 }
 0x121   : > { %v5776_v56 = vpop.f32.mrf.mxu0  ;;  %5979 = vmatmul.mubr.msk.bf16.vlgmr.msra.gmra.mxu0 %vm708_vm3, %v8882_v35  ;;  %v3870_v39 = vor.u32 %v3869_v34, %v3866_v16  ;;  %v3880_v9 = vor.u32 %v3879_v11, %v7977_v51  ;;  %v3883_v27 = vshll.u32 %v7989_v13, 16  ;;  %v3888_v54 = vshrl.u32 %v5437_v30, 16 }
 0x122   : > { %v7992_v55 = vpop.f32.mrf.mxu1  ;;  %5982 = vmatprep.mubr.msk.bf16.mxu0 %vm708_vm3, %v8883_v48  ;;  %v3891_v15 = vshll.u32 %v5437_v30, 16  ;;  %v8031_v3 = vsel %vm6472_vm7, %v5509_v18, %v4428_v14  ;;  %v4430_v62 = vrot.slane %v4428_v14, 4  ;;  %v4431_v49 = vrot.slane %v7903_v32, 5 }
 0x123   : > { %v1510_v33 = vpop.f32.mrf.mxu0  ;;  %v5510_v16 = vrot.slane %v5494_v29, 9  ;;  %v4435_v34 = vrot.slane %v7917_v59, 5  ;;  %v3897_v11 = vshll.u32 %v8020_v24, 16  ;;  %v3901_v35 = vshrl.u32 %v8020_v24, 16 }
 0x124   : > { %v5742_v37 = vpop.f32.mrf.mxu1  ;;  %5945 = vmatmul.mubr.msk.bf16.vlgmr.msra.gmra.mxu1 %vm708_vm3, %v7622_v57  ;;  %v8040_v48 = vcombine.low %v3852_v6, %v3862_v22  ;;  %v8042_v18 = vrot.slane %v3870_v39, 4  ;;  %v3881_v32 = vrot.slane %v3880_v9, 4  ;;  %v3885_v38 = vrot.slane %v3883_v27, 5  ;;  %v5440_v22 = vld [vmem:[%s6142_s26 + $0xa8] sm:$0xf] }
 0x125   : > { %v1096_v45 = vadd.f32 %v5742_v37, %v7518_v5  ;;  %v5777_v2 = vpop.f32.mrf.mxu0  ;;  %5948 = vmatprep.mubr.msk.bf16.mxu1 %vm708_vm3, %v7769_v23  ;;  %v3890_v29 = vrot.slane %v3888_v54, 4  ;;  %v3893_v59 = vrot.slane %v3891_v15, 5  ;;  %v4438_v6 = vrot.slane %v7989_v13, 5  ;;  %v8068_v27 = vld [vmem:[%s6142_s26 + $0xac] sm:$0xf] }
 0x126   : > { %v1087_v57 = vpop.f32.mrf.mxu1  ;;  %v3903_v9 = vrot.slane %v3901_v35, 4  ;;  %v8888_v35 = vld [vmem:[#allocation8_spill] sm:$0xff] }
 0x127   : > { %v8037_v5 = vadd.f32 %v5776_v56, %v1096_v45  ;;  %v1088_v23 = vadd.f32 %v1087_v57, %v7542_v20  ;;  %v1513_v30 = vpop.f32.mrf.mxu0  ;;  %v8885_v45 = vcombine.low %v7710_v63, %v7736_v52  ;;  %v8053_v20 = vsel %vm6472_vm7, %v4430_v62, %v4431_v49  ;;  %v5495_v62 = vld [vmem:[%s6142_s26 + $0x9c] sm:$0xe] }
 0x128   : > { %v5743_v14 = vpop.f32.mrf.mxu1  ;;  %v4437_v63 = vrot.slane %v4435_v34, 4  ;;  %v8065_v52 = vrot.slane %v3897_v11, 5  ;;  %v4442_v49 = vrot.slane %v8020_v24, 5  ;;  %v3921_v24 = vshll.u32 %v8068_v27, 16 }
 0x129   : > { %v8044_v37 = vadd.f32 %v1510_v33, %v1088_v23  ;;  %v1099_v40 = vadd.f32 %v5743_v14, %v7561_v53  ;;  %v5780_v56 = vpop.f32.mrf.mxu0  ;;  %5983 = vmatmul.mubr.msk.bf16.gmra.mxu0 %vm708_vm3, %v8885_v45  ;;  %v8886_v33 = vcombine.low %v7775_v21, %v7779_v1  ;;  %v8063_v53 = vsel %vm6472_vm7, %v5510_v16, %v4435_v34  ;;  %v5439_v1 = vld [vmem:[%s6142_s26 + $0xa4] sm:$0x1]  ;;  %v8887_v16 = vld [vmem:[#allocation11_spill] sm:$0xff] }
 0x12a   : > { %v1090_v39 = vpop.f32.mrf.mxu1  ;;  %v3876_v21 = vsel %vm6186_vm4, %v8042_v18, %v7977_v51  ;;  %v3912_v34 = vshrl.u32 %v5440_v22, 16  ;;  %v8889_v51 = vld [vmem:[#allocation16_spill] sm:$0xff]  ;;  %v3925_v18 = vshrl.u32 %v8068_v27, 16 }
 0x12b   : > { %5986 = vmatprep.mubr.msk.bf16.mxu0 %vm708_vm3, %v8886_v33  ;;  %v8070_v54 = vadd.f32 %v5777_v2, %v1099_v40  ;;  %v1091_v13 = vadd.f32 %v1090_v39, %v7606_v12  ;;  %v1526_v15 = vpop.f32.mrf.mxu0  ;;  %v3886_v40 = vsel %vm6186_vm4, %v3881_v32, %v3885_v38  ;;  %v3894_v2 = vor.u32 %v3893_v59, %v3890_v29  ;;  %v8890_v59 = vld [vmem:[#allocation12_spill] sm:$0xff] }
 0x12c   : > { %v5746_v57 = vpop.f32.mrf.mxu1  ;;  %5949 = vmatmul.mubr.msk.bf16.gmra.mxu1 %vm708_vm3, %v8887_v16  ;;  %v3915_v12 = vshll.u32 %v5440_v22, 16  ;;  %v8093_v39 = vsel %vm6472_vm7, %v4437_v63, %v4438_v6  ;;  %v3904_v32 = vor.u32 %v3903_v9, %v8065_v52  ;;  %v3907_v38 = vshll.u32 %v5439_v1, 16 }
 0x12d   : > { %v8084_v11 = vadd.f32 %v1513_v30, %v1091_v13  ;;  %v1112_v23 = vadd.f32 %v5746_v57, %v8888_v35  ;;  %v5781_v14 = vpop.f32.mrf.mxu0  ;;  %5952 = vmatprep.mubr.msk.bf16.mxu1 %vm708_vm3, %v8889_v51  ;;  %v5511_v30 = vrot.slane %v5495_v62, 9  ;;  %v4444_v13 = vrot.slane %v4442_v49, 4 }
 0x12e   : > { %v1103_v45 = vpop.f32.mrf.mxu1  ;;  %v4445_v57 = vrot.slane %v5439_v1, 5  ;;  %v8101_v51 = vrot.slane %v3894_v2, 4  ;;  %v3914_v6 = vrot.slane %v3912_v34, 4  ;;  %v3917_v63 = vrot.slane %v3915_v12, 5  ;;  %v8111_v1 = vld [vmem:[%s6142_s26 + $0xb0] sm:$0x1] }
 0x12f   : > { %v8096_v29 = vadd.f32 %v5780_v56, %v1112_v23  ;;  %v1104_v22 = vadd.f32 %v1103_v45, %v8890_v59  ;;  %v1529_v33 = vpop.f32.mrf.mxu0  ;;  %v8113_v23 = vrot.slane %v3921_v24, 5  ;;  %v3927_v2 = vrot.slane %v3925_v18, 4  ;;  %v8892_v12 = vld [vmem:[#allocation14_spill] sm:$0xff] }
 0x130   : > { %v5747_v16 = vpop.f32.mrf.mxu1  ;;  %v8123_v43 = vrot.slane %v3904_v32, 4  ;;  %v8125_v17 = vrot.slane %v3907_v38, 5  ;;  %v8133_v58 = vsel %vm6472_vm7, %v5511_v30, %v4442_v49  ;;  %v8137_v36 = vsel %vm6472_vm7, %v4444_v13, %v4445_v57  ;;  %v8149_v30 = vld [vmem:[%s6142_s26 + $0xb8] sm:$0xf] }
 0x131   : > { %v8103_v9 = vadd.f32 %v1526_v15, %v1104_v22  ;;  %v1115_v62 = vadd.f32 %v5747_v16, %v8891_v4  ;;  %v5784_v56 = vpop.f32.mrf.mxu0  ;;  %5987 = vmatmul.mubr.msk.bf16.gmra.mxu0 %vm708_vm3, %v5521_v10  ;;  %v8119_v15 = vcombine.low %v3876_v21, %v3886_v40  ;;  %v5496_v10 = vld [vmem:[%s6142_s26 + $0xa8] sm:$0xe]  ;;  %v3918_v32 = vor.u32 %v3917_v63, %v3914_v6  ;;  %v8894_v22 = vld [vmem:[#allocation9_spill] sm:$0xff] }
 0x132   : > { %v1106_v45 = vpop.f32.mrf.mxu1  ;;  %5990 = vmatprep.mubr.msk.bf16.mxu0 %vm708_vm3, %v5522_v41  ;;  %v5443_v41 = vld [vmem:[%s6142_s26 + $0xb4] sm:$0xf]  ;;  %v8893_v40 = vld [vmem:[#allocation19_spill] sm:$0xff]  ;;  %v3931_v38 = vshll.u32 %v8111_v1, 16  ;;  %v4449_v49 = vrot.slane %v8068_v27, 5  ;;  %v3928_v16 = vor.u32 %v3927_v2, %v8113_v23  ;;  %v3910_v27 = vsel %vm6186_vm4, %v8123_v43, %v8125_v17 }
 0x133   : > { %v8128_v34 = vadd.f32 %v5781_v14, %v1115_v62  ;;  %v1107_v24 = vadd.f32 %v1106_v45, %v8892_v12  ;;  %v1542_v18 = vpop.f32.mrf.mxu0  ;;  %v5512_v62 = vrot.slane %v5496_v10, 9  ;;  %v3936_v6 = vshrl.u32 %v5443_v41, 16 }
 0x134   : > { %v5750_v21 = vpop.f32.mrf.mxu1  ;;  %5953 = vmatmul.mubr.msk.bf16.gmra.mxu1 %vm708_vm3, %v8893_v40  ;;  %v3939_v63 = vshll.u32 %v5443_v41, 16  ;;  %v3945_v2 = vshll.u32 %v8149_v30, 16  ;;  %v3949_v10 = vshrl.u32 %v8149_v30, 16  ;;  %v5446_v40 = vld [vmem:[%s6142_s26 + $0xc0] sm:$0xf]  ;;  %v3919_v4 = vrot.slane %v3918_v32, 4 }
 0x135   : > { %v8151_v59 = vadd.f32 %v1529_v33, %v1107_v24  ;;  %v1128_v13 = vadd.f32 %v5750_v21, %v8894_v22  ;;  %v5785_v57 = vpop.f32.mrf.mxu0  ;;  %5956 = vmatprep.mubr.msk.bf16.mxu1 %vm708_vm3, %v8003_v46  ;;  %v8896_v24 = vld [vmem:[#allocation18_spill] sm:$0xff]  ;;  %v3933_v43 = vrot.slane %v3931_v38, 5  ;;  %v4451_v17 = vrot.slane %v4449_v49, 4 }
 0x136   : > { %v1119_v45 = vpop.f32.mrf.mxu1  ;;  %v4452_v33 = vrot.slane %v8111_v1, 5  ;;  %v8179_v14 = vsel %vm6472_vm7, %v5512_v62, %v4449_v49  ;;  %v8182_v32 = vld [vmem:[%s6142_s26 + $0xc4] sm:$0xf]  ;;  %v8900_v1 = vcombine.low %v7961_v25, %v7965_v50  ;;  %v8194_v62 = vrot.slane %v3945_v2, 5 }
 0x137   : > { %v8163_v12 = vadd.f32 %v5784_v56, %v1128_v13  ;;  %v1120_v21 = vadd.f32 %v1119_v45, %v8896_v24  ;;  %v1545_v46 = vpop.f32.mrf.mxu0  ;;  %v8898_v56 = vld [vmem:[#allocation21_spill] sm:$0xff]  ;;  %v8899_v45 = vcombine.low %v7949_v47, %v7953_v7  ;;  %v3929_v24 = vrot.slane %v3928_v16, 4  ;;  %v8901_v16 = vld [vmem:[#allocation23_spill] sm:$0xff] }
 0x138   : > { %v5751_v22 = vpop.f32.mrf.mxu1  ;;  %v3960_v47 = vshrl.u32 %v5446_v40, 16  ;;  %v3963_v7 = vshll.u32 %v5446_v40, 16  ;;  %v3924_v25 = vsel %vm6186_vm4, %v3919_v4, %v8113_v23  ;;  %v8203_v50 = vsel %vm6472_vm7, %v4451_v17, %v4452_v33  ;;  %v5497_v40 = vld [vmem:[%s6142_s26 + $0xb4] sm:$0xe] }
 0x139   : > { %8895 = vst [vmem:[#allocation11_spill] sm:$0xff] %v8163_v12  ;;  %v8170_v35 = vadd.f32 %v1542_v18, %v1120_v21  ;;  %v1131_v41 = vadd.f32 %v5751_v22, %v8898_v56  ;;  %v5788_v13 = vpop.f32.mrf.mxu0  ;;  %5991 = vmatmul.mubr.msk.bf16.gmra.mxu0 %vm708_vm3, %v8899_v45  ;;  %v8189_v18 = vld [vmem:[%s6142_s26 + $0xbc] sm:$0x1]  ;;  %v3938_v21 = vrot.slane %v3936_v6, 4  ;;  %v3941_v22 = vrot.slane %v3939_v63, 5 }
 0x13a   : > { %v1122_v38 = vpop.f32.mrf.mxu1  ;;  %5994 = vmatprep.mubr.msk.bf16.mxu0 %vm708_vm3, %v8900_v1  ;;  %v3973_v6 = vshrl.u32 %v8182_v32, 16  ;;  %v3955_v23 = vshll.u32 %v8189_v18, 16  ;;  %v4456_v17 = vrot.slane %v8149_v30, 5  ;;  %v8902_v1 = vld [vmem:[#allocation25_spill] sm:$0xff] }
 0x13b   : > { %8897 = vst [vmem:[#allocation8_spill] sm:$0xff] %v8170_v35  ;;  %v8191_v56 = vadd.f32 %v5785_v57, %v1131_v41  ;;  %v1123_v45 = vadd.f32 %v1122_v38, %v8901_v16  ;;  %v1558_v49 = vpop.f32.mrf.mxu0  ;;  %v3951_v35 = vrot.slane %v3949_v10, 4  ;;  %v3969_v57 = vshll.u32 %v8182_v32, 16 }
 0x13c   : > { %v5754_v12 = vpop.f32.mrf.mxu1  ;;  %5957 = vmatmul.mubr.msk.bf16.gmra.mxu1 %vm708_vm3, %v8005_v61  ;;  %v3934_v61 = vsel %vm6186_vm4, %v3929_v24, %v3933_v43  ;;  %v3942_v33 = vor.u32 %v3941_v22, %v3938_v21  ;;  %v3962_v41 = vrot.slane %v3960_v47, 4  ;;  %v3965_v38 = vrot.slane %v3963_v7, 5 }
 0x13d   : > { %v8207_v63 = vadd.f32 %v1545_v46, %v1123_v45  ;;  %v1144_v2 = vadd.f32 %v5754_v12, %v7913_v28  ;;  %v5789_v10 = vpop.f32.mrf.mxu0  ;;  %5960 = vmatprep.mubr.msk.bf16.mxu1 %vm708_vm3, %v8011_v60  ;;  %v8903_v60 = vsel %vm6186_vm4, %v8101_v51, %v8065_v52  ;;  %v3952_v24 = vor.u32 %v3951_v35, %v8194_v62 }
 0x13e   : > { %v1135_v4 = vpop.f32.mrf.mxu1  ;;  %v8225_v43 = vcombine.low %v8903_v60, %v3910_v27  ;;  %v8228_v30 = vcombine.low %v3924_v25, %v3934_v61  ;;  %v8232_v22 = vrot.slane %v3969_v57, 5  ;;  %v3975_v47 = vrot.slane %v3973_v6, 4  ;;  %v5448_v27 = vld [vmem:[%s6142_s26 + $0xc8] sm:$0x1] }
 0x13f   : > { %v8217_v46 = vadd.f32 %v5788_v13, %v1144_v2  ;;  %v1136_v28 = vadd.f32 %v1135_v4, %v8902_v1  ;;  %v1561_v12 = vpop.f32.mrf.mxu0  ;;  %v5528_v13 = vcombine.low %v8179_v14, %v8203_v50  ;;  %v8904_v52 = vcombine.low %v8031_v3, %v8053_v20  ;;  %v5449_v14 = vld [vmem:[%s6142_s26 + $0xcc] sm:$0xf]  ;;  %v8253_v20 = vld [vmem:[%s6142_s26 + $0xd0] sm:$0xf]  ;;  %v5498_v4 = vld [vmem:[%s6142_s26 + $0xc0] sm:$0xe] }
 0x140   : > { %v5755_v21 = vpop.f32.mrf.mxu1  ;;  %v8241_v35 = vrot.slane %v3955_v23, 5  ;;  %v5513_v51 = vrot.slane %v5497_v40, 9  ;;  %v8905_v50 = vcombine.low %v8063_v53, %v8093_v39  ;;  %v4459_v57 = vrot.slane %v8189_v18, 5 }
 0x141   : > { %v8234_v7 = vadd.f32 %v1558_v49, %v1136_v28  ;;  %v1147_v16 = vadd.f32 %v5755_v21, %v7936_v19  ;;  %v5792_v45 = vpop.f32.mrf.mxu0  ;;  %5995 = vmatmul.mubr.msk.bf16.gmra.mxu0 %vm708_vm3, %v8904_v52  ;;  %v8249_v49 = vrot.slane %v3942_v33, 4  ;;  %v4458_v19 = vrot.slane %v4456_v17, 4 }
 0x142   : > { %v1138_v25 = vpop.f32.mrf.mxu1  ;;  %5998 = vmatprep.mubr.msk.bf16.mxu0 %vm708_vm3, %v8905_v50  ;;  %v3966_v3 = vor.u32 %v3965_v38, %v3962_v41  ;;  %v8258_v23 = vrot.slane %v3952_v24, 4  ;;  %v4463_v53 = vrot.slane %v8182_v32, 5  ;;  %v3976_v33 = vor.u32 %v3975_v47, %v8232_v22 }
 0x143   : > { %v8255_v6 = vadd.f32 %v5789_v10, %v1147_v16  ;;  %v1139_v2 = vadd.f32 %v1138_v25, %v7968_v26  ;;  %v1574_v61 = vpop.f32.mrf.mxu0  ;;  %v3979_v18 = vshll.u32 %v5448_v27, 16  ;;  %v3984_v40 = vshrl.u32 %v5449_v14, 16  ;;  %v8908_v10 = vld [vmem:[#allocation4_spill] sm:$0xff]  ;;  %v8909_v16 = vld [vmem:[#allocation3_spill] sm:$0xff] }
 0x144   : > { %v5758_v39 = vpop.f32.mrf.mxu1  ;;  %5961 = vmatmul.mubr.msk.bf16.gmra.mxu1 %vm708_vm3, %v8040_v48  ;;  %v3987_v41 = vshll.u32 %v5449_v14, 16  ;;  %v3993_v28 = vshll.u32 %v8253_v20, 16  ;;  %v3997_v32 = vshrl.u32 %v8253_v20, 16  ;;  %v4457_v48 = vsel %vm6472_vm7, %v5513_v51, %v4456_v17  ;;  %v8910_v17 = vld [vmem:[#allocation6_spill] sm:$0xff] }
 0x145   : > { %8906 = vst [vmem:[#allocation16_spill] sm:$0xff] %v8255_v6  ;;  %v8265_v38 = vadd.f32 %v1561_v12, %v1139_v2  ;;  %v1160_v1 = vadd.f32 %v5758_v39, %v8908_v10  ;;  %v5793_v26 = vpop.f32.mrf.mxu0  ;;  %5964 = vmatprep.mubr.msk.bf16.mxu1 %vm708_vm3, %v8119_v15  ;;  %v4460_v24 = vsel %vm6472_vm7, %v4458_v19, %v4459_v57  ;;  %v3967_v21 = vrot.slane %v3966_v3, 4 }
 0x146   : > { %v1151_v60 = vpop.f32.mrf.mxu1  ;;  %v5514_v12 = vrot.slane %v5498_v4, 9  ;;  %v4465_v25 = vrot.slane %v4463_v53, 4  ;;  %v4466_v15 = vrot.slane %v5448_v27, 5  ;;  %v3977_v2 = vrot.slane %v3976_v33, 4  ;;  %v5451_v33 = vld [vmem:[%s6142_s26 + $0xd4] sm:$0x1] }
 0x147   : > { %8907 = vst [vmem:[#allocation12_spill] sm:$0xff] %v8265_v38  ;;  %v8276_v47 = vadd.f32 %v5792_v45, %v1160_v1  ;;  %v1152_v52 = vadd.f32 %v1151_v60, %v8909_v16  ;;  %v1577_v14 = vpop.f32.mrf.mxu0  ;;  %v3981_v39 = vrot.slane %v3979_v18, 5  ;;  %v3986_v10 = vrot.slane %v3984_v40, 4  ;;  %v8912_v18 = vld [vmem:[#allocation5_spill] sm:$0xff] }
 0x148   : > { %v5759_v50 = vpop.f32.mrf.mxu1  ;;  %v3989_v38 = vrot.slane %v3987_v41, 5  ;;  %v8911_v45 = vcombine.low %v8133_v58, %v8137_v36  ;;  %v8286_v57 = vrot.slane %v3993_v28, 5  ;;  %v3999_v27 = vrot.slane %v3997_v32, 4 }
 0x149   : > { %v8279_v6 = vadd.f32 %v1574_v61, %v1152_v52  ;;  %v1163_v51 = vadd.f32 %v5759_v50, %v8910_v17  ;;  %v5796_v19 = vpop.f32.mrf.mxu0  ;;  %v3948_v61 = vsel %vm6186_vm4, %v8249_v49, %v8194_v62  ;;  %v3958_v4 = vsel %vm6186_vm4, %v8258_v23, %v8241_v35  ;;  %v5499_v62 = vld [vmem:[%s6142_s26 + $0xcc] sm:$0xe] }
 0x14a   : > { %5999 = vmatmul.mubr.msk.bf16.gmra.mxu0 %vm708_vm3, %v8911_v45  ;;  %v1154_v3 = vpop.f32.mrf.mxu1  ;;  %v4470_v58 = vrot.slane %v8253_v20, 5  ;;  %v4467_v1 = vsel %vm6472_vm7, %v4465_v25, %v4466_v15  ;;  %v5529_v35 = vcombine.low %v4457_v48, %v4460_v24  ;;  %v3972_v20 = vsel %vm6186_vm4, %v3967_v21, %v8232_v22  ;;  %v8914_v25 = vld [vmem:[#allocation10_spill] sm:$0xff] }
 0x14b   : > { %6002 = vmatprep.mubr.msk.bf16.mxu0 %vm708_vm3, %v5528_v13  ;;  %v8299_v36 = vadd.f32 %v5793_v26, %v1163_v51  ;;  %v1155_v40 = vadd.f32 %v1154_v3, %v8912_v18  ;;  %v1590_v41 = vpop.f32.mrf.mxu0  ;;  %v4464_v13 = vsel %vm6472_vm7, %v5514_v12, %v4463_v53  ;;  %v3982_v23 = vsel %vm6186_vm4, %v3977_v2, %v3981_v39  ;;  %v8913_v53 = vld [vmem:[#allocation7_spill] sm:$0xff] }
 0x14c   : > { %v5762_v49 = vpop.f32.mrf.mxu1  ;;  %5965 = vmatmul.mubr.msk.bf16.gmra.mxu1 %vm708_vm3, %v8225_v43  ;;  %v3990_v26 = vor.u32 %v3989_v38, %v3986_v10  ;;  %v4000_v12 = vor.u32 %v3999_v27, %v8286_v57  ;;  %v4003_v43 = vshll.u32 %v5451_v33, 16  ;;  %v5530_v24 = vcombine.low %v4464_v13, %v4467_v1 }
 0x14d   : > { %v8314_v28 = vadd.f32 %v1577_v14, %v1155_v40  ;;  %v1176_v32 = vadd.f32 %v5762_v49, %v8913_v53  ;;  %v5797_v60 = vpop.f32.mrf.mxu0  ;;  %5968 = vmatprep.mubr.msk.bf16.mxu1 %vm708_vm3, %v8228_v30  ;;  %v5515_v16 = vrot.slane %v5499_v62, 9  ;;  %v4472_v52 = vrot.slane %v4470_v58, 4  ;;  %v8915_v30 = vld [vmem:[#allocation13_spill] sm:$0xff] }
 0x14e   : > { %v1167_v48 = vpop.f32.mrf.mxu1  ;;  %v4473_v22 = vrot.slane %v5451_v33, 5  ;;  %v5465_v50 = vcombine.low %v3948_v61, %v3958_v4  ;;  %v5466_v2 = vcombine.low %v3972_v20, %v3982_v23  ;;  %v3991_v39 = vrot.slane %v3990_v26, 4  ;;  %v8916_v33 = vld [vmem:[#allocation15_spill] sm:$0xff]  ;;  %v8917_v62 = vld [vmem:[#allocation17_spill] sm:$0xff]  ;;  %v8918_v26 = vld [vmem:[#allocation20_spill] sm:$0xff] }
 0x14f   : > { %v8320_v21 = vadd.f32 %v5796_v19, %v1176_v32  ;;  %v1168_v38 = vadd.f32 %v1167_v48, %v8914_v25  ;;  %v1593_v14 = vpop.f32.mrf.mxu0  ;;  %v4001_v45 = vrot.slane %v4000_v12, 4  ;;  %v4005_v27 = vrot.slane %v4003_v43, 5  ;;  %v8919_v43 = vld [vmem:[#allocation22_spill] sm:$0xff] }
 0x150   : > { %v5763_v15 = vpop.f32.mrf.mxu1  ;;  %v4471_v19 = vsel %vm6472_vm7, %v5515_v16, %v4470_v58  ;;  %v4474_v61 = vsel %vm6472_vm7, %v4472_v52, %v4473_v22  ;;  %v3996_v13 = vsel %vm6186_vm4, %v3991_v39, %v8286_v57 }
 0x151   : > { %v8323_v10 = vadd.f32 %v1590_v41, %v1168_v38  ;;  %v1179_v17 = vadd.f32 %v5763_v15, %v8915_v30  ;;  %v5800_v51 = vpop.f32.mrf.mxu0  ;;  %v4006_v0 = vsel %vm6186_vm4, %v4001_v45, %v4005_v27 }
 0x152   : > { %6003 = vmatmul.mubr.msk.bf16.gmra.mxu0 %vm708_vm3, %v5529_v35  ;;  %v1170_v3 = vpop.f32.mrf.mxu1  ;;  %v5531_v35 = vcombine.low %v4471_v19, %v4474_v61  ;;  %v5467_v12 = vcombine.low %v3996_v13, %v4006_v0 }
 0x153   : > { %6006 = vmatprep.mubr.msk.bf16.mxu0 %vm708_vm3, %v5530_v24  ;;  %v8332_v4 = vadd.f32 %v5797_v60, %v1179_v17  ;;  %v1171_v18 = vadd.f32 %v1170_v3, %v8916_v33  ;;  %v1606_v40 = vpop.f32.mrf.mxu0 }
 0x154   : > { %v5766_v41 = vpop.f32.mrf.mxu1  ;;  %5969 = vmatmul.mubr.msk.bf16.gmra.mxu1 %vm708_vm3, %v5465_v50 }
 0x155   : > { %v8339_v1 = vadd.f32 %v1593_v14, %v1171_v18  ;;  %v1192_v49 = vadd.f32 %v5766_v41, %v8917_v62  ;;  %v5801_v58 = vpop.f32.mrf.mxu0  ;;  %5972 = vmatprep.mubr.msk.bf16.mxu1 %vm708_vm3, %v5466_v2 }
 0x156   : > { %v1183_v20 = vpop.f32.mrf.mxu1 }
 0x157   : > { %v8345_v23 = vadd.f32 %v5800_v51, %v1192_v49  ;;  %v1184_v53 = vadd.f32 %v1183_v20, %v8918_v26  ;;  %v1609_v32 = vpop.f32.mrf.mxu0 }
 0x158   : > { %v5767_v60 = vpop.f32.mrf.mxu1 }
 0x159   : > { %v8348_v57 = vadd.f32 %v1606_v40, %v1184_v53  ;;  %v1195_v48 = vadd.f32 %v5767_v60, %v8919_v43  ;;  %v5804_v24 = vpop.f32.mrf.mxu0 }
 0x15a   : > { %6007 = vmatmul.mubr.msk.bf16.gmra.mxu0 %vm708_vm3, %v5531_v35  ;;  %v1186_v16 = vpop.f32.mrf.mxu1 }
 0x15b   : > { %v8352_v52 = vadd.f32 %v5801_v58, %v1195_v48  ;;  %v1187_v22 = vadd.f32 %v1186_v16, %v8920_v31  ;;  %v1622_v25 = vpop.f32.mrf.mxu0 }
 0x15c   : > { %v5770_v38 = vpop.f32.mrf.mxu1  ;;  %5973 = vmatmul.mubr.msk.bf16.gmra.mxu1 %vm708_vm3, %v5467_v12 }
 0x15d   : > { %v8356_v14 = vadd.f32 %v1609_v32, %v1187_v22  ;;  %v1208_v15 = vadd.f32 %v5770_v38, %v7928_v42  ;;  %v5805_v50 = vpop.f32.mrf.mxu0 }
 0x15e   : > { %v1199_v2 = vpop.f32.mrf.mxu1 }
 0x15f   : > { %v8359_v39 = vadd.f32 %v5804_v24, %v1208_v15  ;;  %v1200_v30 = vadd.f32 %v1199_v2, %v7955_v44  ;;  %v1625_v17 = vpop.f32.mrf.mxu0 }
 0x160   : > { %v5771_v51 = vpop.f32.mrf.mxu1 }
 0x161   : > { %v8362_v45 = vadd.f32 %v1622_v25, %v1200_v30  ;;  %v1211_v27 = vadd.f32 %v5771_v51, %v7970_v8  ;;  %v5844_v3 = vpop.f32.mrf.mxu0  ;;  %v8921_v30 = vld [vmem:[#allocation11_spill] sm:$0xff] }
 0x162   : > { %v1202_v19 = vpop.f32.mrf.mxu1 }
 0x163   : > { %v8365_v61 = vadd.f32 %v5805_v50, %v1211_v27  ;;  %v1203_v33 = vadd.f32 %v1202_v19, %v7992_v55  ;;  %v2591_v18 = vpop.f32.mrf.mxu0 }
 0x164   : > { %v5810_v42 = vpop.f32.mrf.mxu1 }
 0x165   : > { %v8368_v40 = vadd.f32 %v1625_v17, %v1203_v33  ;;  %v1996_v41 = vadd.f32 %v5810_v42, %v8037_v5  ;;  %v5845_v13 = vpop.f32.mrf.mxu0 }
 0x166   : > { %v1867_v44 = vpop.f32.mrf.mxu1 }
 0x167   : > { %v8371_v62 = vadd.f32 %v5844_v3, %v1996_v41  ;;  %v1994_v49 = vadd.f32 %v1867_v44, %v8044_v37  ;;  %v2594_v58 = vpop.f32.mrf.mxu0  ;;  %v8922_v3 = vld [vmem:[#allocation8_spill] sm:$0xff] }
 0x168   : > { %v5811_v8 = vpop.f32.mrf.mxu1 }
 0x169   : > { %v8374_v0 = vadd.f32 %v2591_v18, %v1994_v49  ;;  %v1997_v35 = vadd.f32 %v5811_v8, %v8070_v54  ;;  %v5848_v20 = vpop.f32.mrf.mxu0 }
 0x16a   : > { %v1870_v55 = vpop.f32.mrf.mxu1 }
 0x16b   : > { %v8377_v26 = vadd.f32 %v5845_v13, %v1997_v35  ;;  %v1995_v53 = vadd.f32 %v1870_v55, %v8084_v11  ;;  %v2607_v32 = vpop.f32.mrf.mxu0 }
 0x16c   : > { %v5814_v5 = vpop.f32.mrf.mxu1 }
 0x16d   : > { %v8380_v60 = vadd.f32 %v2594_v58, %v1995_v53  ;;  %v2000_v12 = vadd.f32 %v5814_v5, %v8096_v29  ;;  %v5849_v43 = vpop.f32.mrf.mxu0 }
 0x16e   : > { %v1883_v37 = vpop.f32.mrf.mxu1 }
 0x16f   : > { %v8383_v48 = vadd.f32 %v5848_v20, %v2000_v12  ;;  %v1998_v24 = vadd.f32 %v1883_v37, %v8103_v9  ;;  %v2610_v16 = vpop.f32.mrf.mxu0 }
 0x170   : > { %v5815_v54 = vpop.f32.mrf.mxu1 }
 0x171   : > { %v8386_v31 = vadd.f32 %v2607_v32, %v1998_v24  ;;  %v2001_v22 = vadd.f32 %v5815_v54, %v8128_v34  ;;  %v5852_v25 = vpop.f32.mrf.mxu0  ;;  %v8924_v54 = vld [vmem:[#allocation12_spill] sm:$0xff] }
 0x172   : > { %v1886_v11 = vpop.f32.mrf.mxu1 }
 0x173   : > { %v8389_v38 = vadd.f32 %v5849_v43, %v2001_v22  ;;  %v1999_v15 = vadd.f32 %v1886_v11, %v8151_v59  ;;  %v2623_v50 = vpop.f32.mrf.mxu0  ;;  %v8923_v43 = vld [vmem:[#allocation16_spill] sm:$0xff] }
 0x174   : > { %v5818_v29 = vpop.f32.mrf.mxu1 }
 0x175   : > { %v8392_v2 = vadd.f32 %v2610_v16, %v1999_v15  ;;  %v2004_v17 = vadd.f32 %v5818_v29, %v8921_v30  ;;  %v5853_v51 = vpop.f32.mrf.mxu0 }
 0x176   : > { %v1899_v9 = vpop.f32.mrf.mxu1 }
 0x177   : > { %v8395_v27 = vadd.f32 %v5852_v25, %v2004_v17  ;;  %v2002_v19 = vadd.f32 %v1899_v9, %v8922_v3  ;;  %v2626_v33 = vpop.f32.mrf.mxu0 }
 0x178   : > { %v5819_v34 = vpop.f32.mrf.mxu1 }
 0x179   : > { %v8398_v18 = vadd.f32 %v2623_v50, %v2002_v19  ;;  %v2005_v42 = vadd.f32 %v5819_v34, %v8191_v56  ;;  %v5856_v41 = vpop.f32.mrf.mxu0 }
 0x17a   : > { %v1902_v59 = vpop.f32.mrf.mxu1 }
 0x17b   : > { %v8401_v13 = vadd.f32 %v5853_v51, %v2005_v42  ;;  %v2003_v44 = vadd.f32 %v1902_v59, %v8207_v63  ;;  %v2639_v49 = vpop.f32.mrf.mxu0 }
 0x17c   : > { %v5822_v58 = vpop.f32.mrf.mxu1 }
 0x17d   : > { %v8404_v8 = vadd.f32 %v2626_v33, %v2003_v44  ;;  %v2008_v35 = vadd.f32 %v5822_v58, %v8217_v46  ;;  %v5857_v20 = vpop.f32.mrf.mxu0 }
 0x17e   : > { %v1915_v55 = vpop.f32.mrf.mxu1 }
 0x17f   : > { %v8407_v53 = vadd.f32 %v5856_v41, %v2008_v35  ;;  %v2006_v32 = vadd.f32 %v1915_v55, %v8234_v7  ;;  %v2642_v5 = vpop.f32.mrf.mxu0 }
 0x180   : > { %v5823_v56 = vpop.f32.mrf.mxu1 }
 0x181   : > { %v8410_v12 = vadd.f32 %v2639_v49, %v2006_v32  ;;  %v2009_v37 = vadd.f32 %v5823_v56, %v8923_v43  ;;  %v5860_v24 = vpop.f32.mrf.mxu0 }
 0x182   : > { %v1918_v63 = vpop.f32.mrf.mxu1 }
 0x183   : > { %v8413_v16 = vadd.f32 %v5857_v20, %v2009_v37  ;;  %v2007_v22 = vadd.f32 %v1918_v63, %v8924_v54  ;;  %v2655_v25 = vpop.f32.mrf.mxu0 }
 0x184   : > { %v5826_v46 = vpop.f32.mrf.mxu1 }
 0x185   : > { %v8416_v11 = vadd.f32 %v2642_v5, %v2007_v22  ;;  %v2012_v15 = vadd.f32 %v5826_v46, %v8276_v47  ;;  %v5861_v50 = vpop.f32.mrf.mxu0 }
 0x186   : > { %v1931_v7 = vpop.f32.mrf.mxu1 }
 0x187   : > { %v8419_v29 = vadd.f32 %v5860_v24, %v2012_v15  ;;  %v2010_v30 = vadd.f32 %v1931_v7, %v8279_v6  ;;  %v2658_v17 = vpop.f32.mrf.mxu0 }
 0x188   : > { %v5827_v51 = vpop.f32.mrf.mxu1 }
 0x189   : > { %v8422_v9 = vadd.f32 %v2655_v25, %v2010_v30  ;;  %v2013_v3 = vadd.f32 %v5827_v51, %v8299_v36  ;;  %v5864_v19 = vpop.f32.mrf.mxu0 }
 0x18a   : > { %v1934_v33 = vpop.f32.mrf.mxu1 }
 0x18b   : > { %v8425_v34 = vadd.f32 %v5861_v50, %v2013_v3  ;;  %v2011_v42 = vadd.f32 %v1934_v33, %v8314_v28  ;;  %v2671_v41 = vpop.f32.mrf.mxu0 }
 0x18c   : > { %v5830_v47 = vpop.f32.mrf.mxu1 }
 0x18d   : > { %8925 = vst [vmem:[#allocation2_spill] sm:$0xff] %v8425_v34  ;;  %v8428_v59 = vadd.f32 %v2658_v17, %v2011_v42  ;;  %v2016_v44 = vadd.f32 %v5830_v47, %v8320_v21  ;;  %v5865_v49 = vpop.f32.mrf.mxu0 }
 0x18e   : > { %v1947_v6 = vpop.f32.mrf.mxu1 }
 0x18f   : > { %8926 = vst [vmem:[#allocation14_spill] sm:$0xff] %v8428_v59  ;;  %v8431_v58 = vadd.f32 %v5864_v19, %v2016_v44  ;;  %v2014_v35 = vadd.f32 %v1947_v6, %v8323_v10  ;;  %v2674_v20 = vpop.f32.mrf.mxu0 }
 0x190   : > { %v5831_v36 = vpop.f32.mrf.mxu1 }
 0x191   : > { %8927 = vst [vmem:[#allocation19_spill] sm:$0xff] %v8431_v58  ;;  %v8434_v55 = vadd.f32 %v2671_v41, %v2014_v35  ;;  %v2017_v32 = vadd.f32 %v5831_v36, %v8332_v4  ;;  %v5868_v5 = vpop.f32.mrf.mxu0 }
 0x192   : > { %v1950_v28 = vpop.f32.mrf.mxu1 }
 0x193   : > { %8928 = vst [vmem:[#allocation9_spill] sm:$0xff] %v8434_v55  ;;  %v8437_v56 = vadd.f32 %v5865_v49, %v2017_v32  ;;  %v2015_v43 = vadd.f32 %v1950_v28, %v8339_v1  ;;  %v2687_v37 = vpop.f32.mrf.mxu0 }
 0x194   : > { %v5834_v21 = vpop.f32.mrf.mxu1 }
 0x195   : > { %8929 = vst [vmem:[#allocation18_spill] sm:$0xff] %v8437_v56  ;;  %v8440_v24 = vadd.f32 %v2674_v20, %v2015_v43  ;;  %v2020_v63 = vadd.f32 %v5834_v21, %v8345_v23  ;;  %v5869_v54 = vpop.f32.mrf.mxu0 }
 0x196   : > { %v1963_v10 = vpop.f32.mrf.mxu1 }
 0x197   : > { %8930 = vst [vmem:[#allocation21_spill] sm:$0xff] %v8440_v24  ;;  %v8443_v22 = vadd.f32 %v5868_v5, %v2020_v63  ;;  %v2018_v25 = vadd.f32 %v1963_v10, %v8348_v57  ;;  %v2690_v46 = vpop.f32.mrf.mxu0 }
 0x198   : > { %v5835_v4 = vpop.f32.mrf.mxu1 }
 0x199   : > { %8931 = vst [vmem:[#allocation23_spill] sm:$0xff] %v8443_v22  ;;  %v8446_v15 = vadd.f32 %v2687_v37, %v2018_v25  ;;  %v2021_v50 = vadd.f32 %v5835_v4, %v8352_v52  ;;  %v5872_v7 = vpop.f32.mrf.mxu0 }
 0x19a   : > { %v1966_v1 = vpop.f32.mrf.mxu1 }
 0x19b   : > { %8932 = vst [vmem:[#allocation25_spill] sm:$0xff] %v8446_v15  ;;  %v8449_v30 = vadd.f32 %v5869_v54, %v2021_v50  ;;  %v2019_v17 = vadd.f32 %v1966_v1, %v8356_v14  ;;  %v2703_v51 = vpop.f32.mrf.mxu0 }
 0x19c   : > { %v5838_v23 = vpop.f32.mrf.mxu1 }
 0x19d   : > { %8933 = vst [vmem:[#allocation4_spill] sm:$0xff] %v8449_v30  ;;  %v8452_v3 = vadd.f32 %v2690_v46, %v2019_v17  ;;  %v2024_v19 = vadd.f32 %v5838_v23, %v8359_v39  ;;  %v5873_v33 = vpop.f32.mrf.mxu0 }
 0x19e   : > { %v1979_v57 = vpop.f32.mrf.mxu1 }
 0x19f   : > { %8934 = vst [vmem:[#allocation3_spill] sm:$0xff] %v8452_v3  ;;  %v8455_v42 = vadd.f32 %v5872_v7, %v2024_v19  ;;  %v2022_v41 = vadd.f32 %v1979_v57, %v8362_v45  ;;  %v2706_v47 = vpop.f32.mrf.mxu0 }
 0x1a0   : > { %v5839_v52 = vpop.f32.mrf.mxu1 }
 0x1a1   : > { %8935 = vst [vmem:[#allocation6_spill] sm:$0xff] %v8455_v42  ;;  %v8458_v44 = vadd.f32 %v2703_v51, %v2022_v41  ;;  %v2025_v49 = vadd.f32 %v5839_v52, %v8365_v61  ;;  %v8461_v6 = vpop.f32.mrf.mxu0 }
 0x1a2   : > { %v1982_v14 = vpop.f32.mrf.mxu1 }
 0x1a3   : > { %8936 = vst [vmem:[#allocation5_spill] sm:$0xff] %v8458_v44  ;;  %v8463_v35 = vadd.f32 %v5873_v33, %v2025_v49  ;;  %v2023_v20 = vadd.f32 %v1982_v14, %v8368_v40  ;;  %v8466_v39 = vpop.f32.mrf.mxu0 }
 0x1a4   : > { %v5878_v36 = vpop.f32.mrf.mxu1 }
 0x1a5   : > { %8937 = vst [vmem:[#allocation7_spill] sm:$0xff] %v8463_v35  ;;  %v8468_v32 = vadd.f32 %v2706_v47, %v2023_v20  ;;  %v8470_v5 = vpop.f32.mrf.mxu0 }
 0x1a6   : > { %v3059_v45 = vpop.f32.mrf.mxu1 }
 0x1a7   : > { %8938 = vst [vmem:[#allocation10_spill] sm:$0xff] %v8468_v32  ;;  %v8472_v28 = vpop.f32.mrf.mxu0 }
 0x1a8   : > { %v5879_v43 = vpop.f32.mrf.mxu1 }
 0x1a9   : > { %v8474_v37 = vpop.f32.mrf.mxu0 }
 0x1aa   : > { %v8476_v61 = vpop.f32.mrf.mxu1 }
 0x1ab   : > { %v8478_v21 = vpop.f32.mrf.mxu0 }
 0x1ac   : > { %v8480_v63 = vpop.f32.mrf.mxu1 }
 0x1ad   : > { %v8482_v40 = vpop.f32.mrf.mxu0 }
 0x1ae   : > { %v8484_v54 = vpop.f32.mrf.mxu1 }
 0x1af   : > { %v8486_v10 = vpop.f32.mrf.mxu0 }
 0x1b0   : > { %v8488_v25 = vpop.f32.mrf.mxu1 }
 0x1b1   : > { %v8490_v46 = vpop.f32.mrf.mxu0 }
 0x1b2   : > { %v8492_v4 = vpop.f32.mrf.mxu1 }
 0x1b3   : > { %v8494_v50 = vpop.f32.mrf.mxu0 }
 0x1b4   : > { %v8496_v7 = vpop.f32.mrf.mxu1 }
 0x1b5   : > { %v8498_v1 = vpop.f32.mrf.mxu0 }
 0x1b6   : > { %v8500_v17 = vpop.f32.mrf.mxu1 }
 0x1b7   : > { %v8502_v51 = vpop.f32.mrf.mxu0 }
 0x1b8   : > { %v8504_v23 = vpop.f32.mrf.mxu1 }
 0x1b9   : > { %v8506_v19 = vpop.f32.mrf.mxu0 }
 0x1ba   : > { %v8508_v33 = vpop.f32.mrf.mxu1 }
 0x1bb   : > { %v8510_v57 = vpop.f32.mrf.mxu0 }
 0x1bc   : > { %v8512_v41 = vpop.f32.mrf.mxu1 }
 0x1bd   : > { %v8514_v47 = vpop.f32.mrf.mxu0 }
 0x1be   : > { %v8516_v52 = vpop.f32.mrf.mxu1 }
 0x1bf   : > { %v8518_v49 = vpop.f32.mrf.mxu0 }
 0x1c0   : > { %v8520_v14 = vpop.f32.mrf.mxu1 }
 0x1c1   : > { %v8522_v20 = vpop.f32.mrf.mxu0 }
 0x1c2   : > { %v8524_v32 = vpop.f32.mrf.mxu1 }
 0x1c3   : > { %v8526_v35 = vpop.f32.mrf.mxu0 }
 0x1c4   : > { %8939 = vst [vmem:[#allocation13_spill] sm:$0xff] %v8526_v35  ;;  %v8528_v44 = vpop.f32.mrf.mxu1 }
 0x1c5   : > { %v8530_v42 = vpop.f32.mrf.mxu0 }
 0x1c6   : > { %8940 = vst [vmem:[#allocation15_spill] sm:$0xff] %v8530_v42  ;;  %v8532_v3 = vpop.f32.mrf.mxu1 }
 0x1c7   : > { %v8534_v30 = vpop.f32.mrf.mxu0 }
 0x1c8   : > { %8941 = vst [vmem:[#allocation17_spill] sm:$0xff] %v8534_v30  ;;  %v8536_v15 = vpop.f32.mrf.mxu1 }
 0x1c9   : > { %8942 = vst [vmem:[#allocation20_spill] sm:$0xff] %v8536_v15  ;;  %v8538_v22 = vpop.f32.mrf.mxu0 }
 0x1ca   : > { %8943 = vst [vmem:[#allocation22_spill] sm:$0xff] %v8538_v22  ;;  %v8540_v24 = vpop.f32.mrf.mxu1 }
 0x1cb   : > { %8944 = vst [vmem:[#allocation24_spill] sm:$0xff] %v8540_v24  ;;  %v8542_v56 = vpop.f32.mrf.mxu0 }
 0x1cc   : > { %8945 = vst [vmem:[#allocation11_spill] sm:$0xff] %v8542_v56  ;;  %v8544_v55 = vpop.f32.mrf.mxu1 }
 0x1cd   : > { %8946 = vst [vmem:[#allocation8_spill] sm:$0xff] %v8544_v55  ;;  %v8546_v58 = vpop.f32.mrf.mxu0 }
 0x1ce   : > { %8947 = vst [vmem:[#allocation16_spill] sm:$0xff] %v8546_v58  ;;  %v8548_v59 = vpop.f32.mrf.mxu1 }
 0x1cf   : > { %8948 = vst [vmem:[#allocation12_spill] sm:$0xff] %v8548_v59  ;;  %v8550_v35 = vpop.f32.mrf.mxu0 }
 0x1d0   : > { %8949 = vst [vmem:[#allocation26_spill] sm:$0xff] %v8550_v35  ;;  %v8552_v42 = vpop.f32.mrf.mxu1 }
 0x1d1   : > { %8950 = vst [vmem:[#allocation27_spill] sm:$0xff] %v8552_v42  ;;  %v8554_v34 = vpop.f32.mrf.mxu0 }
 0x1d2   : > { %8951 = vst [vmem:[#allocation28_spill] sm:$0xff] %v8554_v34  ;;  %v8556_v30 = vpop.f32.mrf.mxu1 }
 0x1d3   : > { %8952 = vst [vmem:[#allocation29_spill] sm:$0xff] %v8556_v30  ;;  %v8558_v15 = vpop.f32.mrf.mxu0 }
 0x1d4   : > { %8953 = vst [vmem:[#allocation30_spill] sm:$0xff] %v8558_v15  ;;  %v8560_v22 = vpop.f32.mrf.mxu1 }
 0x1d5   : > { %8954 = vst [vmem:[#allocation31_spill] sm:$0xff] %v8560_v22  ;;  %v8562_v24 = vpop.f32.mrf.mxu0 }
 0x1d6   : > { %8955 = vst [vmem:[#allocation32_spill] sm:$0xff] %v8562_v24  ;;  %v8564_v56 = vpop.f32.mrf.mxu1  ;;  %v3188_v24 = vadd.f32 %v5878_v36, %v8371_v62  ;;  %v3187_v62 = vadd.f32 %v8476_v61, %v8380_v60 }
 0x1d7   : > { %8956 = vst [vmem:[#allocation33_spill] sm:$0xff] %v8564_v56  ;;  %v8566_v55 = vpop.f32.mrf.mxu0 }
 0x1d8   : > { %8957 = vst [vmem:[#allocation34_spill] sm:$0xff] %v8566_v55  ;;  %v8568_v58 = vpop.f32.mrf.mxu1  ;;  %v3544_v60 = vadd.f32 %v8472_v28, %v3187_v62  ;;  %v3191_v28 = vadd.f32 %v8492_v4, %v8392_v2 }
 0x1d9   : > { %8958 = vst [vmem:[#allocation35_spill] sm:$0xff] %v8568_v58  ;;  %v8570_v35 = vpop.f32.mrf.mxu0  ;;  %v3186_v58 = vadd.f32 %v3059_v45, %v8374_v0 }
 0x1da   : > { %8959 = vst [vmem:[#allocation36_spill] sm:$0xff] %v8570_v35  ;;  %v8572_v42 = vpop.f32.mrf.mxu1 }
 0x1db   : > { %8960 = vst [vmem:[#allocation37_spill] sm:$0xff] %v8572_v42  ;;  %v8574_v34 = vpop.f32.mrf.mxu0  ;;  %v3545_v42 = vadd.f32 %v8461_v6, %v3188_v24  ;;  %v3192_v24 = vadd.f32 %v8480_v63, %v8383_v48 }
 0x1dc   : > { %8961 = vst [vmem:[#allocation38_spill] sm:$0xff] %v8574_v34  ;;  %v8576_v30 = vpop.f32.mrf.mxu1  ;;  %v3189_v34 = vadd.f32 %v5879_v43, %v8377_v26 }
 0x1dd   : > { %8962 = vst [vmem:[#allocation39_spill] sm:$0xff] %v8576_v30  ;;  %v8578_v15 = vpop.f32.mrf.mxu0 }
 0x1de   : > { %8963 = vst [vmem:[#allocation40_spill] sm:$0xff] %v8578_v15  ;;  %v8580_v22 = vpop.f32.mrf.mxu1  ;;  %v3546_v26 = vadd.f32 %v8470_v5, %v3189_v34  ;;  %v3549_v34 = vadd.f32 %v8474_v37, %v3192_v24  ;;  %v3193_v5 = vadd.f32 %v8488_v25, %v8389_v38  ;;  %v3196_v37 = vadd.f32 %v8496_v7, %v8395_v27 }
 0x1df   : > { %8964 = vst [vmem:[#allocation41_spill] sm:$0xff] %v8580_v22  ;;  %v8583_v56 = vpop.f32.mrf.mxu0  ;;  %v3543_v22 = vadd.f32 %v8466_v39, %v3186_v58 }
 0x1e0   : > { %8965 = vst [vmem:[#allocation42_spill] sm:$0xff] %v8583_v56  ;;  %v8585_v55 = vpop.f32.mrf.mxu1  ;;  %v3550_v2 = vadd.f32 %v8482_v40, %v3193_v5  ;;  %v3553_v7 = vadd.f32 %v8490_v46, %v3196_v37 }
 0x1e1   : > { %v5980_v59 = vpop.f32.mrf.mxu0 }
 0x1e2   : > { %v8588_v35 = vpop.f32.mrf.mxu1 }
 0x1e3   : > { %8966 = vst [vmem:[#allocation43_spill] sm:$0xff] %v8588_v35  ;;  %v4608_v30 = vpop.f32.mrf.mxu0 }
 0x1e4   : > { %v5946_v15 = vpop.f32.mrf.mxu1 }
 0x1e5   : > { %v4269_v36 = vadd.f32 %v5946_v15, %v3545_v42  ;;  %v5981_v56 = vpop.f32.mrf.mxu0  ;;  %v3190_v15 = vadd.f32 %v8484_v54, %v8386_v31 }
 0x1e6   : > { %v4140_v0 = vpop.f32.mrf.mxu1 }
 0x1e7   : > { %v4737_v6 = vadd.f32 %v5980_v59, %v4269_v36  ;;  %v4267_v58 = vadd.f32 %v4140_v0, %v3543_v22  ;;  %v4611_v39 = vpop.f32.mrf.mxu0  ;;  %v3547_v31 = vadd.f32 %v8478_v21, %v3190_v15  ;;  %v3548_v21 = vadd.f32 %v8486_v10, %v3191_v28 }
 0x1e8   : > { %v5947_v45 = vpop.f32.mrf.mxu1  ;;  %v3197_v15 = vadd.f32 %v8504_v23, %v8401_v13 }
 0x1e9   : > { %4769 = vst [vmem:[%s8599_s18 + $0x10] sm:$0xff] %v4737_v6  ;;  %v4735_v42 = vadd.f32 %v4608_v30, %v4267_v58  ;;  %v4270_v43 = vadd.f32 %v5947_v45, %v3546_v26  ;;  %v5984_v61 = vpop.f32.mrf.mxu0  ;;  %v4839_v24 = vmul.f32 %v4737_v6, %v4737_v6 }
 0x1ea   : > { %v4143_v35 = vpop.f32.mrf.mxu1 }
 0x1eb   : > { %4767 = vst [vmem:[%s8599_s18] sm:$0xff] %v4735_v42  ;;  %v4738_v48 = vadd.f32 %v5981_v56, %v4270_v43  ;;  %v4268_v59 = vadd.f32 %v4143_v35, %v3544_v60  ;;  %v4624_v22 = vpop.f32.mrf.mxu0  ;;  %v4837_v56 = vmul.f32 %v4735_v42, %v4735_v42  ;;  %v3194_v60 = vadd.f32 %v8500_v17, %v8398_v18 }
 0x1ec   : > { %v5950_v63 = vpop.f32.mrf.mxu1 }
 0x1ed   : > { %4770 = vst [vmem:[%s8599_s18 + $0x18] sm:$0xff] %v4738_v48  ;;  %v4736_v30 = vadd.f32 %v4611_v39, %v4268_v59  ;;  %v4273_v54 = vadd.f32 %v5950_v63, %v3549_v34  ;;  %v5985_v62 = vpop.f32.mrf.mxu0  ;;  %v4840_v43 = vmul.f32 %v4738_v48, %v4738_v48  ;;  %v3195_v59 = vadd.f32 %v8508_v33, %v8404_v8 }
 0x1ee   : > { %v4156_v35 = vpop.f32.mrf.mxu1  ;;  %v3551_v63 = vadd.f32 %v8494_v50, %v3194_v60 }
 0x1ef   : > { %4768 = vst [vmem:[%s8599_s18 + $0x8] sm:$0xff] %v4736_v30  ;;  %v4799_v36 = vadd.f32 %v4736_v30, %v4735_v42  ;;  %v4838_v0 = vmul.f32 %v4736_v30, %v4736_v30  ;;  %v4741_v38 = vadd.f32 %v5984_v61, %v4273_v54  ;;  %v4271_v25 = vadd.f32 %v4156_v35, %v3547_v31  ;;  %v4627_v26 = vpop.f32.mrf.mxu0 }
 0x1f0   : > { %v5951_v4 = vpop.f32.mrf.mxu1  ;;  %v3554_v31 = vadd.f32 %v8498_v1, %v3197_v15  ;;  %v3198_v35 = vadd.f32 %v8516_v52, %v8410_v12 }
 0x1f1   : > { %v4800_v58 = vadd.f32 %v4799_v36, %v4737_v6  ;;  %v4869_v39 = vadd.f32 %v4838_v0, %v4837_v56  ;;  %4773 = vst [vmem:[%s8599_s18 + $0x30] sm:$0xff] %v4741_v38  ;;  %v4739_v45 = vadd.f32 %v4624_v22, %v4271_v25  ;;  %v5988_v27 = vpop.f32.mrf.mxu0  ;;  %v4274_v42 = vadd.f32 %v5951_v4, %v3550_v2 }
 0x1f2   : > { %v4159_v40 = vpop.f32.mrf.mxu1  ;;  %v3200_v56 = vadd.f32 %v8512_v41, %v8407_v53  ;;  %v4843_v1 = vmul.f32 %v4741_v38, %v4741_v38 }
 0x1f3   : > { %v4870_v61 = vadd.f32 %v4869_v39, %v4839_v24  ;;  %4771 = vst [vmem:[%s8599_s18 + $0x20] sm:$0xff] %v4739_v45  ;;  %v4801_v10 = vadd.f32 %v4800_v58, %v4738_v48  ;;  %v4272_v6 = vadd.f32 %v4159_v40, %v3548_v21  ;;  %v4640_v34 = vpop.f32.mrf.mxu0  ;;  %v4841_v46 = vmul.f32 %v4739_v45, %v4739_v45 }
 0x1f4   : > { %v4742_v22 = vadd.f32 %v5985_v62, %v4274_v42  ;;  %v5954_v5 = vpop.f32.mrf.mxu1  ;;  %v3552_v62 = vadd.f32 %v8502_v51, %v3195_v59  ;;  %v3201_v21 = vadd.f32 %v8520_v14, %v8413_v16  ;;  %v3557_v39 = vadd.f32 %v8506_v19, %v3200_v56 }
 0x1f5   : > { %v4802_v18 = vadd.f32 %v4801_v10, %v4739_v45  ;;  %v4871_v17 = vadd.f32 %v4870_v61, %v4840_v43  ;;  %v4740_v28 = vadd.f32 %v4627_v26, %v4272_v6  ;;  %v4277_v13 = vadd.f32 %v5954_v5, %v3553_v7  ;;  %v5989_v23 = vpop.f32.mrf.mxu0 }
 0x1f6   : > { %4774 = vst [vmem:[%s8599_s18 + $0x38] sm:$0xff] %v4742_v22  ;;  %v4172_v48 = vpop.f32.mrf.mxu1  ;;  %v4844_v51 = vmul.f32 %v4742_v22, %v4742_v22  ;;  %v3558_v15 = vadd.f32 %v8514_v47, %v3201_v21  ;;  %v3199_v42 = vadd.f32 %v8524_v32, %v8416_v11  ;;  %v3204_v40 = vadd.f32 %v8528_v44, %v8419_v29  ;;  %v8973_v21 = vld [vmem:[#allocation19_spill] sm:$0xff] }
 0x1f7   : > { %v4872_v30 = vadd.f32 %v4871_v17, %v4841_v46  ;;  %4772 = vst [vmem:[%s8599_s18 + $0x28] sm:$0xff] %v4740_v28  ;;  %v4803_v54 = vadd.f32 %v4802_v18, %v4740_v28  ;;  %v4842_v37 = vmul.f32 %v4740_v28, %v4740_v28  ;;  %v4745_v8 = vadd.f32 %v5988_v27, %v4277_v13  ;;  %v4643_v33 = vpop.f32.mrf.mxu0  ;;  %v8967_v28 = vld [vmem:[#allocation2_spill] sm:$0xff]  ;;  %v8968_v13 = vld [vmem:[#allocation20_spill] sm:$0xff] }
 0x1f8   : > { %v4275_v50 = vadd.f32 %v4172_v48, %v3551_v63  ;;  %v5955_v36 = vpop.f32.mrf.mxu1  ;;  %v3202_v59 = vadd.f32 %v8532_v3, %v8422_v9  ;;  %v3556_v18 = vadd.f32 %v8518_v49, %v3199_v42  ;;  %v3561_v17 = vadd.f32 %v8522_v20, %v3204_v40  ;;  %v8978_v42 = vld [vmem:[#allocation18_spill] sm:$0xff]  ;;  %v8979_v40 = vld [vmem:[#allocation27_spill] sm:$0xff] }
 0x1f9   : > { %v4804_v0 = vadd.f32 %v4803_v54, %v4741_v38  ;;  %v4873_v25 = vadd.f32 %v4872_v30, %v4842_v37  ;;  %4777 = vst [vmem:[%s8599_s18 + $0x50] sm:$0xff] %v4745_v8  ;;  %v4278_v26 = vadd.f32 %v5955_v36, %v3554_v31  ;;  %v5992_v2 = vpop.f32.mrf.mxu0  ;;  %v3555_v38 = vadd.f32 %v8510_v57, %v3198_v35  ;;  %v8969_v54 = vld [vmem:[#allocation13_spill] sm:$0xff] }
 0x1fa   : > { %v4743_v4 = vadd.f32 %v4640_v34, %v4275_v50  ;;  %v4175_v24 = vpop.f32.mrf.mxu1  ;;  %v4847_v47 = vmul.f32 %v4745_v8, %v4745_v8  ;;  %v3559_v37 = vadd.f32 %v8969_v54, %v3202_v59 }
 0x1fb   : > { %v4874_v53 = vadd.f32 %v4873_v25, %v4843_v1  ;;  %v4805_v41 = vadd.f32 %v4804_v0, %v4742_v22  ;;  %v4746_v58 = vadd.f32 %v5989_v23, %v4278_v26  ;;  %v4276_v12 = vadd.f32 %v4175_v24, %v3552_v62  ;;  %v4656_v52 = vpop.f32.mrf.mxu0  ;;  %v8972_v0 = vld [vmem:[#allocation15_spill] sm:$0xff] }
 0x1fc   : > { %4775 = vst [vmem:[%s8599_s18 + $0x40] sm:$0xff] %v4743_v4  ;;  %v5958_v45 = vpop.f32.mrf.mxu1  ;;  %v4845_v7 = vmul.f32 %v4743_v4, %v4743_v4  ;;  %v3205_v23 = vadd.f32 %v8968_v13, %v8967_v28  ;;  %v8983_v28 = vld [vmem:[#allocation29_spill] sm:$0xff] }
 0x1fd   : > { %v4806_v27 = vadd.f32 %v4805_v41, %v4743_v4  ;;  %v4875_v60 = vadd.f32 %v4874_v53, %v4844_v51  ;;  %4778 = vst [vmem:[%s8599_s18 + $0x58] sm:$0xff] %v4746_v58  ;;  %v4744_v16 = vadd.f32 %v4643_v33, %v4276_v12  ;;  %v5993_v14 = vpop.f32.mrf.mxu0  ;;  %v4281_v19 = vadd.f32 %v5958_v45, %v3557_v39  ;;  %v8971_v33 = vld [vmem:[#allocation24_spill] sm:$0xff] }
 0x1fe   : > { %v4188_v43 = vpop.f32.mrf.mxu1  ;;  %v4848_v9 = vmul.f32 %v4746_v58, %v4746_v58  ;;  %v3562_v25 = vadd.f32 %v8972_v0, %v3205_v23  ;;  %v8974_v51 = vld [vmem:[#allocation8_spill] sm:$0xff] }
 0x1ff   : > { %v4876_v61 = vadd.f32 %v4875_v60, %v4845_v7  ;;  %4776 = vst [vmem:[%s8599_s18 + $0x48] sm:$0xff] %v4744_v16  ;;  %v4807_v57 = vadd.f32 %v4806_v27, %v4744_v16  ;;  %v4846_v10 = vmul.f32 %v4744_v16, %v4744_v16  ;;  %v4279_v6 = vadd.f32 %v4188_v43, %v3555_v38  ;;  %v4659_v34 = vpop.f32.mrf.mxu0  ;;  %v8975_v38 = vld [vmem:[#allocation17_spill] sm:$0xff]  ;;  %v8977_v7 = vld [vmem:[#allocation12_spill] sm:$0xff] }
 0x200   : > { %v4749_v46 = vadd.f32 %v5992_v2, %v4281_v19  ;;  %v5959_v22 = vpop.f32.mrf.mxu1  ;;  %v3208_v4 = vadd.f32 %v8974_v51, %v8973_v21  ;;  %v8976_v27 = vld [vmem:[#allocation9_spill] sm:$0xff]  ;;  %v3209_v19 = vadd.f32 %v8979_v40, %v8978_v42 }
 0x201   : > { %v4808_v11 = vadd.f32 %v4807_v57, %v4745_v8  ;;  %v4877_v32 = vadd.f32 %v4876_v61, %v4846_v10  ;;  %v4747_v5 = vadd.f32 %v4656_v52, %v4279_v6  ;;  %v4282_v29 = vadd.f32 %v5959_v22, %v3558_v15  ;;  %v5996_v44 = vpop.f32.mrf.mxu0  ;;  %v8970_v8 = vld [vmem:[#allocation14_spill] sm:$0xff] }
 0x202   : > { %4781 = vst [vmem:[%s8599_s18 + $0x70] sm:$0xff] %v4749_v46  ;;  %v4191_v63 = vpop.f32.mrf.mxu1  ;;  %v3203_v62 = vadd.f32 %v8971_v33, %v8970_v8  ;;  %v3206_v60 = vadd.f32 %v8977_v7, %v8976_v27  ;;  %v4851_v43 = vmul.f32 %v4749_v46, %v4749_v46  ;;  %v8980_v6 = vld [vmem:[#allocation22_spill] sm:$0xff]  ;;  %v8985_v8 = vld [vmem:[#allocation23_spill] sm:$0xff] }
 0x203   : > { %v4878_v3 = vadd.f32 %v4877_v32, %v4847_v47  ;;  %4779 = vst [vmem:[%s8599_s18 + $0x60] sm:$0xff] %v4747_v5  ;;  %v4809_v31 = vadd.f32 %v4808_v11, %v4746_v58  ;;  %v4750_v48 = vadd.f32 %v5993_v14, %v4282_v29  ;;  %v4672_v30 = vpop.f32.mrf.mxu0  ;;  %v4280_v49 = vadd.f32 %v4191_v63, %v3556_v18  ;;  %v8986_v33 = vld [vmem:[#allocation31_spill] sm:$0xff] }
 0x204   : > { %v5962_v20 = vpop.f32.mrf.mxu1  ;;  %v4849_v35 = vmul.f32 %v4747_v5, %v4747_v5  ;;  %v3560_v45 = vadd.f32 %v8975_v38, %v3203_v62 }
 0x205   : > { %v4810_v56 = vadd.f32 %v4809_v31, %v4747_v5  ;;  %v4879_v50 = vadd.f32 %v4878_v3, %v4848_v9  ;;  %4782 = vst [vmem:[%s8599_s18 + $0x78] sm:$0xff] %v4750_v48  ;;  %v4285_v36 = vadd.f32 %v5962_v20, %v3561_v17  ;;  %v5997_v1 = vpop.f32.mrf.mxu0  ;;  %v4748_v26 = vadd.f32 %v4659_v34, %v4280_v49  ;;  %v8982_v17 = vld [vmem:[#allocation21_spill] sm:$0xff]  ;;  %v8984_v9 = vld [vmem:[#allocation16_spill] sm:$0xff] }
 0x206   : > { %v4204_v2 = vpop.f32.mrf.mxu1  ;;  %v3565_v34 = vadd.f32 %v8980_v6, %v3208_v4  ;;  %v4852_v11 = vmul.f32 %v4750_v48, %v4750_v48  ;;  %v3207_v13 = vadd.f32 %v8983_v28, %v8982_v17  ;;  %v3566_v3 = vadd.f32 %v8984_v9, %v3209_v19  ;;  %v8993_v19 = vld [vmem:[#allocation30_spill] sm:$0xff] }
 0x207   : > { %v4880_v24 = vadd.f32 %v4879_v50, %v4849_v35  ;;  %v4753_v53 = vadd.f32 %v5996_v44, %v4285_v36  ;;  %v4283_v41 = vadd.f32 %v4204_v2, %v3559_v37  ;;  %v4675_v58 = vpop.f32.mrf.mxu0  ;;  %4780 = vst [vmem:[%s8599_s18 + $0x68] sm:$0xff] %v4748_v26  ;;  %v4811_v12 = vadd.f32 %v4810_v56, %v4748_v26  ;;  %v8981_v44 = vld [vmem:[#allocation11_spill] sm:$0xff] }
 0x208   : > { %v4850_v52 = vmul.f32 %v4748_v26, %v4748_v26  ;;  %v5963_v39 = vpop.f32.mrf.mxu1  ;;  %v3563_v18 = vadd.f32 %v8981_v44, %v3206_v60  ;;  %v8989_v26 = vld [vmem:[#allocation33_spill] sm:$0xff]  ;;  %v8997_v44 = vld [vmem:[#allocation6_spill] sm:$0xff] }
 0x209   : > { %4785 = vst [vmem:[%s8599_s18 + $0x90] sm:$0xff] %v4753_v53  ;;  %v4751_v16 = vadd.f32 %v4672_v30, %v4283_v41  ;;  %v4286_v14 = vadd.f32 %v5963_v39, %v3562_v25  ;;  %v4812_v61 = vadd.f32 %v4811_v12, %v4749_v46  ;;  %v8988_v25 = vld [vmem:[#allocation25_spill] sm:$0xff]  ;;  %v8991_v41 = vld [vmem:[#allocation35_spill] sm:$0xff]  ;;  %v4855_v12 = vmul.f32 %v4753_v53, %v4753_v53 }
 0x20a   : > { %v6000_v15 = vpop.f32.mrf.mxu0  ;;  %v4881_v57 = vadd.f32 %v4880_v24, %v4850_v52  ;;  %v4207_v10 = vpop.f32.mrf.mxu1  ;;  %v3210_v2 = vadd.f32 %v8989_v26, %v8988_v25  ;;  %v8990_v24 = vld [vmem:[#allocation4_spill] sm:$0xff] }
 0x20b   : > { %4783 = vst [vmem:[%s8599_s18 + $0x80] sm:$0xff] %v4751_v16  ;;  %v4754_v59 = vadd.f32 %v5997_v1, %v4286_v14  ;;  %v4284_v47 = vadd.f32 %v4207_v10, %v3560_v45  ;;  %v4813_v5 = vadd.f32 %v4812_v61, %v4750_v48  ;;  %v4853_v30 = vmul.f32 %v4751_v16, %v4751_v16  ;;  %v8987_v1 = vld [vmem:[#allocation26_spill] sm:$0xff]  ;;  %v8992_v45 = vld [vmem:[#allocation28_spill] sm:$0xff]  ;;  %v8994_v61 = vld [vmem:[#allocation3_spill] sm:$0xff] }
 0x20c   : > { %v4688_v22 = vpop.f32.mrf.mxu0  ;;  %v4882_v32 = vadd.f32 %v4881_v57, %v4851_v43  ;;  %v5966_v29 = vpop.f32.mrf.mxu1  ;;  %v3212_v48 = vadd.f32 %v8986_v33, %v8985_v8  ;;  %v3564_v0 = vadd.f32 %v8987_v1, %v3207_v13  ;;  %v3567_v43 = vadd.f32 %v8993_v19, %v3210_v2  ;;  %v8995_v57 = vld [vmem:[#allocation37_spill] sm:$0xff]  ;;  %v9003_v1 = vld [vmem:[#allocation7_spill] sm:$0xff] }
 0x20d   : > { %4786 = vst [vmem:[%s8599_s18 + $0x98] sm:$0xff] %v4754_v59  ;;  %v4752_v46 = vadd.f32 %v4675_v58, %v4284_v47  ;;  %v4289_v23 = vadd.f32 %v5966_v29, %v3565_v34  ;;  %v4814_v31 = vadd.f32 %v4813_v5, %v4751_v16  ;;  %v3213_v58 = vadd.f32 %v8991_v41, %v8990_v24  ;;  %v8996_v47 = vld [vmem:[#allocation32_spill] sm:$0xff]  ;;  %v9004_v41 = vld [vmem:[#allocation38_spill] sm:$0xff] }
 0x20e   : > { %v6001_v63 = vpop.f32.mrf.mxu0  ;;  %v4883_v54 = vadd.f32 %v4882_v32, %v4852_v11  ;;  %v4220_v37 = vpop.f32.mrf.mxu1  ;;  %v3569_v27 = vadd.f32 %v8992_v45, %v3212_v48  ;;  %v4856_v14 = vmul.f32 %v4754_v59, %v4754_v59  ;;  %v3211_v10 = vadd.f32 %v8995_v57, %v8994_v61  ;;  %v9008_v57 = vld [vmem:[#allocation42_spill] sm:$0xff] }
 0x20f   : > { %4784 = vst [vmem:[%s8599_s18 + $0x88] sm:$0xff] %v4752_v46  ;;  %v4854_v62 = vmul.f32 %v4752_v46, %v4752_v46  ;;  %v4757_v49 = vadd.f32 %v6000_v15, %v4289_v23  ;;  %v4287_v20 = vadd.f32 %v4220_v37, %v3563_v18  ;;  %v4815_v50 = vadd.f32 %v4814_v31, %v4752_v46  ;;  %v8998_v18 = vld [vmem:[#allocation39_spill] sm:$0xff] }
 0x210   : > { %v4691_v56 = vpop.f32.mrf.mxu0  ;;  %v4884_v35 = vadd.f32 %v4883_v54, %v4853_v30  ;;  %v5967_v36 = vpop.f32.mrf.mxu1  ;;  %v9000_v30 = vld [vmem:[#allocation5_spill] sm:$0xff] }
 0x211   : > { %4789 = vst [vmem:[%s8599_s18 + $0xb0] sm:$0xff] %v4757_v49  ;;  %v4755_v21 = vadd.f32 %v4688_v22, %v4287_v20  ;;  %v4290_v51 = vadd.f32 %v5967_v36, %v3566_v3  ;;  %v4816_v52 = vadd.f32 %v4815_v50, %v4753_v53  ;;  %v3570_v22 = vadd.f32 %v8996_v47, %v3213_v58  ;;  %v8999_v3 = vld [vmem:[#allocation34_spill] sm:$0xff]  ;;  %v9001_v54 = vld [vmem:[#allocation41_spill] sm:$0xff]  ;;  %v9002_v50 = vld [vmem:[#allocation36_spill] sm:$0xff] }
 0x212   : > { %v6004_v4 = vpop.f32.mrf.mxu0  ;;  %v4885_v39 = vadd.f32 %v4884_v35, %v4854_v62  ;;  %v4223_v38 = vpop.f32.mrf.mxu1  ;;  %v3568_v31 = vadd.f32 %v8999_v3, %v3211_v10  ;;  %v3214_v37 = vadd.f32 %v9001_v54, %v9000_v30  ;;  %v4859_v62 = vmul.f32 %v4757_v49, %v4757_v49 }
 0x213   : > { %4787 = vst [vmem:[%s8599_s18 + $0xa0] sm:$0xff] %v4755_v21  ;;  %v4758_v7 = vadd.f32 %v6001_v63, %v4290_v51  ;;  %v4288_v60 = vadd.f32 %v4223_v38, %v3564_v0  ;;  %v4817_v42 = vadd.f32 %v4816_v52, %v4754_v59  ;;  %v4857_v32 = vmul.f32 %v4755_v21, %v4755_v21 }
 0x214   : > { %v4704_v16 = vpop.f32.mrf.mxu0  ;;  %v4886_v15 = vadd.f32 %v4885_v39, %v4855_v12  ;;  %v5970_v40 = vpop.f32.mrf.mxu1  ;;  %v3216_v59 = vadd.f32 %v8998_v18, %v8997_v44  ;;  %v3217_v0 = vadd.f32 %v8585_v55, %v9003_v1  ;;  %v3571_v58 = vadd.f32 %v9004_v41, %v3214_v37  ;;  %v9005_v12 = vld [vmem:[#allocation10_spill] sm:$0xff] }
 0x215   : > { %4790 = vst [vmem:[%s8599_s18 + $0xb8] sm:$0xff] %v4758_v7  ;;  %v4756_v53 = vadd.f32 %v4691_v56, %v4288_v60  ;;  %v4293_v6 = vadd.f32 %v5970_v40, %v3569_v27  ;;  %v4818_v11 = vadd.f32 %v4817_v42, %v4755_v21  ;;  %v4860_v2 = vmul.f32 %v4758_v7, %v4758_v7 }
 0x216   : > { %v6005_v34 = vpop.f32.mrf.mxu0  ;;  %v4887_v5 = vadd.f32 %v4886_v15, %v4856_v14  ;;  %v4236_v29 = vpop.f32.mrf.mxu1  ;;  %v3573_v36 = vadd.f32 %v9002_v50, %v3216_v59 }
 0x217   : > { %4788 = vst [vmem:[%s8599_s18 + $0xa8] sm:$0xff] %v4756_v53  ;;  %v4858_v17 = vmul.f32 %v4756_v53, %v4756_v53  ;;  %v4761_v28 = vadd.f32 %v6004_v4, %v4293_v6  ;;  %v4291_v13 = vadd.f32 %v4236_v29, %v3567_v43  ;;  %v4819_v63 = vadd.f32 %v4818_v11, %v4756_v53 }
 0x218   : > { %v4707_v46 = vpop.f32.mrf.mxu0  ;;  %v4888_v23 = vadd.f32 %v4887_v5, %v4857_v32  ;;  %v5971_v9 = vpop.f32.mrf.mxu1 }
 0x219   : > { %4793 = vst [vmem:[%s8599_s18 + $0xd0] sm:$0xff] %v4761_v28  ;;  %v4759_v8 = vadd.f32 %v4704_v16, %v4291_v13  ;;  %v4294_v33 = vadd.f32 %v5971_v9, %v3570_v22  ;;  %v4820_v20 = vadd.f32 %v4819_v63, %v4757_v49  ;;  %v9006_v49 = vld [vmem:[#allocation43_spill] sm:$0xff]  ;;  %v9007_v16 = vld [vmem:[#allocation40_spill] sm:$0xff] }
 0x21a   : > { %v6008_v48 = vpop.f32.mrf.mxu0  ;;  %v4889_v56 = vadd.f32 %v4888_v23, %v4858_v17  ;;  %v4239_v35 = vpop.f32.mrf.mxu1  ;;  %v3215_v52 = vadd.f32 %v9006_v49, %v9005_v12  ;;  %v3574_v14 = vadd.f32 %v9007_v16, %v3217_v0 }
 0x21b   : > { %4791 = vst [vmem:[%s8599_s18 + $0xc0] sm:$0xff] %v4759_v8  ;;  %v4762_v25 = vadd.f32 %v6005_v34, %v4294_v33  ;;  %v4292_v26 = vadd.f32 %v4239_v35, %v3568_v31  ;;  %v4821_v51 = vadd.f32 %v4820_v20, %v4758_v7  ;;  %v4861_v55 = vmul.f32 %v4759_v8, %v4759_v8 }
 0x21c   : > { %v4890_v21 = vadd.f32 %v4889_v56, %v4859_v62  ;;  %v5974_v4 = vpop.f32.mrf.mxu1  ;;  %v4720_v24 = vpop.f32.mrf.mxu0  ;;  %v3572_v10 = vadd.f32 %v9008_v57, %v3215_v52  ;;  %v4863_v34 = vmul.f32 %v4761_v28, %v4761_v28 }
 0x21d   : > { %4794 = vst [vmem:[%s8599_s18 + $0xd8] sm:$0xff] %v4762_v25  ;;  %v4760_v39 = vadd.f32 %v4707_v46, %v4292_v26  ;;  %v4297_v38 = vadd.f32 %v5974_v4, %v3573_v36  ;;  %v4822_v45 = vadd.f32 %v4821_v51, %v4759_v8  ;;  %v4864_v29 = vmul.f32 %v4762_v25, %v4762_v25 }
 0x21e   : > { %v4891_v27 = vadd.f32 %v4890_v21, %v4860_v2  ;;  %v4252_v60 = vpop.f32.mrf.mxu1  ;;  %v6009_v61 = vpop.f32.mrf.mxu0 }
 0x21f   : > { %4792 = vst [vmem:[%s8599_s18 + $0xc8] sm:$0xff] %v4760_v39  ;;  %v4862_v7 = vmul.f32 %v4760_v39, %v4760_v39  ;;  %v4765_v15 = vadd.f32 %v6008_v48, %v4297_v38  ;;  %v4295_v42 = vadd.f32 %v4252_v60, %v3571_v58  ;;  %v4823_v19 = vadd.f32 %v4822_v45, %v4760_v39 }
 0x220   : > { %v4892_v40 = vadd.f32 %v4891_v27, %v4861_v55  ;;  %v5975_v43 = vpop.f32.mrf.mxu1  ;;  %v4723_v59 = vpop.f32.mrf.mxu0 }
 0x221   : > { %4797 = vst [vmem:[%s8599_s18 + $0xf0] sm:$0xff] %v4765_v15  ;;  %v4763_v53 = vadd.f32 %v4720_v24, %v4295_v42  ;;  %v4298_v6 = vadd.f32 %v5975_v43, %v3574_v14  ;;  %v4824_v47 = vadd.f32 %v4823_v19, %v4761_v28  ;;  %v4867_v31 = vmul.f32 %v4765_v15, %v4765_v15 }
 0x222   : > { %v4893_v22 = vadd.f32 %v4892_v40, %v4862_v7  ;;  %v4255_v11 = vpop.f32.mrf.mxu1 }
 0x223   : > { %4795 = vst [vmem:[%s8599_s18 + $0xe0] sm:$0xff] %v4763_v53  ;;  %v4766_v32 = vadd.f32 %v6009_v61, %v4298_v6  ;;  %v4296_v5 = vadd.f32 %v4255_v11, %v3572_v10  ;;  %v4825_v18 = vadd.f32 %v4824_v47, %v4762_v25  ;;  %v4865_v46 = vmul.f32 %v4763_v53, %v4763_v53 }
 0x224   : > { %v4894_v44 = vadd.f32 %v4893_v22, %v4863_v34 }
 0x225   : > { %4798 = vst [vmem:[%s8599_s18 + $0xf8] sm:$0xff] %v4766_v32  ;;  %v4764_v17 = vadd.f32 %v4723_v59, %v4296_v5  ;;  %v4826_v13 = vadd.f32 %v4825_v18, %v4763_v53  ;;  %v4868_v54 = vmul.f32 %v4766_v32, %v4766_v32 }
 0x226   : > { %v4895_v23 = vadd.f32 %v4894_v44, %v4864_v29 }
 0x227   : > { %4796 = vst [vmem:[%s8599_s18 + $0xe8] sm:$0xff] %v4764_v17  ;;  %v4866_v63 = vmul.f32 %v4764_v17, %v4764_v17  ;;  %v4827_v3 = vadd.f32 %v4826_v13, %v4764_v17 }
 0x228   : > { %v4896_v9 = vadd.f32 %v4895_v23, %v4865_v46 }
 0x229   : > { %v4828_v28 = vadd.f32 %v4827_v3, %v4765_v15 }
 0x22a   : > { %v4897_v30 = vadd.f32 %v4896_v9, %v4866_v63 }
 0x22b   : > { %v4829_v37 = vadd.f32 %v4828_v28, %v4766_v32 }
 0x22c   : > { %v4898_v8 = vadd.f32 %v4897_v30, %v4867_v31 }
 0x22d   : > { %v4830_v33 = vrot.slane %v4829_v37, 4 }
 0x22e   : > { %v4899_v48 = vadd.f32 %v4898_v8, %v4868_v54 }
 0x22f   : > { %v4831_v62 = vadd.f32 %v4830_v33, %v4829_v37 }
 0x230   : > { %v4900_v20 = vrot.slane %v4899_v48, 4 }
 0x231   : > { %v4832_v56 = vrot.slane %v4831_v62, 2 }
 0x232   : > { %v4901_v35 = vadd.f32 %v4900_v20, %v4899_v48 }
 0x233   : > { %v4833_v50 = vadd.f32 %v4832_v56, %v4831_v62 }
 0x234   : > { %v4902_v36 = vrot.slane %v4901_v35, 2 }
 0x235   : > { %v4834_v1 = vrot.slane %v4833_v50, 1 }
 0x236   : > { %v4903_v0 = vadd.f32 %v4902_v36, %v4901_v35 }
 0x237   : > { %v4835_v25 = vadd.f32 %v4834_v1, %v4833_v50 }
 0x238   : > { %v4904_v26 = vrot.slane %v4903_v0, 1 }
 0x239   : > { %4836 = vst [vmem:[%s211_s21] sm:$0x1] %v4835_v25 }
 0x23a   : > { %v4905_v2 = vadd.f32 %v4904_v26, %v4903_v0 }
 0x23c   : > { %4906 = vst [vmem:[%s214_s24] sm:$0x1] %v4905_v2 }
 0x23d PF: > { %s15_s15 = sadd.s32 1, %s6087_s15  }
 0x23e   : > { %p12_p4 = scmp.ge.s32.totalorder %s15_s15, 4  }
 0x240   :  { %14 = sbr.rel (!%p12_p4) target bundleno = 1 (0x1), region = 84 }

</bundles_post_ra>
